<compile_context>
chip_gen: v5e
topology: v5e:2x2
jax: 0.10.0
libtpu: 0.0.40
codegen_flags: <defaults>
</compile_context>

<pallas_src>
import functools

import jax
import jax.numpy as jnp
from jax.experimental import pallas as pl
from jax.experimental.pallas import tpu as pltpu

_LANE = 128


def _round_up(x, m):
    return (x + m - 1) // m * m


def _pick_h_tile(oh, in_w, out_w, cpad, ocpad, kh,
                 budget_bytes=4 * 1024 * 1024):
    """Largest divisor of OH whose per-step VMEM footprint stays within budget.

    Footprint counts the haloed input tile plus the two conv-output tiles
    (everything is double-buffered by the BlockSpec pipeline, hence the 2x).
    """
    best = 1
    for t in range(1, oh + 1):
        if oh % t != 0:
            continue
        in_tile = (t + kh - 1) * in_w * cpad * 4
        y1_tile = t * out_w * cpad * 4
        y2_tile = t * out_w * ocpad * 4
        if 2 * (in_tile + y1_tile + y2_tile) <= budget_bytes:
            best = t
    return best


# ---------------------------------------------------------------------------
# Kernel 1: depthwise KxK conv (stride 1) + partial BN1 stats.
# ---------------------------------------------------------------------------
def _dw_conv_kernel(x_ref, w_ref, y_ref, stats_ref, *, KH, KW, TOH, OW):
    # x_ref:     (1, 1, TOH+KH-1, Wp, C)  haloed tile of the padded input
    # w_ref:     (KH*KW, C)               depthwise taps per channel
    # y_ref:     (1, TOH, OW, C)          depthwise conv output tile
    # stats_ref: (1, 1, 2, C)             per-tile [sum, sum of squares]
    xb = x_ref[0, 0, :, :, :]             # (TOH+KH-1, Wp, C)
    w = w_ref[...]                        # (KH*KW, C)
    acc = jnp.zeros((TOH, OW, xb.shape[-1]), jnp.float32)
    for kh in range(KH):                  # static unroll: KH*KW VPU MACs
        for kw in range(KW):
            k = kh * KW + kw
            acc = acc + xb[kh:kh + TOH, kw:kw + OW, :] * w[k:k + 1, :]
    y_ref[0, :, :, :] = acc
    s = jnp.sum(acc, axis=(0, 1), keepdims=True)[0]          # (1, C)
    s2 = jnp.sum(acc * acc, axis=(0, 1), keepdims=True)[0]   # (1, C)
    stats_ref[0, 0, 0:1, :] = s
    stats_ref[0, 0, 1:2, :] = s2


# ---------------------------------------------------------------------------
# Kernel 2: BN1 normalize + ReLU (fused prologue) + pointwise 1x1 conv (MXU)
#           + partial BN2 stats.
# ---------------------------------------------------------------------------
def _pw_conv_kernel(y1_ref, sc1_ref, sh1_ref, w_ref, y2_ref, stats_ref):
    # y1_ref:    (1, TOH, OW, C)    depthwise output tile
    # sc1/sh1:   (1, C)             folded BN1 scale / shift
    # w_ref:     (C, OC)            pointwise weights (lane-padded)
    # y2_ref:    (1, TOH, OW, OC)
    # stats_ref: (1, 1, 2, OC)
    z = jnp.maximum(y1_ref[0, :, :, :] * sc1_ref[...] + sh1_ref[...], 0.0)
    toh, ow, c = z.shape
    # OW is a multiple of 8 in the demo config -> this reshape is a no-op
    # relayout; otherwise it costs one in-VMEM repack, still correct.
    z2 = z.reshape(toh * ow, c)
    out = jnp.dot(z2, w_ref[...], preferred_element_type=jnp.float32)
    y2_ref[0, :, :, :] = out.reshape(toh, ow, -1)
    stats_ref[0, 0, 0:1, :] = jnp.sum(out, axis=0, keepdims=True)
    stats_ref[0, 0, 1:2, :] = jnp.sum(out * out, axis=0, keepdims=True)


# ---------------------------------------------------------------------------
# Kernel 3: BN2 normalize + ReLU (in place over the pointwise output).
# ---------------------------------------------------------------------------
def _bn_relu_kernel(y2_ref, sc2_ref, sh2_ref, o_ref):
    o_ref[0, :, :, :] = jnp.maximum(
        y2_ref[0, :, :, :] * sc2_ref[...] + sh2_ref[...], 0.0)


@functools.partial(jax.jit, static_argnames=("stride", "padding", "bn_eps"))
def dws_conv_block_forward(x, dw_weight, dw_gamma, dw_beta,
                           pw_weight, pw_gamma, pw_beta,
                           *, stride=1, padding=1, bn_eps=1e-5):
    """DwsConvBlock forward: dwconv->BN->ReLU->1x1 conv->BN->ReLU (NCHW I/O)."""
    N, C, H, W = x.shape
    Cdw, one, KH, KW = dw_weight.shape
    assert Cdw == C and one == 1
    OC, Cpw, kh1, kw1 = pw_weight.shape
    assert Cpw == C and kh1 == 1 and kw1 == 1
    assert stride == 1  # TODO(synk): general stride for the depthwise stage
    p = padding
    OH = H + 2 * p - KH + 1
    OW = W + 2 * p - KW + 1
    Wp = W + 2 * p

    Cp = _round_up(C, _LANE)
    OCp = _round_up(OC, _LANE)

    # --- layout plumbing, done once: NCHW -> NHWC, pad spatially + lanes ---
    xh = jnp.transpose(x, (0, 2, 3, 1)).astype(jnp.float32)
    xh = jnp.pad(xh, ((0, 0), (p, p), (p, p), (0, Cp - C)))

    TOH = _pick_h_tile(OH, Wp, OW, Cp, OCp, KH)
    NT = OH // TOH

    # Haloed H-tiles: ~(TOH+KH-1)/TOH duplication instead of a KH*KW im2col.
    if NT == 1:
        x_tiles = xh[:, None]                                  # no copy needed
    else:
        x_tiles = jnp.stack(
            [xh[:, t * TOH: t * TOH + TOH + KH - 1] for t in range(NT)], axis=1)

    w_dw = jnp.pad(dw_weight.reshape(C, KH * KW).T.astype(jnp.float32),
                   ((0, 0), (0, Cp - C)))                       # (KH*KW, Cp)
    w_pw = jnp.pad(pw_weight.reshape(OC, C).T.astype(jnp.float32),
                   ((0, Cp - C), (0, OCp - OC)))                # (Cp, OCp)

    cparams = pltpu.CompilerParams(
        dimension_semantics=("parallel", "parallel"),
        vmem_limit_bytes=32 * 1024 * 1024)

    # ---- stage 1: depthwise conv + BN1 partial stats ----
    dw_flops = int(2 * N * OH * OW * Cp * KH * KW)
    dw_bytes = int(4 * (N * NT * (TOH + KH - 1) * Wp * Cp
                        + N * OH * OW * Cp + KH * KW * Cp))
    y1, stats1 = pl.pallas_call(
        functools.partial(_dw_conv_kernel, KH=KH, KW=KW, TOH=TOH, OW=OW),
        grid=(N, NT),
        in_specs=[
            pl.BlockSpec((1, 1, TOH + KH - 1, Wp, Cp),
                         lambda n, t: (n, t, 0, 0, 0)),
            pl.BlockSpec((KH * KW, Cp), lambda n, t: (0, 0)),
        ],
        out_specs=[
            pl.BlockSpec((1, TOH, OW, Cp), lambda n, t: (n, t, 0, 0)),
            pl.BlockSpec((1, 1, 2, Cp), lambda n, t: (n, t, 0, 0)),
        ],
        out_shape=[
            jax.ShapeDtypeStruct((N, OH, OW, Cp), jnp.float32),
            jax.ShapeDtypeStruct((N, NT, 2, Cp), jnp.float32),
        ],
        compiler_params=cparams,
        cost_estimate=pl.CostEstimate(flops=dw_flops, transcendentals=0,
                                      bytes_accessed=dw_bytes),
    )(x_tiles, w_dw)

    # Fold BN1 (training-mode batch stats, biased variance) into scale/shift.
    cnt = jnp.float32(N * OH * OW)
    tot1 = jnp.sum(stats1, axis=(0, 1))                   # (2, Cp) -- tiny glue
    mean1 = tot1[0] / cnt
    var1 = tot1[1] / cnt - mean1 * mean1
    g1 = jnp.pad(dw_gamma.astype(jnp.float32), (0, Cp - C))
    b1 = jnp.pad(dw_beta.astype(jnp.float32), (0, Cp - C))
    sc1 = (g1 * jax.lax.rsqrt(var1 + bn_eps))[None, :]    # (1, Cp)
    sh1 = (b1 - mean1 * sc1[0])[None, :]                  # (1, Cp)

    # ---- stage 2: BN1+ReLU fused into pointwise 1x1 conv + BN2 partial stats
    pw_flops = int(2 * N * OH * OW * Cp * OCp)
    pw_bytes = int(4 * (N * OH * OW * (Cp + OCp) + Cp * OCp))
    y2, stats2 = pl.pallas_call(
        _pw_conv_kernel,
        grid=(N, NT),
        in_specs=[
            pl.BlockSpec((1, TOH, OW, Cp), lambda n, t: (n, t, 0, 0)),
            pl.BlockSpec((1, Cp), lambda n, t: (0, 0)),
            pl.BlockSpec((1, Cp), lambda n, t: (0, 0)),
            pl.BlockSpec((Cp, OCp), lambda n, t: (0, 0)),
        ],
        out_specs=[
            pl.BlockSpec((1, TOH, OW, OCp), lambda n, t: (n, t, 0, 0)),
            pl.BlockSpec((1, 1, 2, OCp), lambda n, t: (n, t, 0, 0)),
        ],
        out_shape=[
            jax.ShapeDtypeStruct((N, OH, OW, OCp), jnp.float32),
            jax.ShapeDtypeStruct((N, NT, 2, OCp), jnp.float32),
        ],
        compiler_params=cparams,
        cost_estimate=pl.CostEstimate(flops=pw_flops, transcendentals=0,
                                      bytes_accessed=pw_bytes),
    )(y1, sc1, sh1, w_pw)

    # Fold BN2.
    tot2 = jnp.sum(stats2, axis=(0, 1))
    mean2 = tot2[0] / cnt
    var2 = tot2[1] / cnt - mean2 * mean2
    g2 = jnp.pad(pw_gamma.astype(jnp.float32), (0, OCp - OC))
    b2 = jnp.pad(pw_beta.astype(jnp.float32), (0, OCp - OC))
    sc2 = (g2 * jax.lax.rsqrt(var2 + bn_eps))[None, :]
    sh2 = (b2 - mean2 * sc2[0])[None, :]

    # ---- stage 3: BN2 normalize + ReLU, written in place over y2 ----
    out_nhwc = pl.pallas_call(
        _bn_relu_kernel,
        grid=(N, NT),
        in_specs=[
            pl.BlockSpec((1, TOH, OW, OCp), lambda n, t: (n, t, 0, 0)),
            pl.BlockSpec((1, OCp), lambda n, t: (0, 0)),
            pl.BlockSpec((1, OCp), lambda n, t: (0, 0)),
        ],
        out_specs=pl.BlockSpec((1, TOH, OW, OCp), lambda n, t: (n, t, 0, 0)),
        out_shape=jax.ShapeDtypeStruct((N, OH, OW, OCp), jnp.float32),
        compiler_params=cparams,
        input_output_aliases={0: 0},
    )(y2, sc2, sh2)

    # Back to PyTorch's NCHW layout, dropping the channel lane-padding.
    return jnp.transpose(out_nhwc[..., :OC], (0, 3, 1, 2))


if __name__ == "__main__":
    # DwsConvBlock(in_channels=4, out_channels=8, kernel_size=3, stride=1, padding=1)
    N, C, H, W = 2, 4, 16, 16
    OC, KH, KW = 8, 3, 3
    stride, padding, bn_eps = 1, 1, 1e-5

    key = jax.random.PRNGKey(0)
    kx, k1, k2, k3, k4, k5, k6 = jax.random.split(key, 7)
    x = jax.random.normal(kx, (N, C, H, W), dtype=jnp.float32)
    dw_w = jax.random.normal(k1, (C, 1, KH, KW), dtype=jnp.float32) * 0.3
    dw_gamma = 1.0 + 0.1 * jax.random.normal(k2, (C,), dtype=jnp.float32)
    dw_beta = 0.1 * jax.random.normal(k3, (C,), dtype=jnp.float32)
    pw_w = jax.random.normal(k4, (OC, C, 1, 1), dtype=jnp.float32) * 0.3
    pw_gamma = 1.0 + 0.1 * jax.random.normal(k5, (OC,), dtype=jnp.float32)
    pw_beta = 0.1 * jax.random.normal(k6, (OC,), dtype=jnp.float32)

    out = dws_conv_block_forward(x, dw_w, dw_gamma, dw_beta,
                                 pw_w, pw_gamma, pw_beta,
                                 stride=stride, padding=padding, bn_eps=bn_eps)
    out = jax.block_until_ready(out)

    # Silent correctness check against a pure-JAX reference of the same math.
    def bn_relu(y, gamma, beta):
        m = y.mean(axis=(0, 2, 3), keepdims=True)
        v = y.var(axis=(0, 2, 3), keepdims=True)  # biased, like PyTorch BN fwd
        yn = (y - m) * jax.lax.rsqrt(v + bn_eps)
        return jnp.maximum(yn * gamma.reshape(1, -1, 1, 1)
                           + beta.reshape(1, -1, 1, 1), 0.0)

    dw_ref = jax.lax.conv_general_dilated(
        x, dw_w, (stride, stride), [(padding, padding), (padding, padding)],
        dimension_numbers=("NCHW", "OIHW", "NCHW"), feature_group_count=C)
    z_ref = bn_relu(dw_ref, dw_gamma, dw_beta)
    pw_ref = jax.lax.conv_general_dilated(
        z_ref, pw_w, (1, 1), [(0, 0), (0, 0)],
        dimension_numbers=("NCHW", "OIHW", "NCHW"))
    ref_out = bn_relu(pw_ref, pw_gamma, pw_beta)

    assert out.shape == (N, OC, H, W)
    assert jnp.allclose(out, ref_out, atol=1e-3, rtol=1e-3), (
        float(jnp.max(jnp.abs(out - ref_out))))

    print("KERNEL_OK")
</pallas_src>

<mosaic_0001>
module attributes {stable_mosaic.version = 11 : i64} {
  func.func @_dw_conv_kernel(%arg0: i32, %arg1: i32, %arg2: memref<1x1x18x18x128xf32, #tpu.memory_space<vmem>>, %arg3: memref<9x128xf32, #tpu.memory_space<vmem>>, %arg4: memref<1x16x16x128xf32, #tpu.memory_space<vmem>>, %arg5: memref<1x1x2x128xf32, #tpu.memory_space<vmem>>) attributes {dimension_semantics = [#tpu.dimension_semantics<parallel>, #tpu.dimension_semantics<parallel>], iteration_bounds = array<i64: 2, 1>, scalar_prefetch = 0 : i64, scratch_operands = 0 : i64, tpu.core_type = #tpu.core_type<tc>, window_params = [{transform_indices = @transform_0, window_bounds = array<i64: 1, 1, 18, 18, 128>}, {pipeline_mode = #tpu.pipeline_mode<synchronous>, transform_indices = @transform_1, window_bounds = array<i64: 9, 128>}, {transform_indices = @transform_2, window_bounds = array<i64: 1, 16, 16, 128>}, {transform_indices = @transform_3, window_bounds = array<i64: 1, 1, 2, 128>}]} {
    %c0 = arith.constant 0 : index
    %c0_0 = arith.constant 0 : index
    %c0_1 = arith.constant 0 : index
    %c0_2 = arith.constant 0 : index
    %c0_3 = arith.constant 0 : index
    %0 = vector.load %arg2[%c0, %c0_0, %c0_1, %c0_2, %c0_3] : memref<1x1x18x18x128xf32, #tpu.memory_space<vmem>>, vector<1x1x18x18x128xf32>
    %1 = vector.shape_cast %0 : vector<1x1x18x18x128xf32> to vector<18x18x128xf32>
    %c0_4 = arith.constant 0 : index
    %c0_5 = arith.constant 0 : index
    %2 = vector.load %arg3[%c0_4, %c0_5] : memref<9x128xf32, #tpu.memory_space<vmem>>, vector<9x128xf32>
    %cst = arith.constant 0.000000e+00 : f32
    %3 = vector.broadcast %cst : f32 to vector<16x16x128xf32>
    %4 = vector.extract_strided_slice %1 {offsets = [0, 0, 0], sizes = [16, 16, 128], strides = [1, 1, 1]} : vector<18x18x128xf32> to vector<16x16x128xf32>
    %5 = vector.extract_strided_slice %2 {offsets = [0, 0], sizes = [1, 128], strides = [1, 1]} : vector<9x128xf32> to vector<1x128xf32>
    %6 = vector.shape_cast %5 : vector<1x128xf32> to vector<1x1x128xf32>
    %7 = vector.broadcast %6 : vector<1x1x128xf32> to vector<16x16x128xf32>
    %8 = arith.mulf %4, %7 : vector<16x16x128xf32>
    %9 = arith.addf %3, %8 : vector<16x16x128xf32>
    %10 = vector.extract_strided_slice %1 {offsets = [0, 1, 0], sizes = [16, 16, 128], strides = [1, 1, 1]} : vector<18x18x128xf32> to vector<16x16x128xf32>
    %11 = vector.extract_strided_slice %2 {offsets = [1, 0], sizes = [1, 128], strides = [1, 1]} : vector<9x128xf32> to vector<1x128xf32>
    %12 = vector.shape_cast %11 : vector<1x128xf32> to vector<1x1x128xf32>
    %13 = vector.broadcast %12 : vector<1x1x128xf32> to vector<16x16x128xf32>
    %14 = arith.mulf %10, %13 : vector<16x16x128xf32>
    %15 = arith.addf %9, %14 : vector<16x16x128xf32>
    %16 = vector.extract_strided_slice %1 {offsets = [0, 2, 0], sizes = [16, 16, 128], strides = [1, 1, 1]} : vector<18x18x128xf32> to vector<16x16x128xf32>
    %17 = vector.extract_strided_slice %2 {offsets = [2, 0], sizes = [1, 128], strides = [1, 1]} : vector<9x128xf32> to vector<1x128xf32>
    %18 = vector.shape_cast %17 : vector<1x128xf32> to vector<1x1x128xf32>
    %19 = vector.broadcast %18 : vector<1x1x128xf32> to vector<16x16x128xf32>
    %20 = arith.mulf %16, %19 : vector<16x16x128xf32>
    %21 = arith.addf %15, %20 : vector<16x16x128xf32>
    %22 = vector.extract_strided_slice %1 {offsets = [1, 0, 0], sizes = [16, 16, 128], strides = [1, 1, 1]} : vector<18x18x128xf32> to vector<16x16x128xf32>
    %23 = vector.extract_strided_slice %2 {offsets = [3, 0], sizes = [1, 128], strides = [1, 1]} : vector<9x128xf32> to vector<1x128xf32>
    %24 = vector.shape_cast %23 : vector<1x128xf32> to vector<1x1x128xf32>
    %25 = vector.broadcast %24 : vector<1x1x128xf32> to vector<16x16x128xf32>
    %26 = arith.mulf %22, %25 : vector<16x16x128xf32>
    %27 = arith.addf %21, %26 : vector<16x16x128xf32>
    %28 = vector.extract_strided_slice %1 {offsets = [1, 1, 0], sizes = [16, 16, 128], strides = [1, 1, 1]} : vector<18x18x128xf32> to vector<16x16x128xf32>
    %29 = vector.extract_strided_slice %2 {offsets = [4, 0], sizes = [1, 128], strides = [1, 1]} : vector<9x128xf32> to vector<1x128xf32>
    %30 = vector.shape_cast %29 : vector<1x128xf32> to vector<1x1x128xf32>
    %31 = vector.broadcast %30 : vector<1x1x128xf32> to vector<16x16x128xf32>
    %32 = arith.mulf %28, %31 : vector<16x16x128xf32>
    %33 = arith.addf %27, %32 : vector<16x16x128xf32>
    %34 = vector.extract_strided_slice %1 {offsets = [1, 2, 0], sizes = [16, 16, 128], strides = [1, 1, 1]} : vector<18x18x128xf32> to vector<16x16x128xf32>
    %35 = vector.extract_strided_slice %2 {offsets = [5, 0], sizes = [1, 128], strides = [1, 1]} : vector<9x128xf32> to vector<1x128xf32>
    %36 = vector.shape_cast %35 : vector<1x128xf32> to vector<1x1x128xf32>
    %37 = vector.broadcast %36 : vector<1x1x128xf32> to vector<16x16x128xf32>
    %38 = arith.mulf %34, %37 : vector<16x16x128xf32>
    %39 = arith.addf %33, %38 : vector<16x16x128xf32>
    %40 = vector.extract_strided_slice %1 {offsets = [2, 0, 0], sizes = [16, 16, 128], strides = [1, 1, 1]} : vector<18x18x128xf32> to vector<16x16x128xf32>
    %41 = vector.extract_strided_slice %2 {offsets = [6, 0], sizes = [1, 128], strides = [1, 1]} : vector<9x128xf32> to vector<1x128xf32>
    %42 = vector.shape_cast %41 : vector<1x128xf32> to vector<1x1x128xf32>
    %43 = vector.broadcast %42 : vector<1x1x128xf32> to vector<16x16x128xf32>
    %44 = arith.mulf %40, %43 : vector<16x16x128xf32>
    %45 = arith.addf %39, %44 : vector<16x16x128xf32>
    %46 = vector.extract_strided_slice %1 {offsets = [2, 1, 0], sizes = [16, 16, 128], strides = [1, 1, 1]} : vector<18x18x128xf32> to vector<16x16x128xf32>
    %47 = vector.extract_strided_slice %2 {offsets = [7, 0], sizes = [1, 128], strides = [1, 1]} : vector<9x128xf32> to vector<1x128xf32>
    %48 = vector.shape_cast %47 : vector<1x128xf32> to vector<1x1x128xf32>
    %49 = vector.broadcast %48 : vector<1x1x128xf32> to vector<16x16x128xf32>
    %50 = arith.mulf %46, %49 : vector<16x16x128xf32>
    %51 = arith.addf %45, %50 : vector<16x16x128xf32>
    %52 = vector.extract_strided_slice %1 {offsets = [2, 2, 0], sizes = [16, 16, 128], strides = [1, 1, 1]} : vector<18x18x128xf32> to vector<16x16x128xf32>
    %53 = vector.extract_strided_slice %2 {offsets = [8, 0], sizes = [1, 128], strides = [1, 1]} : vector<9x128xf32> to vector<1x128xf32>
    %54 = vector.shape_cast %53 : vector<1x128xf32> to vector<1x1x128xf32>
    %55 = vector.broadcast %54 : vector<1x1x128xf32> to vector<16x16x128xf32>
    %56 = arith.mulf %52, %55 : vector<16x16x128xf32>
    %57 = arith.addf %51, %56 : vector<16x16x128xf32>
    %c0_6 = arith.constant 0 : index
    %c0_7 = arith.constant 0 : index
    %c0_8 = arith.constant 0 : index
    %c0_9 = arith.constant 0 : index
    %58 = vector.load %arg4[%c0_6, %c0_7, %c0_8, %c0_9] : memref<1x16x16x128xf32, #tpu.memory_space<vmem>>, vector<1x16x16x128xf32>
    %59 = vector.shape_cast %58 : vector<1x16x16x128xf32> to vector<16x16x128xf32>
    %60 = vector.shape_cast %57 : vector<16x16x128xf32> to vector<1x16x16x128xf32>
    tpu.vector_store %arg4[%c0_6, %c0_7, %c0_8, %c0_9], %60 {strides = array<i32>} : memref<1x16x16x128xf32, #tpu.memory_space<vmem>>, vector<1x16x16x128xf32>,
    %cst_10 = arith.constant dense<0.000000e+00> : vector<128xf32>
    %61 = vector.multi_reduction <add>, %57, %cst_10 [0, 1] : vector<16x16x128xf32> to vector<128xf32>
    %62 = vector.shape_cast %61 : vector<128xf32> to vector<1x1x128xf32>
    %63 = vector.shape_cast %62 : vector<1x1x128xf32> to vector<1x128xf32>
    %64 = arith.mulf %57, %57 : vector<16x16x128xf32>
    %cst_11 = arith.constant dense<0.000000e+00> : vector<128xf32>
    %65 = vector.multi_reduction <add>, %64, %cst_11 [0, 1] : vector<16x16x128xf32> to vector<128xf32>
    %66 = vector.shape_cast %65 : vector<128xf32> to vector<1x1x128xf32>
    %67 = vector.shape_cast %66 : vector<1x1x128xf32> to vector<1x128xf32>
    %c0_12 = arith.constant 0 : index
    %c0_13 = arith.constant 0 : index
    %c0_14 = arith.constant 0 : index
    %c0_15 = arith.constant 0 : index
    %68 = vector.load %arg5[%c0_12, %c0_13, %c0_14, %c0_15] : memref<1x1x2x128xf32, #tpu.memory_space<vmem>>, vector<1x1x1x128xf32>
    %69 = vector.shape_cast %68 : vector<1x1x1x128xf32> to vector<1x128xf32>
    %70 = vector.shape_cast %63 : vector<1x128xf32> to vector<1x1x1x128xf32>
    tpu.vector_store %arg5[%c0_12, %c0_13, %c0_14, %c0_15], %70 {strides = array<i32>} : memref<1x1x2x128xf32, #tpu.memory_space<vmem>>, vector<1x1x1x128xf32>,
    %c0_16 = arith.constant 0 : index
    %c0_17 = arith.constant 0 : index
    %c1 = arith.constant 1 : index
    %c0_18 = arith.constant 0 : index
    %71 = vector.load %arg5[%c0_16, %c0_17, %c1, %c0_18] : memref<1x1x2x128xf32, #tpu.memory_space<vmem>>, vector<1x1x1x128xf32>
    %72 = vector.shape_cast %71 : vector<1x1x1x128xf32> to vector<1x128xf32>
    %73 = vector.shape_cast %67 : vector<1x128xf32> to vector<1x1x1x128xf32>
    tpu.vector_store %arg5[%c0_16, %c0_17, %c1, %c0_18], %73 {strides = array<i32>} : memref<1x1x2x128xf32, #tpu.memory_space<vmem>>, vector<1x1x1x128xf32>,
    return
  }
  func.func @transform_0(%arg0: i32, %arg1: i32) -> (i32, i32, i32, i32, i32) {
    %c0_i32 = arith.constant 0 : i32
    %c0_i32_0 = arith.constant 0 : i32
    %c0_i32_1 = arith.constant 0 : i32
    %c0_i32_2 = arith.constant 0 : i32
    return %arg0, %arg1, %c0_i32, %c0_i32_0, %c0_i32_1 : i32, i32, i32, i32, i32
  }
  func.func @transform_1(%arg0: i32, %arg1: i32) -> (i32, i32) {
    %c0_i32 = arith.constant 0 : i32
    %c0_i32_0 = arith.constant 0 : i32
    %c0_i32_1 = arith.constant 0 : i32
    return %c0_i32, %c0_i32_0 : i32, i32
  }
  func.func @transform_2(%arg0: i32, %arg1: i32) -> (i32, i32, i32, i32) {
    %c0_i32 = arith.constant 0 : i32
    %c0_i32_0 = arith.constant 0 : i32
    %c0_i32_1 = arith.constant 0 : i32
    return %arg0, %arg1, %c0_i32, %c0_i32_0 : i32, i32, i32, i32
  }
  func.func @transform_3(%arg0: i32, %arg1: i32) -> (i32, i32, i32, i32) {
    %c0_i32 = arith.constant 0 : i32
    %c0_i32_0 = arith.constant 0 : i32
    %c0_i32_1 = arith.constant 0 : i32
    return %arg0, %arg1, %c0_i32, %c0_i32_0 : i32, i32, i32, i32
  }
}

module attributes {stable_mosaic.version = 11 : i64} {
  func.func @_bn_relu_kernel(%arg0: i32, %arg1: i32, %arg2: memref<1x16x16x128xf32, #tpu.memory_space<vmem>>, %arg3: memref<1x128xf32, #tpu.memory_space<vmem>>, %arg4: memref<1x128xf32, #tpu.memory_space<vmem>>, %arg5: memref<1x16x16x128xf32, #tpu.memory_space<vmem>>) attributes {dimension_semantics = [#tpu.dimension_semantics<parallel>, #tpu.dimension_semantics<parallel>], iteration_bounds = array<i64: 2, 1>, scalar_prefetch = 0 : i64, scratch_operands = 0 : i64, tpu.core_type = #tpu.core_type<tc>, window_params = [{transform_indices = @transform_0, window_bounds = array<i64: 1, 16, 16, 128>}, {pipeline_mode = #tpu.pipeline_mode<synchronous>, transform_indices = @transform_1, window_bounds = array<i64: 1, 128>}, {pipeline_mode = #tpu.pipeline_mode<synchronous>, transform_indices = @transform_2, window_bounds = array<i64: 1, 128>}, {transform_indices = @transform_3, window_bounds = array<i64: 1, 16, 16, 128>}]} {
    %c0 = arith.constant 0 : index
    %c0_0 = arith.constant 0 : index
    %c0_1 = arith.constant 0 : index
    %c0_2 = arith.constant 0 : index
    %0 = vector.load %arg2[%c0, %c0_0, %c0_1, %c0_2] : memref<1x16x16x128xf32, #tpu.memory_space<vmem>>, vector<1x16x16x128xf32>
    %1 = vector.shape_cast %0 : vector<1x16x16x128xf32> to vector<16x16x128xf32>
    %c0_3 = arith.constant 0 : index
    %c0_4 = arith.constant 0 : index
    %2 = vector.load %arg3[%c0_3, %c0_4] : memref<1x128xf32, #tpu.memory_space<vmem>>, vector<1x128xf32>
    %3 = vector.shape_cast %2 : vector<1x128xf32> to vector<1x1x128xf32>
    %4 = vector.broadcast %3 : vector<1x1x128xf32> to vector<16x16x128xf32>
    %5 = arith.mulf %1, %4 : vector<16x16x128xf32>
    %c0_5 = arith.constant 0 : index
    %c0_6 = arith.constant 0 : index
    %6 = vector.load %arg4[%c0_5, %c0_6] : memref<1x128xf32, #tpu.memory_space<vmem>>, vector<1x128xf32>
    %7 = vector.shape_cast %6 : vector<1x128xf32> to vector<1x1x128xf32>
    %8 = vector.broadcast %7 : vector<1x1x128xf32> to vector<16x16x128xf32>
    %9 = arith.addf %5, %8 : vector<16x16x128xf32>
    %cst = arith.constant 0.000000e+00 : f32
    %10 = vector.broadcast %cst : f32 to vector<16x16x128xf32>
    %11 = arith.maximumf %9, %10 : vector<16x16x128xf32>
    %c0_7 = arith.constant 0 : index
    %c0_8 = arith.constant 0 : index
    %c0_9 = arith.constant 0 : index
    %c0_10 = arith.constant 0 : index
    %12 = vector.load %arg5[%c0_7, %c0_8, %c0_9, %c0_10] : memref<1x16x16x128xf32, #tpu.memory_space<vmem>>, vector<1x16x16x128xf32>
    %13 = vector.shape_cast %12 : vector<1x16x16x128xf32> to vector<16x16x128xf32>
    %14 = vector.shape_cast %11 : vector<16x16x128xf32> to vector<1x16x16x128xf32>
    tpu.vector_store %arg5[%c0_7, %c0_8, %c0_9, %c0_10], %14 {strides = array<i32>} : memref<1x16x16x128xf32, #tpu.memory_space<vmem>>, vector<1x16x16x128xf32>,
    return
  }
  func.func @transform_0(%arg0: i32, %arg1: i32) -> (i32, i32, i32, i32) {
    %c0_i32 = arith.constant 0 : i32
    %c0_i32_0 = arith.constant 0 : i32
    %c0_i32_1 = arith.constant 0 : i32
    return %arg0, %arg1, %c0_i32, %c0_i32_0 : i32, i32, i32, i32
  }
  func.func @transform_1(%arg0: i32, %arg1: i32) -> (i32, i32) {
    %c0_i32 = arith.constant 0 : i32
    %c0_i32_0 = arith.constant 0 : i32
    %c0_i32_1 = arith.constant 0 : i32
    return %c0_i32, %c0_i32_0 : i32, i32
  }
  func.func @transform_2(%arg0: i32, %arg1: i32) -> (i32, i32) {
    %c0_i32 = arith.constant 0 : i32
    %c0_i32_0 = arith.constant 0 : i32
    %c0_i32_1 = arith.constant 0 : i32
    return %c0_i32, %c0_i32_0 : i32, i32
  }
  func.func @transform_3(%arg0: i32, %arg1: i32) -> (i32, i32, i32, i32) {
    %c0_i32 = arith.constant 0 : i32
    %c0_i32_0 = arith.constant 0 : i32
    %c0_i32_1 = arith.constant 0 : i32
    return %arg0, %arg1, %c0_i32, %c0_i32_0 : i32, i32, i32, i32
  }
}

module attributes {stable_mosaic.version = 11 : i64} {
  func.func @_pw_conv_kernel(%arg0: i32, %arg1: i32, %arg2: memref<1x16x16x128xf32, #tpu.memory_space<vmem>>, %arg3: memref<1x128xf32, #tpu.memory_space<vmem>>, %arg4: memref<1x128xf32, #tpu.memory_space<vmem>>, %arg5: memref<128x128xf32, #tpu.memory_space<vmem>>, %arg6: memref<1x16x16x128xf32, #tpu.memory_space<vmem>>, %arg7: memref<1x1x2x128xf32, #tpu.memory_space<vmem>>) attributes {dimension_semantics = [#tpu.dimension_semantics<parallel>, #tpu.dimension_semantics<parallel>], iteration_bounds = array<i64: 2, 1>, scalar_prefetch = 0 : i64, scratch_operands = 0 : i64, tpu.core_type = #tpu.core_type<tc>, window_params = [{transform_indices = @transform_0, window_bounds = array<i64: 1, 16, 16, 128>}, {pipeline_mode = #tpu.pipeline_mode<synchronous>, transform_indices = @transform_1, window_bounds = array<i64: 1, 128>}, {pipeline_mode = #tpu.pipeline_mode<synchronous>, transform_indices = @transform_2, window_bounds = array<i64: 1, 128>}, {pipeline_mode = #tpu.pipeline_mode<synchronous>, transform_indices = @transform_3, window_bounds = array<i64: 128, 128>}, {transform_indices = @transform_4, window_bounds = array<i64: 1, 16, 16, 128>}, {transform_indices = @transform_5, window_bounds = array<i64: 1, 1, 2, 128>}]} {
    %c0 = arith.constant 0 : index
    %c0_0 = arith.constant 0 : index
    %c0_1 = arith.constant 0 : index
    %c0_2 = arith.constant 0 : index
    %0 = vector.load %arg2[%c0, %c0_0, %c0_1, %c0_2] : memref<1x16x16x128xf32, #tpu.memory_space<vmem>>, vector<1x16x16x128xf32>
    %1 = vector.shape_cast %0 : vector<1x16x16x128xf32> to vector<16x16x128xf32>
    %c0_3 = arith.constant 0 : index
    %c0_4 = arith.constant 0 : index
    %2 = vector.load %arg3[%c0_3, %c0_4] : memref<1x128xf32, #tpu.memory_space<vmem>>, vector<1x128xf32>
    %3 = vector.shape_cast %2 : vector<1x128xf32> to vector<1x1x128xf32>
    %4 = vector.broadcast %3 : vector<1x1x128xf32> to vector<16x16x128xf32>
    %5 = arith.mulf %1, %4 : vector<16x16x128xf32>
    %c0_5 = arith.constant 0 : index
    %c0_6 = arith.constant 0 : index
    %6 = vector.load %arg4[%c0_5, %c0_6] : memref<1x128xf32, #tpu.memory_space<vmem>>, vector<1x128xf32>
    %7 = vector.shape_cast %6 : vector<1x128xf32> to vector<1x1x128xf32>
    %8 = vector.broadcast %7 : vector<1x1x128xf32> to vector<16x16x128xf32>
    %9 = arith.addf %5, %8 : vector<16x16x128xf32>
    %cst = arith.constant 0.000000e+00 : f32
    %10 = vector.broadcast %cst : f32 to vector<16x16x128xf32>
    %11 = arith.maximumf %9, %10 : vector<16x16x128xf32>
    %12 = vector.shape_cast %11 : vector<16x16x128xf32> to vector<256x128xf32>
    %c0_7 = arith.constant 0 : index
    %c0_8 = arith.constant 0 : index
    %13 = vector.load %arg5[%c0_7, %c0_8] : memref<128x128xf32, #tpu.memory_space<vmem>>, vector<128x128xf32>
    %cst_9 = arith.constant dense<0.000000e+00> : vector<256x128xf32>
    %14 = tpu.matmul %12, %13, %cst_9 {dimension_numbers = #tpu.dot_dimension_numbers<[1], [0], [0], [1], [0, 0, 1, 1], [], []>} : vector<256x128xf32>, vector<128x128xf32>, vector<256x128xf32> -> vector<256x128xf32>
    %15 = vector.shape_cast %14 : vector<256x128xf32> to vector<16x16x128xf32>
    %c0_10 = arith.constant 0 : index
    %c0_11 = arith.constant 0 : index
    %c0_12 = arith.constant 0 : index
    %c0_13 = arith.constant 0 : index
    %16 = vector.load %arg6[%c0_10, %c0_11, %c0_12, %c0_13] : memref<1x16x16x128xf32, #tpu.memory_space<vmem>>, vector<1x16x16x128xf32>
    %17 = vector.shape_cast %16 : vector<1x16x16x128xf32> to vector<16x16x128xf32>
    %18 = vector.shape_cast %15 : vector<16x16x128xf32> to vector<1x16x16x128xf32>
    tpu.vector_store %arg6[%c0_10, %c0_11, %c0_12, %c0_13], %18 {strides = array<i32>} : memref<1x16x16x128xf32, #tpu.memory_space<vmem>>, vector<1x16x16x128xf32>,
    %cst_14 = arith.constant dense<0.000000e+00> : vector<128xf32>
    %19 = vector.multi_reduction <add>, %14, %cst_14 [0] : vector<256x128xf32> to vector<128xf32>
    %20 = vector.shape_cast %19 : vector<128xf32> to vector<1x128xf32>
    %c0_15 = arith.constant 0 : index
    %c0_16 = arith.constant 0 : index
    %c0_17 = arith.constant 0 : index
    %c0_18 = arith.constant 0 : index
    %21 = vector.load %arg7[%c0_15, %c0_16, %c0_17, %c0_18] : memref<1x1x2x128xf32, #tpu.memory_space<vmem>>, vector<1x1x1x128xf32>
    %22 = vector.shape_cast %21 : vector<1x1x1x128xf32> to vector<1x128xf32>
    %23 = vector.shape_cast %20 : vector<1x128xf32> to vector<1x1x1x128xf32>
    tpu.vector_store %arg7[%c0_15, %c0_16, %c0_17, %c0_18], %23 {strides = array<i32>} : memref<1x1x2x128xf32, #tpu.memory_space<vmem>>, vector<1x1x1x128xf32>,
    %24 = arith.mulf %14, %14 : vector<256x128xf32>
    %cst_19 = arith.constant dense<0.000000e+00> : vector<128xf32>
    %25 = vector.multi_reduction <add>, %24, %cst_19 [0] : vector<256x128xf32> to vector<128xf32>
    %26 = vector.shape_cast %25 : vector<128xf32> to vector<1x128xf32>
    %c0_20 = arith.constant 0 : index
    %c0_21 = arith.constant 0 : index
    %c1 = arith.constant 1 : index
    %c0_22 = arith.constant 0 : index
    %27 = vector.load %arg7[%c0_20, %c0_21, %c1, %c0_22] : memref<1x1x2x128xf32, #tpu.memory_space<vmem>>, vector<1x1x1x128xf32>
    %28 = vector.shape_cast %27 : vector<1x1x1x128xf32> to vector<1x128xf32>
    %29 = vector.shape_cast %26 : vector<1x128xf32> to vector<1x1x1x128xf32>
    tpu.vector_store %arg7[%c0_20, %c0_21, %c1, %c0_22], %29 {strides = array<i32>} : memref<1x1x2x128xf32, #tpu.memory_space<vmem>>, vector<1x1x1x128xf32>,
    return
  }
  func.func @transform_0(%arg0: i32, %arg1: i32) -> (i32, i32, i32, i32) {
    %c0_i32 = arith.constant 0 : i32
    %c0_i32_0 = arith.constant 0 : i32
    %c0_i32_1 = arith.constant 0 : i32
    return %arg0, %arg1, %c0_i32, %c0_i32_0 : i32, i32, i32, i32
  }
  func.func @transform_1(%arg0: i32, %arg1: i32) -> (i32, i32) {
    %c0_i32 = arith.constant 0 : i32
    %c0_i32_0 = arith.constant 0 : i32
    %c0_i32_1 = arith.constant 0 : i32
    return %c0_i32, %c0_i32_0 : i32, i32
  }
  func.func @transform_2(%arg0: i32, %arg1: i32) -> (i32, i32) {
    %c0_i32 = arith.constant 0 : i32
    %c0_i32_0 = arith.constant 0 : i32
    %c0_i32_1 = arith.constant 0 : i32
    return %c0_i32, %c0_i32_0 : i32, i32
  }
  func.func @transform_3(%arg0: i32, %arg1: i32) -> (i32, i32) {
    %c0_i32 = arith.constant 0 : i32
    %c0_i32_0 = arith.constant 0 : i32
    %c0_i32_1 = arith.constant 0 : i32
    return %c0_i32, %c0_i32_0 : i32, i32
  }
  func.func @transform_4(%arg0: i32, %arg1: i32) -> (i32, i32, i32, i32) {
    %c0_i32 = arith.constant 0 : i32
    %c0_i32_0 = arith.constant 0 : i32
    %c0_i32_1 = arith.constant 0 : i32
    return %arg0, %arg1, %c0_i32, %c0_i32_0 : i32, i32, i32, i32
  }
  func.func @transform_5(%arg0: i32, %arg1: i32) -> (i32, i32, i32, i32) {
    %c0_i32 = arith.constant 0 : i32
    %c0_i32_0 = arith.constant 0 : i32
    %c0_i32_1 = arith.constant 0 : i32
    return %arg0, %arg1, %c0_i32, %c0_i32_0 : i32, i32, i32, i32
  }
}

</mosaic_0001>

<bundles_post_ra>
// kernel: dws_conv_block_forward.4
= control target key start
LH: loop header
LB: loop body
LE: loop exit
PB: predicated region body
PF: predicated region fallthrough
CT: control target
= control target key end

     0   :  { %s972_s18 = smov 0   ;;  %s974_s19 = smov 0   ;;  %s1318_s0 = inlined_call_operand.vmem [shape: f32[2,16,16,128], index: 0, kind: input, shape index: {}]   ;;  %s1319_s1 = inlined_call_operand.vmem [shape: f32[1,128], index: 1, kind: input, shape index: {}]   ;;  %s1320_s2 = inlined_call_operand.vmem [shape: f32[1,128], index: 2, kind: input, shape index: {}]   ;;  %s1321_s3 = inlined_call_operand.vmem [shape: f32[128,128], index: 3, kind: input, shape index: {}]   ;;  %s1322_s4 = inlined_call_operand.vmem [shape: f32[2,16,16,128], index: 4, kind: output, shape index: {0}]   ;;  %s1323_s5 = inlined_call_operand.vmem [shape: f32[2,1,2,128], index: 5, kind: output, shape index: {1}]  }
   0x1   :  { %s976_s20 = smov 0  }
   0x2 LB: > { %s28_s21 = sadd.s32 1, %s936_s19  ;;  %p834_p0 = scmp.ge.s32.totalorder %s940_s20, 1  ;;  %s940_s20 = sphi %s976_s20, %s16_s20   ;;  %s936_s19 = sphi %s974_s19, %s1325_s19   ;;  %s932_s18 = sphi %s972_s18, %s1324_s18  }
   0x3   : > { %p30_p1 = scmp.ge.s32.totalorder %s28_s21, 2  ;;  %p214_p2 = scmp.lt.s32.totalorder %s940_s20, 3 }
   0x5   : > { %s1327_s21 = smov (%p30_p1, %s28_s21), 0  ;;  %p215_p3 = pnand %p834_p0, %p214_p2 }
   0x6   : > { %p260_p4 = scmp.lt.s32.totalorder (!%p215_p3), %s932_s18, 1 }
   0x7   : > { %218 = sbr.rel (%p215_p3) target bundleno = 291 (0x123), region = 36 }
   0xc   : > { %v439_v0 = vld [vmem:[%s1321_s3 + $0x78] sm:$0xff]  ;;  %v438_v1 = vld [vmem:[%s1321_s3 + $0x70] sm:$0xff]  ;;  %v437_v2 = vld [vmem:[%s1321_s3 + $0x68] sm:$0xff]  ;;  %s1329_s18 = smov (!%p260_p4, %s932_s18), 1 }
   0xd   : > { %440 = vmatpush.msra.mxu0 %v439_v0  ;;  %844 = vmatpush.msra.mxu1 %v439_v0  ;;  %v436_v3 = vld [vmem:[%s1321_s3 + $0x60] sm:$0xff]  ;;  %v435_v4 = vld [vmem:[%s1321_s3 + $0x58] sm:$0xff]  ;;  %v434_v5 = vld [vmem:[%s1321_s3 + $0x50] sm:$0xff]  ;;  %s842_s11 = sshll.u32 %s1329_s18, 8 }
   0xe   : > { %845 = vmatpush.msra.mxu2 %v439_v0  ;;  %846 = vmatpush.msra.mxu3 %v439_v0  ;;  %v433_v6 = vld [vmem:[%s1321_s3 + $0x48] sm:$0xff]  ;;  %v432_v7 = vld [vmem:[%s1321_s3 + $0x40] sm:$0xff]  ;;  %v431_v8 = vld [vmem:[%s1321_s3 + $0x38] sm:$0xff]  ;;  %s1029_s22 = scalar_lea.vmem %s1318_s0, %s842_s11  ;;  %s1163_s23 = scalar_lea.vmem %s1322_s4, %s842_s11 }
   0xf   : > { %441 = vmatpush.msra.mxu0 %v438_v1  ;;  %847 = vmatpush.msra.mxu1 %v438_v1  ;;  %v430_v9 = vld [vmem:[%s1321_s3 + $0x30] sm:$0xff]  ;;  %v1037_v10 = vld [vmem:[%s1319_s1] ss:$0 sm:$0xff]  ;;  %v429_v13 = vld [vmem:[%s1321_s3 + $0x28] sm:$0xff]  ;;  %s839_s11 = sshll.u32 %s1329_s18, 1 }
  0x10   : > { %848 = vmatpush.msra.mxu2 %v438_v1  ;;  %849 = vmatpush.msra.mxu3 %v438_v1  ;;  %v288_v11 = vld [vmem:[%s1029_s22] sm:$0xff]  ;;  %v427_v19 = vld [vmem:[%s1321_s3 + $0x18] sm:$0xff]  ;;  %v426_v21 = vld [vmem:[%s1321_s3 + $0x10] sm:$0xff]  ;;  %s287_s26 = scalar_lea.vmem %s1323_s5, %s839_s11 }
  0x11   : > { %442 = vmatpush.msra.mxu0 %v437_v2  ;;  %850 = vmatpush.msra.mxu1 %v437_v2  ;;  %v296_v12 = vld [vmem:[%s1029_s22 + $0x40] sm:$0xff]  ;;  %v324_v16 = vmul.f32 %v1037_v10, %v288_v11  ;;  %v289_v24 = vld [vmem:[%s1029_s22 + $0x8] sm:$0xff]  ;;  %v290_v37 = vld [vmem:[%s1029_s22 + $0x10] sm:$0xff] }
  0x12   : > { %851 = vmatpush.msra.mxu2 %v437_v2  ;;  %852 = vmatpush.msra.mxu3 %v437_v2  ;;  %v304_v14 = vld [vmem:[%s1029_s22 + $0x80] sm:$0xff]  ;;  %v332_v18 = vmul.f32 %v1037_v10, %v296_v12  ;;  %v297_v25 = vld [vmem:[%s1029_s22 + $0x48] sm:$0xff]  ;;  %v325_v31 = vmul.f32 %v1037_v10, %v289_v24  ;;  %v298_v39 = vld [vmem:[%s1029_s22 + $0x50] sm:$0xff]  ;;  %v326_v41 = vmul.f32 %v1037_v10, %v290_v37 }
  0x13   : > { %443 = vmatpush.msra.mxu0 %v436_v3  ;;  %853 = vmatpush.msra.mxu1 %v436_v3  ;;  %v428_v15 = vld [vmem:[%s1321_s3 + $0x20] sm:$0xff]  ;;  %v340_v20 = vmul.f32 %v1037_v10, %v304_v14  ;;  %v425_v26 = vld [vmem:[%s1321_s3 + $0x8] sm:$0xff]  ;;  %v333_v33 = vmul.f32 %v1037_v10, %v297_v25  ;;  %v306_v42 = vld [vmem:[%s1029_s22 + $0x90] sm:$0xff]  ;;  %v334_v46 = vmul.f32 %v1037_v10, %v298_v39 }
  0x14   : > { %854 = vmatpush.msra.mxu2 %v436_v3  ;;  %855 = vmatpush.msra.mxu3 %v436_v3  ;;  %v1052_v17 = vld [vmem:[%s1320_s2] ss:$0 sm:$0xff]  ;;  %v305_v28 = vld [vmem:[%s1029_s22 + $0x88] sm:$0xff]  ;;  %v342_v49 = vmul.f32 %v1037_v10, %v306_v42  ;;  %v291_v52 = vld [vmem:[%s1029_s22 + $0x18] sm:$0xff] }
  0x15   : > { %444 = vmatpush.msra.mxu0 %v435_v4  ;;  %856 = vmatpush.msra.mxu1 %v435_v4  ;;  %v360_v22 = vadd.f32 %v1052_v17, %v324_v16  ;;  %v368_v23 = vadd.f32 %v1052_v17, %v332_v18  ;;  %v376_v27 = vadd.f32 %v1052_v17, %v340_v20  ;;  %v424_v29 = vld [vmem:[%s1321_s3] sm:$0xff]  ;;  %v299_v55 = vld [vmem:[%s1029_s22 + $0x58] sm:$0xff]  ;;  %v313_v59 = vld [vmem:[%s1029_s22 + $0xc8] sm:$0xff] }
  0x16   : > { %857 = vmatpush.msra.mxu2 %v435_v4  ;;  %858 = vmatpush.msra.mxu3 %v435_v4  ;;  %v341_v35 = vmul.f32 %v1037_v10, %v305_v28  ;;  %v361_v36 = vadd.f32 %v1052_v17, %v325_v31  ;;  %v369_v38 = vadd.f32 %v1052_v17, %v333_v33  ;;  %v312_v43 = vld [vmem:[%s1029_s22 + $0xc0] sm:$0xff]  ;;  %v307_v58 = vld [vmem:[%s1029_s22 + $0x98] sm:$0xff]  ;;  %v314_v12 = vld [vmem:[%s1029_s22 + $0xd0] sm:$0xff] }
  0x17   : > { %445 = vmatpush.msra.mxu0 %v434_v5  ;;  %859 = vmatpush.msra.mxu1 %v434_v5  ;;  %v392_v30 = vmax.f32 %v360_v22, 0.0  ;;  %v400_v32 = vmax.f32 %v368_v23, 0.0  ;;  %v408_v34 = vmax.f32 %v376_v27, 0.0  ;;  %v348_v47 = vmul.f32 %v1037_v10, %v312_v43  ;;  %v308_v11 = vld [vmem:[%s1029_s22 + $0xa0] sm:$0xff]  ;;  %v315_v24 = vld [vmem:[%s1029_s22 + $0xd8] sm:$0xff]  ;;  %v293_v25 = vld [vmem:[%s1029_s22 + $0x28] sm:$0xff] }
  0x18   : > { %860 = vmatpush.msra.mxu2 %v434_v5  ;;  %861 = vmatpush.msra.mxu3 %v434_v5  ;;  %v377_v40 = vadd.f32 %v1052_v17, %v341_v35  ;;  %v393_v44 = vmax.f32 %v361_v36, 0.0  ;;  %v401_v45 = vmax.f32 %v369_v38, 0.0  ;;  %v362_v51 = vadd.f32 %v1052_v17, %v326_v41  ;;  %v316_v31 = vld [vmem:[%s1029_s22 + $0xe0] sm:$0xff]  ;;  %v319_v36 = vld [vmem:[%s1029_s22 + $0xf8] sm:$0xff] }
  0x19   : > { %446 = vmatpush.msra.mxu0 %v433_v6  ;;  %862 = vmatpush.msra.mxu1 %v433_v6  ;;  %v384_v50 = vadd.f32 %v1052_v17, %v348_v47  ;;  %v370_v53 = vadd.f32 %v1052_v17, %v334_v46  ;;  %v378_v56 = vadd.f32 %v1052_v17, %v342_v49  ;;  %v310_v49 = vld [vmem:[%s1029_s22 + $0xb0] sm:$0xff] }
  0x1a   : > { %863 = vmatpush.msra.mxu2 %v433_v6  ;;  %864 = vmatpush.msra.mxu3 %v433_v6  ;;  %v409_v48 = vmax.f32 %v377_v40, 0.0  ;;  %v327_v57 = vmul.f32 %v1037_v10, %v291_v52  ;;  %v394_v60 = vmax.f32 %v362_v51, 0.0  ;;  %v335_v62 = vmul.f32 %v1037_v10, %v299_v55  ;;  %v292_v6 = vld [vmem:[%s1029_s22 + $0x20] sm:$0xff] }
  0x1b   : > { %447 = vmatpush.msra.mxu0 %v432_v7  ;;  %865 = vmatpush.msra.mxu1 %v432_v7  ;;  %v416_v54 = vmax.f32 %v384_v50, 0.0  ;;  %v402_v61 = vmax.f32 %v370_v53, 0.0  ;;  %v349_v63 = vmul.f32 %v1037_v10, %v313_v59  ;;  %v410_v0 = vmax.f32 %v378_v56, 0.0  ;;  %v317_v50 = vld [vmem:[%s1029_s22 + $0xe8] sm:$0xff] }
  0x1c   : > { %866 = vmatpush.msra.mxu2 %v432_v7  ;;  %867 = vmatpush.msra.mxu3 %v432_v7  ;;  %v343_v1 = vmul.f32 %v1037_v10, %v307_v58  ;;  %v363_v3 = vadd.f32 %v1052_v17, %v327_v57  ;;  %v371_v4 = vadd.f32 %v1052_v17, %v335_v62  ;;  %v300_v7 = vld [vmem:[%s1029_s22 + $0x60] sm:$0xff]  ;;  %v303_v62 = vld [vmem:[%s1029_s22 + $0x78] sm:$0xff] }
  0x1d   : > { %448 = vmatpush.msra.mxu0 %v431_v8  ;;  %868 = vmatpush.msra.mxu1 %v431_v8  ;;  %v385_v2 = vadd.f32 %v1052_v17, %v349_v63  ;;  %v350_v16 = vmul.f32 %v1037_v10, %v314_v12  ;;  %v351_v27 = vmul.f32 %v1037_v10, %v315_v24 }
  0x1e   : > { %869 = vmatpush.msra.mxu2 %v431_v8  ;;  %870 = vmatpush.msra.mxu3 %v431_v8  ;;  %v379_v8 = vadd.f32 %v1052_v17, %v343_v1  ;;  %v403_v14 = vmax.f32 %v371_v4, 0.0  ;;  %v329_v33 = vmul.f32 %v1037_v10, %v293_v25  ;;  %v352_v40 = vmul.f32 %v1037_v10, %v316_v31  ;;  %v311_v1 = vld [vmem:[%s1029_s22 + $0xb8] sm:$0xff] }
  0x1f   : > { %449 = vmatpush.msra.mxu0 %v430_v9  ;;  %871 = vmatpush.msra.mxu1 %v430_v9  ;;  %v417_v5 = vmax.f32 %v385_v2, 0.0  ;;  %v386_v20 = vadd.f32 %v1052_v17, %v350_v16  ;;  %v355_v41 = vmul.f32 %v1037_v10, %v319_v36  ;;  %v346_v56 = vmul.f32 %v1037_v10, %v310_v49  ;;  %v318_v2 = vld [vmem:[%s1029_s22 + $0xf0] sm:$0xff] }
  0x20   : > { %872 = vmatpush.msra.mxu2 %v430_v9  ;;  %873 = vmatpush.msra.mxu3 %v430_v9  ;;  %v395_v9 = vmax.f32 %v363_v3, 0.0  ;;  %v411_v18 = vmax.f32 %v379_v8, 0.0  ;;  %v365_v42 = vadd.f32 %v1052_v17, %v329_v33  ;;  %v353_v58 = vmul.f32 %v1037_v10, %v317_v50 }
  0x21   : > { %450 = vmatpush.msra.mxu0 %v429_v13  ;;  %874 = vmatpush.msra.mxu1 %v429_v13  ;;  %v418_v23 = vmax.f32 %v386_v20, 0.0  ;;  %v391_v46 = vadd.f32 %v1052_v17, %v355_v41  ;;  %v382_v63 = vadd.f32 %v1052_v17, %v346_v56  ;;  %v347_v8 = vmul.f32 %v1037_v10, %v311_v1 }
  0x22   : > { %875 = vmatpush.msra.mxu2 %v429_v13  ;;  %876 = vmatpush.msra.mxu3 %v429_v13  ;;  %v328_v13 = vmul.f32 %v1037_v10, %v292_v6  ;;  %v397_v51 = vmax.f32 %v365_v42, 0.0  ;;  %v339_v6 = vmul.f32 %v1037_v10, %v303_v62 }
  0x23   : > { %451 = vmatpush.msra.mxu0 %v428_v15  ;;  %877 = vmatpush.msra.mxu1 %v428_v15 }
  0x24   : > { %878 = vmatpush.msra.mxu2 %v428_v15  ;;  %879 = vmatpush.msra.mxu3 %v428_v15  ;;  %v336_v15 = vmul.f32 %v1037_v10, %v300_v7  ;;  %v414_v7 = vmax.f32 %v382_v63, 0.0 }
  0x25   : > { %452 = vmatpush.msra.mxu0 %v427_v19  ;;  %880 = vmatpush.msra.mxu1 %v427_v19 }
  0x26   : > { %881 = vmatpush.msra.mxu2 %v427_v19  ;;  %882 = vmatpush.msra.mxu3 %v427_v19  ;;  %v344_v19 = vmul.f32 %v1037_v10, %v308_v11  ;;  %v372_v22 = vadd.f32 %v1052_v17, %v336_v15  ;;  %v354_v11 = vmul.f32 %v1037_v10, %v318_v2 }
  0x27   : > { %453 = vmatpush.msra.mxu0 %v426_v21  ;;  %883 = vmatpush.msra.mxu1 %v426_v21 }
  0x28   : > { %884 = vmatpush.msra.mxu2 %v426_v21  ;;  %885 = vmatpush.msra.mxu3 %v426_v21  ;;  %v364_v21 = vadd.f32 %v1052_v17, %v328_v13  ;;  %v380_v28 = vadd.f32 %v1052_v17, %v344_v19  ;;  %v375_v13 = vadd.f32 %v1052_v17, %v339_v6 }
  0x29   : > { %454 = vmatpush.msra.mxu0 %v425_v26  ;;  %886 = vmatpush.msra.mxu1 %v425_v26  ;;  %v390_v15 = vadd.f32 %v1052_v17, %v354_v11 }
  0x2a   : > { %887 = vmatpush.msra.mxu2 %v425_v26  ;;  %888 = vmatpush.msra.mxu3 %v425_v26  ;;  %v301_v26 = vld [vmem:[%s1029_s22 + $0x68] sm:$0xff]  ;;  %v412_v37 = vmax.f32 %v380_v28, 0.0 }
  0x2b   : > { %455 = vmatpush.msra.mxu0 %v424_v29  ;;  %889 = vmatpush.msra.mxu1 %v424_v29  ;;  %v337_v35 = vmul.f32 %v1037_v10, %v301_v26  ;;  %v422_v20 = vmax.f32 %v390_v15, 0.0 }
  0x2c   : > { %456 = vmatmul.f32.vlgmr.msra.gmra.mxu0 %v392_v30  ;;  %480 = vmatmul.f32.vlgmr.msra.gmra.mxu1 %v400_v32  ;;  %v387_v30 = vadd.f32 %v1052_v17, %v351_v27  ;;  %v396_v32 = vmax.f32 %v364_v21, 0.0 }
  0x2d   : > { %890 = vmatpush.msra.mxu2 %v424_v29  ;;  %891 = vmatpush.msra.mxu3 %v424_v29  ;;  %v309_v29 = vld [vmem:[%s1029_s22 + $0xa8] sm:$0xff]  ;;  %v373_v43 = vadd.f32 %v1052_v17, %v337_v35 }
  0x2e   : > { %504 = vmatmul.f32.vlgmr.msra.gmra.mxu2 %v408_v34  ;;  %528 = vmatmul.f32.vlgmr.msra.gmra.mxu3 %v416_v54  ;;  %v404_v34 = vmax.f32 %v372_v22, 0.0  ;;  %v345_v38 = vmul.f32 %v1037_v10, %v309_v29  ;;  %v419_v39 = vmax.f32 %v387_v30, 0.0 }
  0x2f   : > { %v405_v53 = vmax.f32 %v373_v43, 0.0 }
  0x30   : > { %v381_v47 = vadd.f32 %v1052_v17, %v345_v38 }
  0x32   : > { %v413_v55 = vmax.f32 %v381_v47, 0.0 }
  0x34   : > { %459 = vmatmul.f32.gmra.mxu0 %v393_v44  ;;  %483 = vmatmul.f32.gmra.mxu1 %v401_v45  ;;  %v294_v44 = vld [vmem:[%s1029_s22 + $0x30] sm:$0xff] }
  0x35   : > { %v302_v45 = vld [vmem:[%s1029_s22 + $0x70] sm:$0xff]  ;;  %v330_v52 = vmul.f32 %v1037_v10, %v294_v44 }
  0x36   : > { %507 = vmatmul.f32.gmra.mxu2 %v409_v48  ;;  %531 = vmatmul.f32.gmra.mxu3 %v417_v5  ;;  %v388_v48 = vadd.f32 %v1052_v17, %v352_v40  ;;  %v338_v54 = vmul.f32 %v1037_v10, %v302_v45 }
  0x37   : > { %v366_v59 = vadd.f32 %v1052_v17, %v330_v52 }
  0x38   : > { %v420_v57 = vmax.f32 %v388_v48, 0.0 }
  0x39   : > { %v398_v3 = vmax.f32 %v366_v59, 0.0 }
  0x3c   : > { %462 = vmatmul.f32.gmra.mxu0 %v394_v60  ;;  %486 = vmatmul.f32.gmra.mxu1 %v402_v61  ;;  %v374_v60 = vadd.f32 %v1052_v17, %v338_v54  ;;  %v295_v61 = vld [vmem:[%s1029_s22 + $0x38] sm:$0xff] }
  0x3d   : > { %v331_v4 = vmul.f32 %v1037_v10, %v295_v61  ;;  %v423_v10 = vmax.f32 %v391_v46, 0.0 }
  0x3e   : > { %510 = vmatmul.f32.gmra.mxu2 %v410_v0  ;;  %534 = vmatmul.f32.gmra.mxu3 %v418_v23  ;;  %v389_v0 = vadd.f32 %v1052_v17, %v353_v58  ;;  %v406_v5 = vmax.f32 %v374_v60, 0.0 }
  0x3f   : > { %v367_v12 = vadd.f32 %v1052_v17, %v331_v4 }
  0x41   : > { %v399_v16 = vmax.f32 %v367_v12, 0.0 }
  0x44   : > { %465 = vmatmul.f32.gmra.mxu0 %v395_v9  ;;  %489 = vmatmul.f32.gmra.mxu1 %v403_v14  ;;  %v421_v9 = vmax.f32 %v389_v0, 0.0  ;;  %v383_v14 = vadd.f32 %v1052_v17, %v347_v8 }
  0x46   : > { %513 = vmatmul.f32.gmra.mxu2 %v411_v18  ;;  %537 = vmatmul.f32.gmra.mxu3 %v419_v39  ;;  %v407_v18 = vmax.f32 %v375_v13, 0.0  ;;  %v415_v19 = vmax.f32 %v383_v14, 0.0 }
  0x4c   : > { %468 = vmatmul.f32.gmra.mxu0 %v396_v32  ;;  %492 = vmatmul.f32.gmra.mxu1 %v404_v34 }
  0x4e   : > { %516 = vmatmul.f32.gmra.mxu2 %v412_v37  ;;  %540 = vmatmul.f32.gmra.mxu3 %v420_v57 }
  0x54   : > { %471 = vmatmul.f32.gmra.mxu0 %v397_v51  ;;  %495 = vmatmul.f32.gmra.mxu1 %v405_v53 }
  0x56   : > { %519 = vmatmul.f32.gmra.mxu2 %v413_v55  ;;  %543 = vmatmul.f32.gmra.mxu3 %v421_v9 }
  0x5c   : > { %474 = vmatmul.f32.gmra.mxu0 %v398_v3  ;;  %498 = vmatmul.f32.gmra.mxu1 %v406_v5 }
  0x5e   : > { %522 = vmatmul.f32.gmra.mxu2 %v414_v7  ;;  %546 = vmatmul.f32.gmra.mxu3 %v422_v20 }
  0x64   : > { %477 = vmatmul.f32.gmra.mxu0 %v399_v16  ;;  %501 = vmatmul.f32.gmra.mxu1 %v407_v18 }
  0x66   : > { %525 = vmatmul.f32.gmra.mxu2 %v415_v19  ;;  %549 = vmatmul.f32.gmra.mxu3 %v423_v10 }
  0xa9   : > { %v457_v17 = vpop.f32.mrf.mxu0  ;;  %v1165_v21 = vpop.f32.mrf.mxu1 }
  0xaa   : > { %553 = vst [vmem:[%s1163_s23] sm:$0xff] %v457_v17  ;;  %v623_v42 = vmul.f32 %v457_v17, %v457_v17  ;;  %v631_v6 = vmul.f32 %v1165_v21, %v1165_v21 }
  0xab   : > { %561 = vst [vmem:[%s1163_s23 + $0x40] sm:$0xff] %v1165_v21 }
  0xb1   : > { %v460_v22 = vpop.f32.mrf.mxu0  ;;  %v1170_v23 = vpop.f32.mrf.mxu1 }
  0xb2   : > { %554 = vst [vmem:[%s1163_s23 + $0x8] sm:$0xff] %v460_v22  ;;  %v1173_v24 = vpop.f32.mrf.mxu2  ;;  %v1184_v28 = vpop.f32.mrf.mxu3  ;;  %v624_v41 = vmul.f32 %v460_v22, %v460_v22  ;;  %v585_v43 = vadd.f32 %v460_v22, %v457_v17  ;;  %v632_v9 = vmul.f32 %v1170_v23, %v1170_v23 }
  0xb3   : > { %562 = vst [vmem:[%s1163_s23 + $0x48] sm:$0xff] %v1170_v23 }
  0xb4   : > { %569 = vst [vmem:[%s1163_s23 + $0x80] sm:$0xff] %v1173_v24  ;;  %v655_v45 = vadd.f32 %v624_v41, %v623_v42 }
  0xb5   : > { %577 = vst [vmem:[%s1163_s23 + $0xc0] sm:$0xff] %v1184_v28 }
  0xb9   : > { %v463_v25 = vpop.f32.mrf.mxu0  ;;  %v1179_v26 = vpop.f32.mrf.mxu1 }
  0xba   : > { %555 = vst [vmem:[%s1163_s23 + $0x10] sm:$0xff] %v463_v25  ;;  %v1182_v27 = vpop.f32.mrf.mxu2  ;;  %v1197_v32 = vpop.f32.mrf.mxu3  ;;  %v625_v44 = vmul.f32 %v463_v25, %v463_v25  ;;  %v586_v46 = vadd.f32 %v585_v43, %v463_v25  ;;  %v633_v13 = vmul.f32 %v1179_v26, %v1179_v26 }
  0xbb   : > { %563 = vst [vmem:[%s1163_s23 + $0x50] sm:$0xff] %v1179_v26 }
  0xbc   : > { %570 = vst [vmem:[%s1163_s23 + $0x88] sm:$0xff] %v1182_v27  ;;  %v656_v50 = vadd.f32 %v655_v45, %v625_v44  ;;  %v639_v44 = vmul.f32 %v1173_v24, %v1173_v24 }
  0xbd   : > { %578 = vst [vmem:[%s1163_s23 + $0xc8] sm:$0xff] %v1197_v32 }
  0xc1   : > { %v466_v29 = vpop.f32.mrf.mxu0  ;;  %v1192_v30 = vpop.f32.mrf.mxu1 }
  0xc2   : > { %556 = vst [vmem:[%s1163_s23 + $0x18] sm:$0xff] %v466_v29  ;;  %v1195_v31 = vpop.f32.mrf.mxu2  ;;  %v1210_v36 = vpop.f32.mrf.mxu3  ;;  %v626_v47 = vmul.f32 %v466_v29, %v466_v29  ;;  %v587_v51 = vadd.f32 %v586_v46, %v466_v29  ;;  %v634_v16 = vmul.f32 %v1192_v30, %v1192_v30  ;;  %v640_v46 = vmul.f32 %v1182_v27, %v1182_v27 }
  0xc3   : > { %564 = vst [vmem:[%s1163_s23 + $0x58] sm:$0xff] %v1192_v30 }
  0xc4   : > { %571 = vst [vmem:[%s1163_s23 + $0x90] sm:$0xff] %v1195_v31  ;;  %v657_v55 = vadd.f32 %v656_v50, %v626_v47 }
  0xc5   : > { %579 = vst [vmem:[%s1163_s23 + $0xd0] sm:$0xff] %v1210_v36 }
  0xc9   : > { %v469_v33 = vpop.f32.mrf.mxu0  ;;  %v1205_v34 = vpop.f32.mrf.mxu1 }
  0xca   : > { %557 = vst [vmem:[%s1163_s23 + $0x20] sm:$0xff] %v469_v33  ;;  %v1208_v35 = vpop.f32.mrf.mxu2  ;;  %v1223_v40 = vpop.f32.mrf.mxu3  ;;  %v627_v52 = vmul.f32 %v469_v33, %v469_v33  ;;  %v588_v56 = vadd.f32 %v587_v51, %v469_v33  ;;  %v635_v17 = vmul.f32 %v1205_v34, %v1205_v34 }
  0xcb   : > { %565 = vst [vmem:[%s1163_s23 + $0x60] sm:$0xff] %v1205_v34  ;;  %v642_v51 = vmul.f32 %v1208_v35, %v1208_v35 }
  0xcc   : > { %572 = vst [vmem:[%s1163_s23 + $0x98] sm:$0xff] %v1208_v35  ;;  %v658_v58 = vadd.f32 %v657_v55, %v627_v52 }
  0xcd   : > { %580 = vst [vmem:[%s1163_s23 + $0xd8] sm:$0xff] %v1223_v40 }
  0xd1   : > { %v472_v37 = vpop.f32.mrf.mxu0  ;;  %v1218_v38 = vpop.f32.mrf.mxu1 }
  0xd2   : > { %558 = vst [vmem:[%s1163_s23 + $0x28] sm:$0xff] %v472_v37  ;;  %v1221_v39 = vpop.f32.mrf.mxu2  ;;  %v1234_v54 = vpop.f32.mrf.mxu3  ;;  %v628_v57 = vmul.f32 %v472_v37, %v472_v37  ;;  %v589_v59 = vadd.f32 %v588_v56, %v472_v37  ;;  %v636_v25 = vmul.f32 %v1218_v38, %v1218_v38 }
  0xd3   : > { %566 = vst [vmem:[%s1163_s23 + $0x68] sm:$0xff] %v1218_v38 }
  0xd4   : > { %573 = vst [vmem:[%s1163_s23 + $0xa0] sm:$0xff] %v1221_v39  ;;  %v659_v61 = vadd.f32 %v658_v58, %v628_v57 }
  0xd5   : > { %581 = vst [vmem:[%s1163_s23 + $0xe0] sm:$0xff] %v1234_v54 }
  0xd9   : > { %v475_v48 = vpop.f32.mrf.mxu0  ;;  %v499_v49 = vpop.f32.mrf.mxu1 }
  0xda   : > { %559 = vst [vmem:[%s1163_s23 + $0x30] sm:$0xff] %v475_v48  ;;  %v1232_v53 = vpop.f32.mrf.mxu2  ;;  %v629_v60 = vmul.f32 %v475_v48, %v475_v48  ;;  %v590_v62 = vadd.f32 %v589_v59, %v475_v48  ;;  %v1242_v5 = vpop.f32.mrf.mxu3  ;;  %v641_v48 = vmul.f32 %v1195_v31, %v1195_v31 }
  0xdb   : > { %567 = vst [vmem:[%s1163_s23 + $0x70] sm:$0xff] %v499_v49  ;;  %v644_v58 = vmul.f32 %v1232_v53, %v1232_v53 }
  0xdc   : > { %574 = vst [vmem:[%s1163_s23 + $0xa8] sm:$0xff] %v1232_v53  ;;  %v660_v1 = vadd.f32 %v659_v61, %v629_v60 }
  0xdd   : > { %582 = vst [vmem:[%s1163_s23 + $0xe8] sm:$0xff] %v1242_v5 }
  0xe1   : > { %v478_v63 = vpop.f32.mrf.mxu0  ;;  %v502_v0 = vpop.f32.mrf.mxu1 }
  0xe2   : > { %560 = vst [vmem:[%s1163_s23 + $0x38] sm:$0xff] %v478_v63  ;;  %v591_v2 = vadd.f32 %v590_v62, %v478_v63  ;;  %v630_v3 = vmul.f32 %v478_v63, %v478_v63  ;;  %v523_v4 = vpop.f32.mrf.mxu2  ;;  %v547_v10 = vpop.f32.mrf.mxu3  ;;  %v638_v37 = vmul.f32 %v502_v0, %v502_v0 }
  0xe3   : > { %568 = vst [vmem:[%s1163_s23 + $0x78] sm:$0xff] %v502_v0  ;;  %v645_v61 = vmul.f32 %v523_v4, %v523_v4 }
  0xe4   : > { %v592_v7 = vadd.f32 %v591_v2, %v1165_v21  ;;  %v661_v8 = vadd.f32 %v660_v1, %v630_v3  ;;  %575 = vst [vmem:[%s1163_s23 + $0xb0] sm:$0xff] %v523_v4 }
  0xe5   : > { %583 = vst [vmem:[%s1163_s23 + $0xf0] sm:$0xff] %v547_v10 }
  0xe6   : > { %v593_v11 = vadd.f32 %v592_v7, %v1170_v23  ;;  %v662_v12 = vadd.f32 %v661_v8, %v631_v6  ;;  %v650_v8 = vmul.f32 %v1223_v40, %v1223_v40 }
  0xe8   : > { %v594_v14 = vadd.f32 %v593_v11, %v1179_v26  ;;  %v663_v15 = vadd.f32 %v662_v12, %v632_v9 }
  0xea   : > { %v664_v18 = vadd.f32 %v663_v15, %v633_v13  ;;  %v595_v19 = vadd.f32 %v594_v14, %v1192_v30  ;;  %v526_v20 = vpop.f32.mrf.mxu2  ;;  %v637_v30 = vmul.f32 %v499_v49, %v499_v49  ;;  %v550_v43 = vpop.f32.mrf.mxu3  ;;  %v652_v14 = vmul.f32 %v1242_v5, %v1242_v5 }
  0xeb   : > { %576 = vst [vmem:[%s1163_s23 + $0xb8] sm:$0xff] %v526_v20  ;;  %v646_v62 = vmul.f32 %v526_v20, %v526_v20 }
  0xec   : > { %v596_v21 = vadd.f32 %v595_v19, %v1205_v34  ;;  %v665_v22 = vadd.f32 %v664_v18, %v634_v16  ;;  %584 = vst [vmem:[%s1163_s23 + $0xf8] sm:$0xff] %v550_v43  ;;  %v653_v18 = vmul.f32 %v547_v10, %v547_v10  ;;  %v654_v19 = vmul.f32 %v550_v43, %v550_v43 }
  0xee   : > { %v597_v23 = vadd.f32 %v596_v21, %v1218_v38  ;;  %v666_v26 = vadd.f32 %v665_v22, %v635_v17 }
  0xf0   : > { %v667_v29 = vadd.f32 %v666_v26, %v636_v25  ;;  %v598_v33 = vadd.f32 %v597_v23, %v499_v49 }
  0xf2   : > { %v668_v41 = vadd.f32 %v667_v29, %v637_v30  ;;  %v599_v42 = vadd.f32 %v598_v33, %v502_v0 }
  0xf4   : > { %v600_v34 = vadd.f32 %v599_v42, %v1173_v24  ;;  %v669_v45 = vadd.f32 %v668_v41, %v638_v37  ;;  %v643_v24 = vmul.f32 %v1221_v39, %v1221_v39 }
  0xf6   : > { %v601_v38 = vadd.f32 %v600_v34, %v1182_v27  ;;  %v670_v47 = vadd.f32 %v669_v45, %v639_v44 }
  0xf8   : > { %v602_v49 = vadd.f32 %v601_v38, %v1195_v31  ;;  %v671_v50 = vadd.f32 %v670_v47, %v640_v46 }
  0xfa   : > { %v672_v52 = vadd.f32 %v671_v50, %v641_v48  ;;  %v603_v55 = vadd.f32 %v602_v49, %v1208_v35  ;;  %v647_v35 = vmul.f32 %v1184_v28, %v1184_v28 }
  0xfc   : > { %v604_v56 = vadd.f32 %v603_v55, %v1221_v39  ;;  %v673_v57 = vadd.f32 %v672_v52, %v642_v51  ;;  %v648_v39 = vmul.f32 %v1197_v32, %v1197_v32 }
  0xfe   : > { %v605_v27 = vadd.f32 %v604_v56, %v1232_v53  ;;  %v674_v59 = vadd.f32 %v673_v57, %v643_v24  ;;  %v649_v53 = vmul.f32 %v1210_v36, %v1210_v36 }
 0x100   : > { %v675_v31 = vadd.f32 %v674_v59, %v644_v58  ;;  %v606_v60 = vadd.f32 %v605_v27, %v523_v4 }
 0x102   : > { %v676_v63 = vadd.f32 %v675_v31, %v645_v61  ;;  %v607_v0 = vadd.f32 %v606_v60, %v526_v20 }
 0x104   : > { %v608_v1 = vadd.f32 %v607_v0, %v1184_v28  ;;  %v677_v2 = vadd.f32 %v676_v63, %v646_v62  ;;  %v651_v28 = vmul.f32 %v1234_v54, %v1234_v54 }
 0x106   : > { %v609_v3 = vadd.f32 %v608_v1, %v1197_v32  ;;  %v678_v6 = vadd.f32 %v677_v2, %v647_v35 }
 0x108   : > { %v610_v4 = vadd.f32 %v609_v3, %v1210_v36  ;;  %v679_v7 = vadd.f32 %v678_v6, %v648_v39 }
 0x10a   : > { %v680_v9 = vadd.f32 %v679_v7, %v649_v53  ;;  %v611_v11 = vadd.f32 %v610_v4, %v1223_v40 }
 0x10c   : > { %v612_v12 = vadd.f32 %v611_v11, %v1234_v54  ;;  %v681_v13 = vadd.f32 %v680_v9, %v650_v8 }
 0x10e   : > { %v613_v32 = vadd.f32 %v612_v12, %v1242_v5  ;;  %v682_v36 = vadd.f32 %v681_v13, %v651_v28 }
 0x110   : > { %v683_v15 = vadd.f32 %v682_v36, %v652_v14  ;;  %v614_v16 = vadd.f32 %v613_v32, %v547_v10 }
 0x112   : > { %v684_v20 = vadd.f32 %v683_v15, %v653_v18  ;;  %v615_v17 = vadd.f32 %v614_v16, %v550_v43 }
 0x114   : > { %v616_v40 = vrot.slane %v615_v17, 4  ;;  %v685_v21 = vadd.f32 %v684_v20, %v654_v19 }
 0x116   : > { %v617_v22 = vadd.f32 %v616_v40, %v615_v17  ;;  %v686_v23 = vrot.slane %v685_v21, 4 }
 0x118   : > { %v618_v25 = vrot.slane %v617_v22, 2  ;;  %v687_v54 = vadd.f32 %v686_v23, %v685_v21 }
 0x11a   : > { %v619_v26 = vadd.f32 %v618_v25, %v617_v22  ;;  %v688_v29 = vrot.slane %v687_v54, 2 }
 0x11c   : > { %v620_v33 = vrot.slane %v619_v26, 1  ;;  %v689_v30 = vadd.f32 %v688_v29, %v687_v54 }
 0x11e   : > { %v621_v5 = vadd.f32 %v620_v33, %v619_v26  ;;  %v690_v10 = vrot.slane %v689_v30, 1 }
 0x120   : > { %622 = vst [vmem:[%s287_s26] sm:$0x1] %v621_v5  ;;  %v691_v37 = vadd.f32 %v690_v10, %v689_v30 }
 0x122   : > { %692 = vst [vmem:[%s287_s26 + $0x1] sm:$0x1] %v691_v37 }
 0x123 PF: > { %s16_s20 = sadd.s32 1, %s940_s20   ;;  %s1324_s18 = smov %s936_s19 }
 0x124   : > { %p13_p5 = scmp.ge.s32.totalorder %s16_s20, 4   ;;  %s1325_s19 = smov %s1327_s21 }
 0x126   :  { %15 = sbr.rel (!%p13_p5) target bundleno = 2 (0x2), region = 78 }

// kernel: dws_conv_block_forward.5
= control target key start
LH: loop header
LB: loop body
LE: loop exit
PB: predicated region body
PF: predicated region fallthrough
CT: control target
= control target key end

     0   :  { %s562_s12 = smov 0   ;;  %s564_s13 = smov 0   ;;  %s771_s0 = inlined_call_operand.vmem [shape: f32[2,16,16,128], index: 0, kind: input, shape index: {}, may-alias: {0,3}]   ;;  %s772_s1 = inlined_call_operand.vmem [shape: f32[1,128], index: 1, kind: input, shape index: {}]   ;;  %s773_s2 = inlined_call_operand.vmem [shape: f32[1,128], index: 2, kind: input, shape index: {}]   ;;  %s774_s3 = inlined_call_operand.vmem [shape: f32[2,16,16,128], index: 3, kind: output, shape index: {}, may-alias: {0,3}]  }
   0x1   :  { %s566_s14 = smov 0  }
   0x2 LB: > { %s25_s15 = sadd.s32 1, %s536_s13  ;;  %p483_p0 = scmp.ge.s32.totalorder %s540_s14, 1  ;;  %s540_s14 = sphi %s566_s14, %s13_s14   ;;  %s536_s13 = sphi %s564_s13, %s776_s13   ;;  %s532_s12 = sphi %s562_s12, %s775_s12  }
   0x3   : > { %p27_p1 = scmp.ge.s32.totalorder %s25_s15, 2  ;;  %p159_p2 = scmp.lt.s32.totalorder %s540_s14, 3 }
   0x5   : > { %s778_s15 = smov (%p27_p1, %s25_s15), 0  ;;  %p160_p3 = pnand %p483_p0, %p159_p2 }
   0x6   : > { %p194_p4 = scmp.lt.s32.totalorder (!%p160_p3), %s532_s12, 1 }
   0x7   : > { %163 = sbr.rel (%p160_p3) target bundleno = 58 (0x3a), region = 32 }
   0xc   : > { %s780_s12 = smov (!%p194_p4, %s532_s12), 1  ;;  %v585_v0 = vld [vmem:[%s772_s1] ss:$0 sm:$0xff] }
   0xd   : > { %s490_s18 = sshll.u32 %s780_s12, 8  ;;  %v598_v1 = vld [vmem:[%s773_s2] ss:$0 sm:$0xff] }
   0xe   : > { %s593_s21 = scalar_lea.vmem %s771_s0, %s490_s18  ;;  %s633_s26 = scalar_lea.vmem %s774_s3, %s490_s18 }
   0xf   : > { %v215_v2 = vld [vmem:[%s593_s21] sm:$0xff]  ;;  %v216_v3 = vld [vmem:[%s593_s21 + $0x8] sm:$0xff]  ;;  %v217_v4 = vld [vmem:[%s593_s21 + $0x10] sm:$0xff] }
  0x10   : > { %v218_v5 = vld [vmem:[%s593_s21 + $0x18] sm:$0xff]  ;;  %v219_v6 = vld [vmem:[%s593_s21 + $0x20] sm:$0xff]  ;;  %v220_v7 = vld [vmem:[%s593_s21 + $0x28] sm:$0xff]  ;;  %v251_v8 = vmul.f32 %v585_v0, %v215_v2  ;;  %v252_v9 = vmul.f32 %v585_v0, %v216_v3  ;;  %v253_v10 = vmul.f32 %v585_v0, %v217_v4 }
  0x11   : > { %v221_v11 = vld [vmem:[%s593_s21 + $0x30] sm:$0xff]  ;;  %v254_v12 = vmul.f32 %v585_v0, %v218_v5  ;;  %v222_v13 = vld [vmem:[%s593_s21 + $0x38] sm:$0xff]  ;;  %v255_v15 = vmul.f32 %v585_v0, %v219_v6  ;;  %v223_v16 = vld [vmem:[%s593_s21 + $0x40] sm:$0xff]  ;;  %v256_v18 = vmul.f32 %v585_v0, %v220_v7 }
  0x12   : > { %v287_v14 = vadd.f32 %v598_v1, %v251_v8  ;;  %v288_v17 = vadd.f32 %v598_v1, %v252_v9  ;;  %v224_v19 = vld [vmem:[%s593_s21 + $0x48] sm:$0xff]  ;;  %v289_v20 = vadd.f32 %v598_v1, %v253_v10  ;;  %v257_v21 = vmul.f32 %v585_v0, %v221_v11  ;;  %v225_v22 = vld [vmem:[%s593_s21 + $0x50] sm:$0xff]  ;;  %v226_v25 = vld [vmem:[%s593_s21 + $0x58] sm:$0xff] }
  0x13   : > { %v290_v23 = vadd.f32 %v598_v1, %v254_v12  ;;  %v258_v24 = vmul.f32 %v585_v0, %v222_v13  ;;  %v227_v26 = vld [vmem:[%s593_s21 + $0x60] sm:$0xff]  ;;  %v228_v27 = vld [vmem:[%s593_s21 + $0x68] sm:$0xff]  ;;  %v291_v29 = vadd.f32 %v598_v1, %v255_v15  ;;  %v259_v30 = vmul.f32 %v585_v0, %v223_v16  ;;  %v229_v31 = vld [vmem:[%s593_s21 + $0x70] sm:$0xff] }
  0x14   : > { %v319_v28 = vmax.f32 %v287_v14, 0.0  ;;  %v230_v32 = vld [vmem:[%s593_s21 + $0x78] sm:$0xff]  ;;  %v231_v33 = vld [vmem:[%s593_s21 + $0x80] sm:$0xff]  ;;  %v232_v34 = vld [vmem:[%s593_s21 + $0x88] sm:$0xff]  ;;  %v320_v43 = vmax.f32 %v288_v17, 0.0  ;;  %v292_v44 = vadd.f32 %v598_v1, %v256_v18  ;;  %v260_v45 = vmul.f32 %v585_v0, %v224_v19 }
  0x15   : > { %v233_v35 = vld [vmem:[%s593_s21 + $0x90] sm:$0xff]  ;;  %v234_v36 = vld [vmem:[%s593_s21 + $0x98] sm:$0xff]  ;;  %v235_v37 = vld [vmem:[%s593_s21 + $0xa0] sm:$0xff]  ;;  %v321_v49 = vmax.f32 %v289_v20, 0.0  ;;  %v293_v50 = vadd.f32 %v598_v1, %v257_v21  ;;  %v261_v51 = vmul.f32 %v585_v0, %v225_v22  ;;  %v322_v55 = vmax.f32 %v290_v23, 0.0 }
  0x16   : > { %v236_v38 = vld [vmem:[%s593_s21 + $0xa8] sm:$0xff]  ;;  %v237_v39 = vld [vmem:[%s593_s21 + $0xb0] sm:$0xff]  ;;  %v645_v40 = vld [vmem:[%s593_s21 + $0xb8] sm:$0xff]  ;;  %v294_v56 = vadd.f32 %v598_v1, %v258_v24  ;;  %v262_v57 = vmul.f32 %v585_v0, %v226_v25  ;;  %v323_v58 = vmax.f32 %v291_v29, 0.0  ;;  %v295_v59 = vadd.f32 %v598_v1, %v259_v30 }
  0x17   : > { %v648_v41 = vld [vmem:[%s593_s21 + $0xc0] sm:$0xff]  ;;  %v651_v42 = vld [vmem:[%s593_s21 + $0xc8] sm:$0xff]  ;;  %v656_v46 = vld [vmem:[%s593_s21 + $0xd0] sm:$0xff]  ;;  %v263_v60 = vmul.f32 %v585_v0, %v227_v26  ;;  %v324_v61 = vmax.f32 %v292_v44, 0.0  ;;  %v296_v62 = vadd.f32 %v598_v1, %v260_v45  ;;  %v264_v63 = vmul.f32 %v585_v0, %v228_v27 }
  0x18   : > { %v659_v47 = vld [vmem:[%s593_s21 + $0xd8] sm:$0xff]  ;;  %v662_v48 = vld [vmem:[%s593_s21 + $0xe0] sm:$0xff]  ;;  %v667_v52 = vld [vmem:[%s593_s21 + $0xe8] sm:$0xff]  ;;  %v325_v2 = vmax.f32 %v293_v50, 0.0  ;;  %v297_v3 = vadd.f32 %v598_v1, %v261_v51  ;;  %v265_v4 = vmul.f32 %v585_v0, %v229_v31  ;;  %v326_v5 = vmax.f32 %v294_v56, 0.0 }
  0x19   : > { %v670_v53 = vld [vmem:[%s593_s21 + $0xf0] sm:$0xff]  ;;  %v673_v54 = vld [vmem:[%s593_s21 + $0xf8] sm:$0xff]  ;;  %v298_v6 = vadd.f32 %v598_v1, %v262_v57  ;;  %v266_v7 = vmul.f32 %v585_v0, %v230_v32  ;;  %v327_v8 = vmax.f32 %v295_v59, 0.0  ;;  %v299_v9 = vadd.f32 %v598_v1, %v263_v60 }
  0x1a   : > { %351 = vst [vmem:[%s633_s26] sm:$0xff] %v319_v28  ;;  %v267_v10 = vmul.f32 %v585_v0, %v231_v33  ;;  %v328_v11 = vmax.f32 %v296_v62, 0.0  ;;  %v300_v12 = vadd.f32 %v598_v1, %v264_v63  ;;  %v268_v13 = vmul.f32 %v585_v0, %v232_v34 }
  0x1b   : > { %352 = vst [vmem:[%s633_s26 + $0x8] sm:$0xff] %v320_v43  ;;  %v329_v14 = vmax.f32 %v297_v3, 0.0  ;;  %v301_v15 = vadd.f32 %v598_v1, %v265_v4  ;;  %v269_v16 = vmul.f32 %v585_v0, %v233_v35  ;;  %v330_v17 = vmax.f32 %v298_v6, 0.0 }
  0x1c   : > { %353 = vst [vmem:[%s633_s26 + $0x10] sm:$0xff] %v321_v49  ;;  %v302_v18 = vadd.f32 %v598_v1, %v266_v7  ;;  %v270_v19 = vmul.f32 %v585_v0, %v234_v36  ;;  %v331_v20 = vmax.f32 %v299_v9, 0.0  ;;  %v303_v21 = vadd.f32 %v598_v1, %v267_v10 }
  0x1d   : > { %354 = vst [vmem:[%s633_s26 + $0x18] sm:$0xff] %v322_v55  ;;  %v271_v22 = vmul.f32 %v585_v0, %v235_v37  ;;  %v332_v23 = vmax.f32 %v300_v12, 0.0  ;;  %v304_v24 = vadd.f32 %v598_v1, %v268_v13  ;;  %v272_v25 = vmul.f32 %v585_v0, %v236_v38 }
  0x1e   : > { %355 = vst [vmem:[%s633_s26 + $0x20] sm:$0xff] %v323_v58  ;;  %v333_v26 = vmax.f32 %v301_v15, 0.0  ;;  %v305_v27 = vadd.f32 %v598_v1, %v269_v16  ;;  %v273_v28 = vmul.f32 %v585_v0, %v237_v39  ;;  %v334_v29 = vmax.f32 %v302_v18, 0.0 }
  0x1f   : > { %356 = vst [vmem:[%s633_s26 + $0x28] sm:$0xff] %v324_v61  ;;  %v306_v30 = vadd.f32 %v598_v1, %v270_v19  ;;  %v274_v31 = vmul.f32 %v585_v0, %v645_v40  ;;  %v335_v32 = vmax.f32 %v303_v21, 0.0  ;;  %v307_v33 = vadd.f32 %v598_v1, %v271_v22 }
  0x20   : > { %357 = vst [vmem:[%s633_s26 + $0x30] sm:$0xff] %v325_v2  ;;  %v275_v34 = vmul.f32 %v585_v0, %v648_v41  ;;  %v336_v35 = vmax.f32 %v304_v24, 0.0  ;;  %v308_v36 = vadd.f32 %v598_v1, %v272_v25  ;;  %v276_v37 = vmul.f32 %v585_v0, %v651_v42 }
  0x21   : > { %358 = vst [vmem:[%s633_s26 + $0x38] sm:$0xff] %v326_v5  ;;  %v337_v38 = vmax.f32 %v305_v27, 0.0  ;;  %v309_v39 = vadd.f32 %v598_v1, %v273_v28  ;;  %v277_v40 = vmul.f32 %v585_v0, %v656_v46  ;;  %v338_v43 = vmax.f32 %v306_v30, 0.0 }
  0x22   : > { %359 = vst [vmem:[%s633_s26 + $0x40] sm:$0xff] %v327_v8  ;;  %v310_v41 = vadd.f32 %v598_v1, %v274_v31  ;;  %v278_v44 = vmul.f32 %v585_v0, %v659_v47  ;;  %v339_v45 = vmax.f32 %v307_v33, 0.0  ;;  %v311_v42 = vadd.f32 %v598_v1, %v275_v34 }
  0x23   : > { %360 = vst [vmem:[%s633_s26 + $0x48] sm:$0xff] %v328_v11  ;;  %v279_v49 = vmul.f32 %v585_v0, %v662_v48  ;;  %v340_v50 = vmax.f32 %v308_v36, 0.0  ;;  %v312_v46 = vadd.f32 %v598_v1, %v276_v37  ;;  %v280_v51 = vmul.f32 %v585_v0, %v667_v52 }
  0x24   : > { %361 = vst [vmem:[%s633_s26 + $0x50] sm:$0xff] %v329_v14  ;;  %v341_v55 = vmax.f32 %v309_v39, 0.0  ;;  %v313_v47 = vadd.f32 %v598_v1, %v277_v40  ;;  %v281_v56 = vmul.f32 %v585_v0, %v670_v53  ;;  %v342_v48 = vmax.f32 %v310_v41, 0.0 }
  0x25   : > { %362 = vst [vmem:[%s633_s26 + $0x58] sm:$0xff] %v330_v17  ;;  %v314_v57 = vadd.f32 %v598_v1, %v278_v44  ;;  %v282_v58 = vmul.f32 %v585_v0, %v673_v54  ;;  %v343_v52 = vmax.f32 %v311_v42, 0.0  ;;  %v315_v59 = vadd.f32 %v598_v1, %v279_v49 }
  0x26   : > { %363 = vst [vmem:[%s633_s26 + $0x60] sm:$0xff] %v331_v20  ;;  %v344_v60 = vmax.f32 %v312_v46, 0.0  ;;  %v316_v53 = vadd.f32 %v598_v1, %v280_v51  ;;  %v345_v61 = vmax.f32 %v313_v47, 0.0  ;;  %v317_v62 = vadd.f32 %v598_v1, %v281_v56 }
  0x27   : > { %364 = vst [vmem:[%s633_s26 + $0x68] sm:$0xff] %v332_v23  ;;  %v346_v0 = vmax.f32 %v314_v57, 0.0  ;;  %v318_v54 = vadd.f32 %v598_v1, %v282_v58  ;;  %v347_v63 = vmax.f32 %v315_v59, 0.0 }
  0x28   : > { %365 = vst [vmem:[%s633_s26 + $0x70] sm:$0xff] %v333_v26  ;;  %v348_v2 = vmax.f32 %v316_v53, 0.0  ;;  %v349_v3 = vmax.f32 %v317_v62, 0.0 }
  0x29   : > { %366 = vst [vmem:[%s633_s26 + $0x78] sm:$0xff] %v334_v29  ;;  %v350_v4 = vmax.f32 %v318_v54, 0.0 }
  0x2a   : > { %367 = vst [vmem:[%s633_s26 + $0x80] sm:$0xff] %v335_v32 }
  0x2b   : > { %368 = vst [vmem:[%s633_s26 + $0x88] sm:$0xff] %v336_v35 }
  0x2c   : > { %369 = vst [vmem:[%s633_s26 + $0x90] sm:$0xff] %v337_v38 }
  0x2d   : > { %370 = vst [vmem:[%s633_s26 + $0x98] sm:$0xff] %v338_v43 }
  0x2e   : > { %371 = vst [vmem:[%s633_s26 + $0xa0] sm:$0xff] %v339_v45 }
  0x2f   : > { %372 = vst [vmem:[%s633_s26 + $0xa8] sm:$0xff] %v340_v50 }
  0x30   : > { %373 = vst [vmem:[%s633_s26 + $0xb0] sm:$0xff] %v341_v55 }
  0x31   : > { %374 = vst [vmem:[%s633_s26 + $0xb8] sm:$0xff] %v342_v48 }
  0x32   : > { %375 = vst [vmem:[%s633_s26 + $0xc0] sm:$0xff] %v343_v52 }
  0x33   : > { %376 = vst [vmem:[%s633_s26 + $0xc8] sm:$0xff] %v344_v60 }
  0x34   : > { %377 = vst [vmem:[%s633_s26 + $0xd0] sm:$0xff] %v345_v61 }
  0x35   : > { %378 = vst [vmem:[%s633_s26 + $0xd8] sm:$0xff] %v346_v0 }
  0x36   : > { %379 = vst [vmem:[%s633_s26 + $0xe0] sm:$0xff] %v347_v63 }
  0x37   : > { %380 = vst [vmem:[%s633_s26 + $0xe8] sm:$0xff] %v348_v2 }
  0x38   : > { %381 = vst [vmem:[%s633_s26 + $0xf0] sm:$0xff] %v349_v3 }
  0x39   : > { %382 = vst [vmem:[%s633_s26 + $0xf8] sm:$0xff] %v350_v4 }
  0x3a PF: > { %s13_s14 = sadd.s32 1, %s540_s14   ;;  %s775_s12 = smov %s536_s13 }
  0x3b   : > { %p10_p5 = scmp.ge.s32.totalorder %s13_s14, 4   ;;  %s776_s13 = smov %s778_s15 }
  0x3d   :  { %12 = sbr.rel (!%p10_p5) target bundleno = 2 (0x2), region = 62 }

// kernel: dws_conv_block_forward.3
= control target key start
LH: loop header
LB: loop body
LE: loop exit
PB: predicated region body
PF: predicated region fallthrough
CT: control target
= control target key end

     0   :  { %s2289_s12 = smov 0   ;;  %s2291_s13 = smov 0   ;;  %s3652_s0 = inlined_call_operand.vmem [shape: f32[2,1,18,18,128], index: 0, kind: input, shape index: {}]   ;;  %s3653_s1 = inlined_call_operand.vmem [shape: f32[9,128], index: 1, kind: input, shape index: {}]   ;;  %s3654_s2 = inlined_call_operand.vmem [shape: f32[2,16,16,128], index: 2, kind: output, shape index: {0}]   ;;  %s3655_s3 = inlined_call_operand.vmem [shape: f32[2,1,2,128], index: 3, kind: output, shape index: {1}]  }
   0x1   :  { %s2293_s14 = smov 0  }
   0x2 LB: > { %s26_s15 = sadd.s32 1, %s2263_s13  ;;  %p2209_p0 = scmp.ge.s32.totalorder %s2267_s14, 1  ;;  %s2267_s14 = sphi %s2293_s14, %s14_s14   ;;  %s2263_s13 = sphi %s2291_s13, %s3657_s13   ;;  %s2259_s12 = sphi %s2289_s12, %s3656_s12  }
   0x3   : > { %p28_p1 = scmp.ge.s32.totalorder %s26_s15, 2  ;;  %p162_p2 = scmp.lt.s32.totalorder %s2267_s14, 3 }
   0x5   : > { %s3659_s15 = smov (%p28_p1, %s26_s15), 0  ;;  %p163_p3 = pnand %p2209_p0, %p162_p2 }
   0x6   : > { %p202_p4 = scmp.lt.s32.totalorder (!%p163_p3), %s2259_s12, 1 }
   0x7   : > { %166 = sbr.rel (%p163_p3) target bundleno = 345 (0x159), region = 28 }
   0xc   : > { %v283_v0 = vld [vmem:[%s3653_s1] sm:$0xff]  ;;  %s3661_s12 = smov (!%p202_p4, %s2259_s12), 1  ;;  %vm447_vm0 = vcmask 1046528   ;;  %vm689_vm1 = vcmask 1045504   ;;  %v2356_v24 = vld [vmem:[%s3653_s1 + $0x8] ss:$0 sm:$0xff] }
   0xd   : > { %s2217_s18 = smul.u32 432, %s3661_s12  ;;  %v2313_v1 = vperm.slane %v283_v0, 1  ;;  %v2315_v2 = vperm.slane %v283_v0, 2  ;;  %v2317_v3 = vperm.slane %v283_v0, 0  ;;  %v2319_v4 = vperm.slane %v283_v0, 4  ;;  %s2216_s24 = sshll.u32 %s3661_s12, 8 }
   0xe   : > { %v2326_v5 = vperm.slane %v283_v0, 5  ;;  %v2330_v8 = vperm.slane %v283_v0, 3  ;;  %v2332_v9 = vperm.slane %v283_v0, 6  ;;  %v2343_v15 = vperm.slane %v283_v0, 7  ;;  %s2433_s27 = scalar_lea.vmem %s3654_s2, %s2216_s24  ;;  %s2213_s5 = sshll.u32 %s3661_s12, 1 }
   0xf   : > { %s2324_s21 = scalar_lea.vmem %s3652_s0, %s2217_s18  ;;  %s228_s8 = scalar_lea.vmem %s3655_s3, %s2213_s5 }
  0x10   : > { %v229_v6 = vld [vmem:[%s2324_s21] sm:$0xff]  ;;  %v230_v7 = vld [vmem:[%s2324_s21 + $0x8] sm:$0xff]  ;;  %v2335_v10 = vld [vmem:[%s2324_s21 + $0x18] sm:$0xff] }
  0x11   : > { %v2338_v11 = vld [vmem:[%s2324_s21 + $0x20] sm:$0xff]  ;;  %v351_v12 = vmul.f32 %v2313_v1, %v229_v6  ;;  %v352_v13 = vmul.f32 %v2313_v1, %v230_v7  ;;  %v593_v14 = vmul.f32 %v2315_v2, %v229_v6  ;;  %v286_v16 = vmul.f32 %v2317_v3, %v229_v6  ;;  %v2359_v25 = vld [vmem:[%s2324_s21 + $0x30] sm:$0xff]  ;;  %v2370_v35 = vld [vmem:[%s2324_s21 + $0x38] sm:$0xff] }
  0x12   : > { %v594_v17 = vmul.f32 %v2315_v2, %v230_v7  ;;  %v900_v18 = vmul.f32 %v2319_v4, %v2335_v10  ;;  %v901_v19 = vmul.f32 %v2319_v4, %v2338_v11  ;;  %v1141_v23 = vmul.f32 %v2326_v5, %v2335_v10  ;;  %v231_v34 = vld [vmem:[%s2324_s21 + $0x10] sm:$0x3]  ;;  %v2388_v51 = vld [vmem:[%s2324_s21 + $0x28] sm:$0x3]  ;;  %v2401_v63 = vld [vmem:[%s2324_s21 + $0x40] sm:$0x3] }
  0x13   : > { %v448_v20 = vrot.slane %v351_v12, 1  ;;  %v449_v21 = vrot.slane %v352_v13, 1  ;;  %v690_v22 = vrot.slane %v593_v14, 2  ;;  %v1142_v29 = vmul.f32 %v2326_v5, %v2338_v11 }
  0x14   : > { %v691_v26 = vrot.slane %v594_v17, 2  ;;  %v996_v27 = vrot.slane %v900_v18, 1  ;;  %v997_v28 = vrot.slane %v901_v19, 1  ;;  %v835_v31 = vmul.f32 %v2330_v8, %v2335_v10 }
  0x15   : > { %v450_v30 = vsel %vm447_vm0, %v448_v20, %v449_v21  ;;  %v1237_v32 = vrot.slane %v1141_v23, 2  ;;  %v1447_v33 = vmul.f32 %v2343_v15, %v2359_v25  ;;  %v1238_v38 = vrot.slane %v1142_v29, 2 }
  0x16   : > { %v560_v36 = vadd.f32 %v450_v30, %v286_v16  ;;  %v692_v37 = vsel %vm689_vm1, %v690_v22, %v691_v26  ;;  %v1382_v39 = vmul.f32 %v2332_v9, %v2359_v25  ;;  %v1448_v40 = vmul.f32 %v2343_v15, %v2370_v35 }
  0x17   : > { %v1543_v41 = vrot.slane %v1447_v33, 1  ;;  %v1688_v42 = vmul.f32 %v2356_v24, %v2359_v25  ;;  %v2381_v43 = vmul.f32 %v2356_v24, %v2370_v35  ;;  %v998_v45 = vsel %vm447_vm0, %v996_v27, %v997_v28 }
  0x18   : > { %v802_v44 = vadd.f32 %v692_v37, %v560_v36  ;;  %v287_v46 = vmul.f32 %v2317_v3, %v230_v7  ;;  %v353_v47 = vmul.f32 %v2313_v1, %v231_v34  ;;  %v1544_v48 = vrot.slane %v1448_v40, 1 }
  0x19   : > { %v1784_v49 = vrot.slane %v1688_v42, 2  ;;  %v1785_v50 = vrot.slane %v2381_v43, 2  ;;  %v595_v52 = vmul.f32 %v2315_v2, %v231_v34  ;;  %v1239_v54 = vsel %vm689_vm1, %v1237_v32, %v1238_v38 }
  0x1a   : > { %v867_v53 = vadd.f32 %v835_v31, %v802_v44  ;;  %v451_v55 = vrot.slane %v353_v47, 1  ;;  %v902_v56 = vmul.f32 %v2319_v4, %v2388_v51  ;;  %v1545_v57 = vsel %vm447_vm0, %v1543_v41, %v1544_v48 }
  0x1b   : > { %v693_v58 = vrot.slane %v595_v52, 2  ;;  %v836_v59 = vmul.f32 %v2330_v8, %v2338_v11  ;;  %v1143_v60 = vmul.f32 %v2326_v5, %v2388_v51  ;;  %v1786_v62 = vsel %vm689_vm1, %v1784_v49, %v1785_v50 }
  0x1c   : > { %v1108_v61 = vadd.f32 %v998_v45, %v867_v53  ;;  %v452_v0 = vsel %vm447_vm0, %v449_v21, %v451_v55  ;;  %v999_v6 = vrot.slane %v902_v56, 1  ;;  %v1449_v14 = vmul.f32 %v2343_v15, %v2401_v63  ;;  %v2449_v53 = vld [vmem:[%s2324_s21 + $0x48] sm:$0xff] }
  0x1d   : > { %v561_v7 = vadd.f32 %v452_v0, %v287_v46  ;;  %v694_v12 = vsel %vm689_vm1, %v691_v26, %v693_v58  ;;  %v1240_v13 = vrot.slane %v1143_v60, 2  ;;  %v1383_v18 = vmul.f32 %v2332_v9, %v2370_v35 }
  0x1e   : > { %v1349_v16 = vadd.f32 %v1239_v54, %v1108_v61  ;;  %v1000_v17 = vsel %vm447_vm0, %v997_v28, %v999_v6  ;;  %v1690_v19 = vmul.f32 %v2356_v24, %v2401_v63  ;;  %v1546_v22 = vrot.slane %v1449_v14, 1 }
  0x1f   : > { %v803_v20 = vadd.f32 %v694_v12, %v561_v7  ;;  %v288_v21 = vmul.f32 %v2317_v3, %v2335_v10  ;;  %v354_v23 = vmul.f32 %v2313_v1, %v2335_v10  ;;  %v1241_v27 = vsel %vm689_vm1, %v1238_v38, %v1240_v13 }
  0x20   : > { %v1414_v26 = vadd.f32 %v1382_v39, %v1349_v16  ;;  %v2420_v28 = vmul.f32 %v2313_v1, %v2338_v11  ;;  %v596_v29 = vmul.f32 %v2315_v2, %v2335_v10  ;;  %v1787_v31 = vrot.slane %v1690_v19, 2 }
  0x21   : > { %v868_v30 = vadd.f32 %v836_v59, %v803_v20  ;;  %v453_v32 = vrot.slane %v354_v23, 1  ;;  %v2426_v33 = vmul.f32 %v2315_v2, %v2338_v11  ;;  %v1547_v36 = vsel %vm447_vm0, %v1544_v48, %v1546_v22  ;;  %v2454_v59 = vld [vmem:[%s2324_s21 + $0x50] sm:$0xff] }
  0x22   : > { %v1655_v34 = vadd.f32 %v1545_v57, %v1414_v26  ;;  %v454_v37 = vrot.slane %v2420_v28, 1  ;;  %v695_v38 = vrot.slane %v596_v29, 2  ;;  %v837_v40 = vmul.f32 %v2330_v8, %v2359_v25 }
  0x23   : > { %v1109_v10 = vadd.f32 %v1000_v17, %v868_v30  ;;  %v696_v39 = vrot.slane %v2426_v33, 2  ;;  %v903_v41 = vmul.f32 %v2319_v4, %v2359_v25  ;;  %v904_v44 = vmul.f32 %v2319_v4, %v2370_v35 }
  0x24   : > { %v1896_v42 = vadd.f32 %v1786_v62, %v1655_v34  ;;  %v455_v43 = vsel %vm447_vm0, %v453_v32, %v454_v37  ;;  %v1144_v45 = vmul.f32 %v2326_v5, %v2359_v25  ;;  %v1788_v52 = vsel %vm689_vm1, %v1785_v50, %v1787_v31  ;;  %v2484_v34 = vld [vmem:[%s2324_s21 + $0x58] sm:$0x3] }
  0x25   : > { %v1350_v46 = vadd.f32 %v1241_v27, %v1109_v10  ;;  %v562_v47 = vadd.f32 %v455_v43, %v288_v21  ;;  %v697_v48 = vsel %vm689_vm1, %v695_v38, %v696_v39  ;;  %v1001_v49 = vrot.slane %v903_v41, 1 }
  0x26   : > { %1928 = vst [vmem:[%s2433_s27] sm:$0xff] %v1896_v42  ;;  %v1002_v54 = vrot.slane %v904_v44, 1  ;;  %v1145_v55 = vmul.f32 %v2326_v5, %v2370_v35  ;;  %v1242_v56 = vrot.slane %v1144_v45, 2  ;;  %v1997_v57 = vmul.f32 %v1896_v42, %v1896_v42 }
  0x27   : > { %v1415_v58 = vadd.f32 %v1383_v18, %v1350_v46  ;;  %v804_v60 = vadd.f32 %v697_v48, %v562_v47  ;;  %v1450_v61 = vmul.f32 %v2343_v15, %v2449_v53  ;;  %v1451_v50 = vmul.f32 %v2343_v15, %v2454_v59 }
  0x28   : > { %v1003_v62 = vsel %vm447_vm0, %v1001_v49, %v1002_v54  ;;  %v1243_v0 = vrot.slane %v1145_v55, 2  ;;  %v1691_v6 = vmul.f32 %v2356_v24, %v2449_v53  ;;  %v2465_v14 = vmul.f32 %v2356_v24, %v2454_v59 }
  0x29   : > { %v1656_v7 = vadd.f32 %v1547_v36, %v1415_v58  ;;  %v869_v12 = vadd.f32 %v837_v40, %v804_v60  ;;  %v1548_v13 = vrot.slane %v1450_v61, 1  ;;  %v1384_v17 = vmul.f32 %v2332_v9, %v2449_v53 }
  0x2a   : > { %v1244_v16 = vsel %vm689_vm1, %v1242_v56, %v1243_v0  ;;  %v1549_v18 = vrot.slane %v1451_v50, 1  ;;  %v1789_v19 = vrot.slane %v1691_v6, 2  ;;  %v1790_v21 = vrot.slane %v2465_v14, 2 }
  0x2b   : > { %v1897_v20 = vadd.f32 %v1788_v52, %v1656_v7  ;;  %v1110_v22 = vadd.f32 %v1003_v62, %v869_v12  ;;  %v356_v23 = vmul.f32 %v2313_v1, %v2388_v51  ;;  %v289_v27 = vmul.f32 %v2317_v3, %v2338_v11 }
  0x2c   : > { %v1550_v26 = vsel %vm447_vm0, %v1548_v13, %v1549_v18  ;;  %v598_v28 = vmul.f32 %v2315_v2, %v2388_v51  ;;  %v905_v29 = vmul.f32 %v2319_v4, %v2401_v63  ;;  %v838_v33 = vmul.f32 %v2330_v8, %v2370_v35 }
  0x2d   : > { %1929 = vst [vmem:[%s2433_s27 + $0x8] sm:$0xff] %v1897_v20  ;;  %v1960_v30 = vadd.f32 %v1897_v20, %v1896_v42  ;;  %v1998_v31 = vmul.f32 %v1897_v20, %v1897_v20  ;;  %v1351_v32 = vadd.f32 %v1244_v16, %v1110_v22  ;;  %v456_v36 = vrot.slane %v356_v23, 1 }
  0x2e   : > { %v698_v38 = vrot.slane %v598_v28, 2  ;;  %v1004_v10 = vrot.slane %v905_v29, 1  ;;  %v1146_v11 = vmul.f32 %v2326_v5, %v2401_v63  ;;  %v1791_v41 = vsel %vm689_vm1, %v1789_v19, %v1790_v21 }
  0x2f   : > { %v2029_v40 = vadd.f32 %v1998_v31, %v1997_v57  ;;  %v1416_v51 = vadd.f32 %v1384_v17, %v1351_v32  ;;  %v1452_v42 = vmul.f32 %v2343_v15, %v2484_v34  ;;  %v457_v43 = vsel %vm447_vm0, %v454_v37, %v456_v36  ;;  %v2528_v31 = vld [vmem:[%s2324_s21 + $0x60] sm:$0xff]  ;;  %v2531_v36 = vld [vmem:[%s2324_s21 + $0x68] sm:$0xff] }
  0x30   : > { %v699_v44 = vsel %vm689_vm1, %v696_v39, %v698_v38  ;;  %v1245_v45 = vrot.slane %v1146_v11, 2  ;;  %v1385_v46 = vmul.f32 %v2332_v9, %v2454_v59  ;;  %v563_v48 = vadd.f32 %v457_v43, %v289_v27 }
  0x31   : > { %v1657_v47 = vadd.f32 %v1550_v26, %v1416_v51  ;;  %v1551_v49 = vrot.slane %v1452_v42, 1  ;;  %v1693_v52 = vmul.f32 %v2356_v24, %v2484_v34  ;;  %v1005_v55 = vsel %vm447_vm0, %v1002_v54, %v1004_v10 }
  0x32   : > { %v1246_v56 = vsel %vm689_vm1, %v1243_v0, %v1245_v45  ;;  %v357_v37 = vmul.f32 %v2313_v1, %v2359_v25  ;;  %v2503_v39 = vmul.f32 %v2313_v1, %v2370_v35  ;;  %v805_v58 = vadd.f32 %v699_v44, %v563_v48 }
  0x33   : > { %v1898_v57 = vadd.f32 %v1791_v41, %v1657_v47  ;;  %v1552_v60 = vsel %vm447_vm0, %v1549_v18, %v1551_v49  ;;  %v290_v61 = vmul.f32 %v2317_v3, %v2359_v25  ;;  %v599_v54 = vmul.f32 %v2315_v2, %v2359_v25 }
  0x34   : > { %v458_v62 = vrot.slane %v357_v37, 1  ;;  %v459_v50 = vrot.slane %v2503_v39, 1  ;;  %v600_v0 = vmul.f32 %v2315_v2, %v2370_v35  ;;  %v870_v12 = vadd.f32 %v838_v33, %v805_v58 }
  0x35   : > { %1930 = vst [vmem:[%s2433_s27 + $0x10] sm:$0xff] %v1898_v57  ;;  %v1961_v6 = vadd.f32 %v1960_v30, %v1898_v57  ;;  %v1999_v7 = vmul.f32 %v1898_v57, %v1898_v57  ;;  %v1792_v13 = vrot.slane %v1693_v52, 2  ;;  %v700_v16 = vrot.slane %v599_v54, 2 }
  0x36   : > { %v460_v14 = vsel %vm447_vm0, %v458_v62, %v459_v50  ;;  %v701_v17 = vrot.slane %v600_v0, 2  ;;  %v839_v18 = vmul.f32 %v2330_v8, %v2449_v53  ;;  %v1111_v20 = vadd.f32 %v1005_v55, %v870_v12 }
  0x37   : > { %v2030_v19 = vadd.f32 %v2029_v40, %v1999_v7  ;;  %v564_v25 = vadd.f32 %v460_v14, %v290_v61  ;;  %v906_v22 = vmul.f32 %v2319_v4, %v2449_v53  ;;  %v907_v26 = vmul.f32 %v2319_v4, %v2454_v59 }
  0x38   : > { %v702_v23 = vsel %vm689_vm1, %v700_v16, %v701_v17  ;;  %v1147_v27 = vmul.f32 %v2326_v5, %v2449_v53  ;;  %v1148_v28 = vmul.f32 %v2326_v5, %v2454_v59  ;;  %v1352_v29 = vadd.f32 %v1246_v56, %v1111_v20 }
  0x39   : > { %v1793_v30 = vsel %vm689_vm1, %v1790_v21, %v1792_v13  ;;  %v806_v32 = vadd.f32 %v702_v23, %v564_v25  ;;  %v1006_v33 = vrot.slane %v906_v22, 1  ;;  %v1007_v38 = vrot.slane %v907_v26, 1  ;;  %v2566_v23 = vld [vmem:[%s2324_s21 + $0x70] sm:$0x3] }
  0x3a   : > { %v1247_v10 = vrot.slane %v1147_v27, 2  ;;  %v1248_v11 = vrot.slane %v1148_v28, 2  ;;  %v1453_v40 = vmul.f32 %v2343_v15, %v2528_v31  ;;  %v1417_v51 = vadd.f32 %v1385_v46, %v1352_v29 }
  0x3b   : > { %v871_v41 = vadd.f32 %v839_v18, %v806_v32  ;;  %v1454_v42 = vmul.f32 %v2343_v15, %v2531_v36  ;;  %v1694_v21 = vmul.f32 %v2356_v24, %v2528_v31  ;;  %v1008_v43 = vsel %vm447_vm0, %v1006_v33, %v1007_v38 }
  0x3c   : > { %v1249_v44 = vsel %vm689_vm1, %v1247_v10, %v1248_v11  ;;  %v1553_v45 = vrot.slane %v1453_v40, 1  ;;  %v2543_v47 = vmul.f32 %v2356_v24, %v2531_v36  ;;  %v1658_v48 = vadd.f32 %v1552_v60, %v1417_v51 }
  0x3d   : > { %v1112_v49 = vadd.f32 %v1008_v43, %v871_v41  ;;  %v1386_v46 = vmul.f32 %v2332_v9, %v2528_v31  ;;  %v1554_v52 = vrot.slane %v1454_v42, 1  ;;  %v1794_v55 = vrot.slane %v1694_v21, 2 }
  0x3e   : > { %v1795_v56 = vrot.slane %v2543_v47, 2  ;;  %v359_v37 = vmul.f32 %v2313_v1, %v2401_v63  ;;  %v601_v39 = vmul.f32 %v2315_v2, %v2401_v63  ;;  %v1899_v57 = vadd.f32 %v1793_v30, %v1658_v48 }
  0x3f   : > { %v1353_v58 = vadd.f32 %v1249_v44, %v1112_v49  ;;  %v1555_v61 = vsel %vm447_vm0, %v1553_v45, %v1554_v52  ;;  %v291_v60 = vmul.f32 %v2317_v3, %v2370_v35  ;;  %v840_v0 = vmul.f32 %v2330_v8, %v2454_v59 }
  0x40   : > { %v461_v62 = vrot.slane %v359_v37, 1  ;;  %v703_v54 = vrot.slane %v601_v39, 2  ;;  %v908_v7 = vmul.f32 %v2319_v4, %v2484_v34  ;;  %1931 = vst [vmem:[%s2433_s27 + $0x18] sm:$0xff] %v1899_v57  ;;  %v1962_v12 = vadd.f32 %v1961_v6, %v1899_v57 }
  0x41   : > { %v2000_v13 = vmul.f32 %v1899_v57, %v1899_v57  ;;  %v1418_v63 = vadd.f32 %v1386_v46, %v1353_v58  ;;  %v1149_v14 = vmul.f32 %v2326_v5, %v2484_v34  ;;  %v1796_v16 = vsel %vm689_vm1, %v1794_v55, %v1795_v56 }
  0x42   : > { %v462_v35 = vsel %vm447_vm0, %v459_v50, %v461_v62  ;;  %v704_v18 = vsel %vm689_vm1, %v701_v17, %v703_v54  ;;  %v1009_v20 = vrot.slane %v908_v7, 1  ;;  %v1387_v28 = vmul.f32 %v2332_v9, %v2531_v36 }
  0x43   : > { %v2031_v25 = vadd.f32 %v2030_v19, %v2000_v13  ;;  %v1659_v22 = vadd.f32 %v1555_v61, %v1418_v63  ;;  %v565_v26 = vadd.f32 %v462_v35, %v291_v60  ;;  %v1250_v27 = vrot.slane %v1149_v14, 2  ;;  %v2608_v13 = vld [vmem:[%s2324_s21 + $0x80] sm:$0xff] }
  0x44   : > { %v1010_v6 = vsel %vm447_vm0, %v1007_v38, %v1009_v20  ;;  %v1455_v29 = vmul.f32 %v2343_v15, %v2566_v23  ;;  %v1696_v50 = vmul.f32 %v2356_v24, %v2566_v23  ;;  %v292_v19 = vmul.f32 %v2317_v3, %v2449_v53 }
  0x45   : > { %v1900_v17 = vadd.f32 %v1796_v16, %v1659_v22  ;;  %v807_v30 = vadd.f32 %v704_v18, %v565_v26  ;;  %v360_v32 = vmul.f32 %v2313_v1, %v2449_v53  ;;  %v1251_v33 = vsel %vm689_vm1, %v1248_v11, %v1250_v27 }
  0x46   : > { %v1556_v38 = vrot.slane %v1455_v29, 1  ;;  %v2582_v10 = vmul.f32 %v2313_v1, %v2454_v59  ;;  %v602_v40 = vmul.f32 %v2315_v2, %v2449_v53  ;;  %v1797_v44 = vrot.slane %v1696_v50, 2 }
  0x47   : > { %1932 = vst [vmem:[%s2433_s27 + $0x20] sm:$0xff] %v1900_v17  ;;  %v1963_v51 = vadd.f32 %v1962_v12, %v1900_v17  ;;  %v2001_v41 = vmul.f32 %v1900_v17, %v1900_v17  ;;  %v872_v42 = vadd.f32 %v840_v0, %v807_v30  ;;  %v463_v21 = vrot.slane %v360_v32, 1  ;;  %v2605_v12 = vld [vmem:[%s2324_s21 + $0x78] sm:$0xff] }
  0x48   : > { %v1557_v43 = vsel %vm447_vm0, %v1554_v52, %v1556_v38  ;;  %v464_v45 = vrot.slane %v2582_v10, 1  ;;  %v603_v11 = vmul.f32 %v2315_v2, %v2454_v59  ;;  %v705_v49 = vrot.slane %v602_v40, 2 }
  0x49   : > { %v2032_v47 = vadd.f32 %v2031_v25, %v2001_v41  ;;  %v1113_v48 = vadd.f32 %v1010_v6, %v872_v42  ;;  %v841_v53 = vmul.f32 %v2330_v8, %v2528_v31  ;;  %v909_v52 = vmul.f32 %v2319_v4, %v2528_v31 }
  0x4a   : > { %v465_v46 = vsel %vm447_vm0, %v463_v21, %v464_v45  ;;  %v706_v55 = vrot.slane %v603_v11, 2  ;;  %v910_v37 = vmul.f32 %v2319_v4, %v2531_v36  ;;  %v1150_v58 = vmul.f32 %v2326_v5, %v2528_v31 }
  0x4b   : > { %v1354_v39 = vadd.f32 %v1251_v33, %v1113_v48  ;;  %v566_v57 = vadd.f32 %v465_v46, %v292_v19  ;;  %v1151_v61 = vmul.f32 %v2326_v5, %v2531_v36  ;;  %v1798_v60 = vsel %vm689_vm1, %v1795_v56, %v1797_v44  ;;  %v2638_v44 = vld [vmem:[%s2324_s21 + $0x88] sm:$0x3] }
  0x4c   : > { %v707_v62 = vsel %vm689_vm1, %v705_v49, %v706_v55  ;;  %v1011_v54 = vrot.slane %v909_v52, 1  ;;  %v1012_v0 = vrot.slane %v910_v37, 1  ;;  %v1252_v14 = vrot.slane %v1150_v58, 2 }
  0x4d   : > { %v1419_v7 = vadd.f32 %v1387_v28, %v1354_v39  ;;  %v808_v63 = vadd.f32 %v707_v62, %v566_v57  ;;  %v1253_v16 = vrot.slane %v1151_v61, 2  ;;  %v1456_v18 = vmul.f32 %v2343_v15, %v2605_v12 }
  0x4e   : > { %v1013_v35 = vsel %vm447_vm0, %v1011_v54, %v1012_v0  ;;  %v1457_v56 = vmul.f32 %v2343_v15, %v2608_v13  ;;  %v1697_v20 = vmul.f32 %v2356_v24, %v2605_v12  ;;  %v1388_v26 = vmul.f32 %v2332_v9, %v2605_v12 }
  0x4f   : > { %v1660_v25 = vadd.f32 %v1557_v43, %v1419_v7  ;;  %v873_v22 = vadd.f32 %v841_v53, %v808_v63  ;;  %v2621_v27 = vmul.f32 %v2356_v24, %v2608_v13  ;;  %v1254_v6 = vsel %vm689_vm1, %v1252_v14, %v1253_v16 }
  0x50   : > { %v1558_v28 = vrot.slane %v1456_v18, 1  ;;  %v1559_v29 = vrot.slane %v1457_v56, 1  ;;  %v1799_v50 = vrot.slane %v1697_v20, 2  ;;  %v362_v32 = vmul.f32 %v2313_v1, %v2484_v34 }
  0x51   : > { %v1901_v17 = vadd.f32 %v1798_v60, %v1660_v25  ;;  %v1114_v30 = vadd.f32 %v1013_v35, %v873_v22  ;;  %v1800_v19 = vrot.slane %v2621_v27, 2  ;;  %v293_v38 = vmul.f32 %v2317_v3, %v2454_v59 }
  0x52   : > { %v1560_v33 = vsel %vm447_vm0, %v1558_v28, %v1559_v29  ;;  %v604_v10 = vmul.f32 %v2315_v2, %v2484_v34  ;;  %v911_v40 = vmul.f32 %v2319_v4, %v2566_v23  ;;  %v842_v43 = vmul.f32 %v2330_v8, %v2531_v36 }
  0x53   : > { %1933 = vst [vmem:[%s2433_s27 + $0x28] sm:$0xff] %v1901_v17  ;;  %v1964_v41 = vadd.f32 %v1963_v51, %v1901_v17  ;;  %v2002_v42 = vmul.f32 %v1901_v17, %v1901_v17  ;;  %v1355_v21 = vadd.f32 %v1254_v6, %v1114_v30  ;;  %v466_v11 = vrot.slane %v362_v32, 1 }
  0x54   : > { %v708_v48 = vrot.slane %v604_v10, 2  ;;  %v1014_v49 = vrot.slane %v911_v40, 1  ;;  %v1152_v59 = vmul.f32 %v2326_v5, %v2566_v23  ;;  %v1801_v46 = vsel %vm689_vm1, %v1799_v50, %v1800_v19 }
  0x55   : > { %v2033_v53 = vadd.f32 %v2032_v47, %v2002_v42  ;;  %v1420_v34 = vadd.f32 %v1388_v26, %v1355_v21  ;;  %v1458_v51 = vmul.f32 %v2343_v15, %v2638_v44  ;;  %v467_v52 = vsel %vm447_vm0, %v464_v45, %v466_v11  ;;  %v2682_v42 = vld [vmem:[%s2324_s21 + $0x90] sm:$0xff]  ;;  %v2685_v11 = vld [vmem:[%s2324_s21 + $0x98] sm:$0xff] }
  0x56   : > { %v709_v37 = vsel %vm689_vm1, %v706_v55, %v708_v48  ;;  %v1255_v39 = vrot.slane %v1152_v59, 2  ;;  %v1389_v57 = vmul.f32 %v2332_v9, %v2608_v13  ;;  %v567_v61 = vadd.f32 %v467_v52, %v293_v38 }
  0x57   : > { %v1661_v58 = vadd.f32 %v1560_v33, %v1420_v34  ;;  %v1561_v60 = vrot.slane %v1458_v51, 1  ;;  %v1699_v47 = vmul.f32 %v2356_v24, %v2638_v44  ;;  %v1015_v62 = vsel %vm447_vm0, %v1012_v0, %v1014_v49 }
  0x58   : > { %v1256_v54 = vsel %vm689_vm1, %v1253_v16, %v1255_v39  ;;  %v363_v45 = vmul.f32 %v2313_v1, %v2528_v31  ;;  %v2657_v55 = vmul.f32 %v2313_v1, %v2531_v36  ;;  %v809_v63 = vadd.f32 %v709_v37, %v567_v61 }
  0x59   : > { %v1902_v7 = vadd.f32 %v1801_v46, %v1661_v58  ;;  %v1562_v14 = vsel %vm447_vm0, %v1559_v29, %v1561_v60  ;;  %v294_v35 = vmul.f32 %v2317_v3, %v2528_v31  ;;  %v605_v0 = vmul.f32 %v2315_v2, %v2528_v31 }
  0x5a   : > { %v468_v18 = vrot.slane %v363_v45, 1  ;;  %v469_v56 = vrot.slane %v2657_v55, 1  ;;  %v606_v16 = vmul.f32 %v2315_v2, %v2531_v36  ;;  %v874_v22 = vadd.f32 %v842_v43, %v809_v63 }
  0x5b   : > { %1934 = vst [vmem:[%s2433_s27 + $0x30] sm:$0xff] %v1902_v7  ;;  %v1965_v20 = vadd.f32 %v1964_v41, %v1902_v7  ;;  %v2003_v25 = vmul.f32 %v1902_v7, %v1902_v7  ;;  %v1802_v26 = vrot.slane %v1699_v47, 2  ;;  %v710_v6 = vrot.slane %v605_v0, 2 }
  0x5c   : > { %v470_v27 = vsel %vm447_vm0, %v468_v18, %v469_v56  ;;  %v711_v28 = vrot.slane %v606_v16, 2  ;;  %v843_v29 = vmul.f32 %v2330_v8, %v2605_v12  ;;  %v1115_v17 = vadd.f32 %v1015_v62, %v874_v22 }
  0x5d   : > { %v2034_v50 = vadd.f32 %v2033_v53, %v2003_v25  ;;  %v568_v31 = vadd.f32 %v470_v27, %v294_v35  ;;  %v912_v30 = vmul.f32 %v2319_v4, %v2605_v12  ;;  %v913_v33 = vmul.f32 %v2319_v4, %v2608_v13 }
  0x5e   : > { %v712_v32 = vsel %vm689_vm1, %v710_v6, %v711_v28  ;;  %v1153_v38 = vmul.f32 %v2326_v5, %v2605_v12  ;;  %v1154_v10 = vmul.f32 %v2326_v5, %v2608_v13  ;;  %v1356_v40 = vadd.f32 %v1256_v54, %v1115_v17 }
  0x5f   : > { %v1803_v41 = vsel %vm689_vm1, %v1800_v19, %v1802_v26  ;;  %v810_v21 = vadd.f32 %v712_v32, %v568_v31  ;;  %v1016_v43 = vrot.slane %v912_v30, 1  ;;  %v1017_v48 = vrot.slane %v913_v33, 1  ;;  %v2720_v32 = vld [vmem:[%s2324_s21 + $0xa0] sm:$0x3] }
  0x60   : > { %v1257_v49 = vrot.slane %v1153_v38, 2  ;;  %v1258_v59 = vrot.slane %v1154_v10, 2  ;;  %v1459_v53 = vmul.f32 %v2343_v15, %v2682_v42  ;;  %v1421_v34 = vadd.f32 %v1389_v57, %v1356_v40 }
  0x61   : > { %v875_v46 = vadd.f32 %v843_v29, %v810_v21  ;;  %v1460_v51 = vmul.f32 %v2343_v15, %v2685_v11  ;;  %v1700_v19 = vmul.f32 %v2356_v24, %v2682_v42  ;;  %v1018_v52 = vsel %vm447_vm0, %v1016_v43, %v1017_v48 }
  0x62   : > { %v1259_v37 = vsel %vm689_vm1, %v1257_v49, %v1258_v59  ;;  %v1563_v39 = vrot.slane %v1459_v53, 1  ;;  %v2697_v58 = vmul.f32 %v2356_v24, %v2685_v11  ;;  %v1662_v61 = vadd.f32 %v1562_v14, %v1421_v34 }
  0x63   : > { %v1116_v60 = vadd.f32 %v1018_v52, %v875_v46  ;;  %v1390_v57 = vmul.f32 %v2332_v9, %v2682_v42  ;;  %v1564_v47 = vrot.slane %v1460_v51, 1  ;;  %v1804_v62 = vrot.slane %v1700_v19, 2 }
  0x64   : > { %v1805_v54 = vrot.slane %v2697_v58, 2  ;;  %v365_v45 = vmul.f32 %v2313_v1, %v2566_v23  ;;  %v607_v55 = vmul.f32 %v2315_v2, %v2566_v23  ;;  %v1903_v7 = vadd.f32 %v1803_v41, %v1662_v61 }
  0x65   : > { %v1357_v63 = vadd.f32 %v1259_v37, %v1116_v60  ;;  %v1565_v35 = vsel %vm447_vm0, %v1563_v39, %v1564_v47  ;;  %v295_v14 = vmul.f32 %v2317_v3, %v2531_v36  ;;  %v844_v16 = vmul.f32 %v2330_v8, %v2608_v13 }
  0x66   : > { %v471_v18 = vrot.slane %v365_v45, 1  ;;  %v713_v0 = vrot.slane %v607_v55, 2  ;;  %v914_v25 = vmul.f32 %v2319_v4, %v2638_v44  ;;  %1935 = vst [vmem:[%s2433_s27 + $0x38] sm:$0xff] %v1903_v7  ;;  %v1966_v22 = vadd.f32 %v1965_v20, %v1903_v7 }
  0x67   : > { %v2004_v26 = vmul.f32 %v1903_v7, %v1903_v7  ;;  %v1422_v23 = vadd.f32 %v1390_v57, %v1357_v63  ;;  %v1155_v27 = vmul.f32 %v2326_v5, %v2638_v44  ;;  %v1806_v6 = vsel %vm689_vm1, %v1804_v62, %v1805_v54 }
  0x68   : > { %v472_v36 = vsel %vm447_vm0, %v469_v56, %v471_v18  ;;  %v714_v29 = vsel %vm689_vm1, %v711_v28, %v713_v0  ;;  %v1019_v17 = vrot.slane %v914_v25, 1  ;;  %v1391_v10 = vmul.f32 %v2332_v9, %v2685_v11 }
  0x69   : > { %v2035_v31 = vadd.f32 %v2034_v50, %v2004_v26  ;;  %v1663_v30 = vadd.f32 %v1565_v35, %v1422_v23  ;;  %v569_v33 = vadd.f32 %v472_v36, %v295_v14  ;;  %v1260_v38 = vrot.slane %v1155_v27, 2  ;;  %v2762_v26 = vld [vmem:[%s2324_s21 + $0xb0] sm:$0xff] }
  0x6a   : > { %v1020_v20 = vsel %vm447_vm0, %v1017_v48, %v1019_v17  ;;  %v1461_v40 = vmul.f32 %v2343_v15, %v2720_v32  ;;  %v1702_v56 = vmul.f32 %v2356_v24, %v2720_v32  ;;  %v296_v50 = vmul.f32 %v2317_v3, %v2605_v12 }
  0x6b   : > { %v1904_v28 = vadd.f32 %v1806_v6, %v1663_v30  ;;  %v811_v41 = vadd.f32 %v714_v29, %v569_v33  ;;  %v366_v21 = vmul.f32 %v2313_v1, %v2605_v12  ;;  %v1261_v43 = vsel %vm689_vm1, %v1258_v59, %v1260_v38 }
  0x6c   : > { %v1566_v48 = vrot.slane %v1461_v40, 1  ;;  %v2736_v49 = vmul.f32 %v2313_v1, %v2608_v13  ;;  %v608_v53 = vmul.f32 %v2315_v2, %v2605_v12  ;;  %v1807_v37 = vrot.slane %v1702_v56, 2 }
  0x6d   : > { %1936 = vst [vmem:[%s2433_s27 + $0x40] sm:$0xff] %v1904_v28  ;;  %v1967_v34 = vadd.f32 %v1966_v22, %v1904_v28  ;;  %v2005_v46 = vmul.f32 %v1904_v28, %v1904_v28  ;;  %v876_v51 = vadd.f32 %v844_v16, %v811_v41  ;;  %v473_v19 = vrot.slane %v366_v21, 1  ;;  %v2759_v22 = vld [vmem:[%s2324_s21 + $0xa8] sm:$0xff] }
  0x6e   : > { %v1567_v52 = vsel %vm447_vm0, %v1564_v47, %v1566_v48  ;;  %v474_v39 = vrot.slane %v2736_v49, 1  ;;  %v609_v59 = vmul.f32 %v2315_v2, %v2608_v13  ;;  %v715_v60 = vrot.slane %v608_v53, 2 }
  0x6f   : > { %v2036_v58 = vadd.f32 %v2035_v31, %v2005_v46  ;;  %v1117_v61 = vadd.f32 %v1020_v20, %v876_v51  ;;  %v845_v12 = vmul.f32 %v2330_v8, %v2682_v42  ;;  %v915_v47 = vmul.f32 %v2319_v4, %v2682_v42 }
  0x70   : > { %v475_v57 = vsel %vm447_vm0, %v473_v19, %v474_v39  ;;  %v716_v62 = vrot.slane %v609_v59, 2  ;;  %v916_v45 = vmul.f32 %v2319_v4, %v2685_v11  ;;  %v1156_v63 = vmul.f32 %v2326_v5, %v2682_v42 }
  0x71   : > { %v1358_v55 = vadd.f32 %v1261_v43, %v1117_v61  ;;  %v570_v7 = vadd.f32 %v475_v57, %v296_v50  ;;  %v1157_v35 = vmul.f32 %v2326_v5, %v2685_v11  ;;  %v1808_v14 = vsel %vm689_vm1, %v1805_v54, %v1807_v37  ;;  %v2792_v37 = vld [vmem:[%s2324_s21 + $0xb8] sm:$0x3] }
  0x72   : > { %v717_v18 = vsel %vm689_vm1, %v715_v60, %v716_v62  ;;  %v1021_v0 = vrot.slane %v915_v47, 1  ;;  %v1022_v16 = vrot.slane %v916_v45, 1  ;;  %v1262_v27 = vrot.slane %v1156_v63, 2 }
  0x73   : > { %v1423_v25 = vadd.f32 %v1391_v10, %v1358_v55  ;;  %v812_v23 = vadd.f32 %v717_v18, %v570_v7  ;;  %v1263_v6 = vrot.slane %v1157_v35, 2  ;;  %v1462_v29 = vmul.f32 %v2343_v15, %v2759_v22 }
  0x74   : > { %v1023_v36 = vsel %vm447_vm0, %v1021_v0, %v1022_v16  ;;  %v1463_v54 = vmul.f32 %v2343_v15, %v2762_v26  ;;  %v1703_v17 = vmul.f32 %v2356_v24, %v2759_v22  ;;  %v1392_v33 = vmul.f32 %v2332_v9, %v2759_v22 }
  0x75   : > { %v1664_v31 = vadd.f32 %v1567_v52, %v1423_v25  ;;  %v877_v30 = vadd.f32 %v845_v12, %v812_v23  ;;  %v2775_v38 = vmul.f32 %v2356_v24, %v2762_v26  ;;  %v1264_v20 = vsel %vm689_vm1, %v1262_v27, %v1263_v6 }
  0x76   : > { %v1568_v10 = vrot.slane %v1462_v29, 1  ;;  %v1569_v40 = vrot.slane %v1463_v54, 1  ;;  %v1809_v56 = vrot.slane %v1703_v17, 2  ;;  %v368_v21 = vmul.f32 %v2313_v1, %v2638_v44 }
  0x77   : > { %v1905_v28 = vadd.f32 %v1808_v14, %v1664_v31  ;;  %v1118_v41 = vadd.f32 %v1023_v36, %v877_v30  ;;  %v1810_v50 = vrot.slane %v2775_v38, 2  ;;  %v297_v48 = vmul.f32 %v2317_v3, %v2608_v13 }
  0x78   : > { %v1570_v43 = vsel %vm447_vm0, %v1568_v10, %v1569_v40  ;;  %v610_v49 = vmul.f32 %v2315_v2, %v2638_v44  ;;  %v917_v53 = vmul.f32 %v2319_v4, %v2720_v32  ;;  %v846_v52 = vmul.f32 %v2330_v8, %v2685_v11 }
  0x79   : > { %1937 = vst [vmem:[%s2433_s27 + $0x48] sm:$0xff] %v1905_v28  ;;  %v1968_v46 = vadd.f32 %v1967_v34, %v1905_v28  ;;  %v2006_v51 = vmul.f32 %v1905_v28, %v1905_v28  ;;  %v1359_v19 = vadd.f32 %v1264_v20, %v1118_v41  ;;  %v476_v59 = vrot.slane %v368_v21, 1 }
  0x7a   : > { %v718_v61 = vrot.slane %v610_v49, 2  ;;  %v1024_v60 = vrot.slane %v917_v53, 1  ;;  %v1158_v13 = vmul.f32 %v2326_v5, %v2720_v32  ;;  %v1811_v57 = vsel %vm689_vm1, %v1809_v56, %v1810_v50 }
  0x7b   : > { %v2037_v12 = vadd.f32 %v2036_v58, %v2006_v51  ;;  %v1424_v44 = vadd.f32 %v1392_v33, %v1359_v19  ;;  %v1464_v34 = vmul.f32 %v2343_v15, %v2792_v37  ;;  %v477_v47 = vsel %vm447_vm0, %v474_v39, %v476_v59  ;;  %v2836_v51 = vld [vmem:[%s2324_s21 + $0xc0] sm:$0xff]  ;;  %v2839_v59 = vld [vmem:[%s2324_s21 + $0xc8] sm:$0xff] }
  0x7c   : > { %v719_v45 = vsel %vm689_vm1, %v716_v62, %v718_v61  ;;  %v1265_v55 = vrot.slane %v1158_v13, 2  ;;  %v1393_v7 = vmul.f32 %v2332_v9, %v2762_v26  ;;  %v571_v35 = vadd.f32 %v477_v47, %v297_v48 }
  0x7d   : > { %v1665_v63 = vadd.f32 %v1570_v43, %v1424_v44  ;;  %v1571_v14 = vrot.slane %v1464_v34, 1  ;;  %v1705_v58 = vmul.f32 %v2356_v24, %v2792_v37  ;;  %v1025_v18 = vsel %vm447_vm0, %v1022_v16, %v1024_v60 }
  0x7e   : > { %v1266_v0 = vsel %vm689_vm1, %v1263_v6, %v1265_v55  ;;  %v369_v39 = vmul.f32 %v2313_v1, %v2682_v42  ;;  %v2811_v62 = vmul.f32 %v2313_v1, %v2685_v11  ;;  %v813_v23 = vadd.f32 %v719_v45, %v571_v35 }
  0x7f   : > { %v1906_v25 = vadd.f32 %v1811_v57, %v1665_v63  ;;  %v1572_v27 = vsel %vm447_vm0, %v1569_v40, %v1571_v14  ;;  %v298_v36 = vmul.f32 %v2317_v3, %v2682_v42  ;;  %v611_v16 = vmul.f32 %v2315_v2, %v2682_v42 }
  0x80   : > { %v478_v29 = vrot.slane %v369_v39, 1  ;;  %v479_v54 = vrot.slane %v2811_v62, 1  ;;  %v612_v6 = vmul.f32 %v2315_v2, %v2685_v11  ;;  %v878_v30 = vadd.f32 %v846_v52, %v813_v23 }
  0x81   : > { %1938 = vst [vmem:[%s2433_s27 + $0x50] sm:$0xff] %v1906_v25  ;;  %v1969_v17 = vadd.f32 %v1968_v46, %v1906_v25  ;;  %v2007_v31 = vmul.f32 %v1906_v25, %v1906_v25  ;;  %v1812_v33 = vrot.slane %v1705_v58, 2  ;;  %v720_v20 = vrot.slane %v611_v16, 2 }
  0x82   : > { %v480_v38 = vsel %vm447_vm0, %v478_v29, %v479_v54  ;;  %v721_v10 = vrot.slane %v612_v6, 2  ;;  %v847_v40 = vmul.f32 %v2330_v8, %v2759_v22  ;;  %v1119_v28 = vadd.f32 %v1025_v18, %v878_v30 }
  0x83   : > { %v2038_v56 = vadd.f32 %v2037_v12, %v2007_v31  ;;  %v572_v42 = vadd.f32 %v480_v38, %v298_v36  ;;  %v918_v41 = vmul.f32 %v2319_v4, %v2759_v22  ;;  %v919_v43 = vmul.f32 %v2319_v4, %v2762_v26 }
  0x84   : > { %v722_v21 = vsel %vm689_vm1, %v720_v20, %v721_v10  ;;  %v1159_v48 = vmul.f32 %v2326_v5, %v2759_v22  ;;  %v1160_v49 = vmul.f32 %v2326_v5, %v2762_v26  ;;  %v1360_v53 = vadd.f32 %v1266_v0, %v1119_v28 }
  0x85   : > { %v1813_v46 = vsel %vm689_vm1, %v1810_v50, %v1812_v33  ;;  %v814_v19 = vadd.f32 %v722_v21, %v572_v42  ;;  %v1026_v52 = vrot.slane %v918_v41, 1  ;;  %v1027_v61 = vrot.slane %v919_v43, 1  ;;  %v2874_v41 = vld [vmem:[%s2324_s21 + $0xd0] sm:$0x3] }
  0x86   : > { %v1267_v60 = vrot.slane %v1159_v48, 2  ;;  %v1268_v13 = vrot.slane %v1160_v49, 2  ;;  %v1465_v12 = vmul.f32 %v2343_v15, %v2836_v51  ;;  %v1425_v44 = vadd.f32 %v1393_v7, %v1360_v53 }
  0x87   : > { %v879_v57 = vadd.f32 %v847_v40, %v814_v19  ;;  %v1466_v34 = vmul.f32 %v2343_v15, %v2839_v59  ;;  %v1706_v50 = vmul.f32 %v2356_v24, %v2836_v51  ;;  %v1028_v47 = vsel %vm447_vm0, %v1026_v52, %v1027_v61 }
  0x88   : > { %v1269_v45 = vsel %vm689_vm1, %v1267_v60, %v1268_v13  ;;  %v1573_v55 = vrot.slane %v1465_v12, 1  ;;  %v2851_v63 = vmul.f32 %v2356_v24, %v2839_v59  ;;  %v1666_v35 = vadd.f32 %v1572_v27, %v1425_v44 }
  0x89   : > { %v1120_v14 = vadd.f32 %v1028_v47, %v879_v57  ;;  %v1394_v7 = vmul.f32 %v2332_v9, %v2836_v51  ;;  %v1574_v58 = vrot.slane %v1466_v34, 1  ;;  %v1814_v18 = vrot.slane %v1706_v50, 2 }
  0x8a   : > { %v1815_v0 = vrot.slane %v2851_v63, 2  ;;  %v371_v39 = vmul.f32 %v2313_v1, %v2720_v32  ;;  %v613_v62 = vmul.f32 %v2315_v2, %v2720_v32  ;;  %v1907_v25 = vadd.f32 %v1813_v46, %v1666_v35 }
  0x8b   : > { %v1361_v23 = vadd.f32 %v1269_v45, %v1120_v14  ;;  %v1575_v24 = vsel %vm447_vm0, %v1573_v55, %v1574_v58  ;;  %v299_v27 = vmul.f32 %v2317_v3, %v2685_v11  ;;  %v848_v16 = vmul.f32 %v2330_v8, %v2762_v26 }
  0x8c   : > { %v481_v36 = vrot.slane %v371_v39, 1  ;;  %v723_v29 = vrot.slane %v613_v62, 2  ;;  %v920_v6 = vmul.f32 %v2319_v4, %v2792_v37  ;;  %1939 = vst [vmem:[%s2433_s27 + $0x58] sm:$0xff] %v1907_v25  ;;  %v1970_v31 = vadd.f32 %v1969_v17, %v1907_v25 }
  0x8d   : > { %v2008_v30 = vmul.f32 %v1907_v25, %v1907_v25  ;;  %v1426_v32 = vadd.f32 %v1394_v7, %v1361_v23  ;;  %v1161_v33 = vmul.f32 %v2326_v5, %v2792_v37  ;;  %v1816_v38 = vsel %vm689_vm1, %v1814_v18, %v1815_v0 }
  0x8e   : > { %v482_v11 = vsel %vm447_vm0, %v479_v54, %v481_v36  ;;  %v724_v20 = vsel %vm689_vm1, %v721_v10, %v723_v29  ;;  %v1029_v40 = vrot.slane %v920_v6, 1  ;;  %v1395_v48 = vmul.f32 %v2332_v9, %v2839_v59  ;;  %v2884_v54 = vld [vmem:[%s3653_s1 + $0x8] ss:$0 sm:$0xff] }
  0x8f   : > { %v2039_v28 = vadd.f32 %v2038_v56, %v2008_v30  ;;  %v1667_v42 = vadd.f32 %v1575_v24, %v1426_v32  ;;  %v573_v21 = vadd.f32 %v482_v11, %v299_v27  ;;  %v1270_v43 = vrot.slane %v1161_v33, 2  ;;  %v2921_v30 = vld [vmem:[%s2324_s21 + $0xe0] sm:$0xff] }
  0x90   : > { %v1030_v17 = vsel %vm447_vm0, %v1027_v61, %v1029_v40  ;;  %v1467_v49 = vmul.f32 %v2343_v15, %v2874_v41  ;;  %v1708_v10 = vmul.f32 %v2884_v54, %v2874_v41  ;;  %v300_v46 = vmul.f32 %v2317_v3, %v2759_v22 }
  0x91   : > { %v1908_v56 = vadd.f32 %v1816_v38, %v1667_v42  ;;  %v815_v53 = vadd.f32 %v724_v20, %v573_v21  ;;  %v372_v19 = vmul.f32 %v2313_v1, %v2759_v22  ;;  %v1271_v52 = vsel %vm689_vm1, %v1268_v13, %v1270_v43 }
  0x92   : > { %v1576_v61 = vrot.slane %v1467_v49, 1  ;;  %v2895_v60 = vmul.f32 %v2313_v1, %v2762_v26  ;;  %v614_v12 = vmul.f32 %v2315_v2, %v2759_v22  ;;  %v1817_v45 = vrot.slane %v1708_v10, 2 }
  0x93   : > { %1940 = vst [vmem:[%s2433_s27 + $0x60] sm:$0xff] %v1908_v56  ;;  %v1971_v44 = vadd.f32 %v1970_v31, %v1908_v56  ;;  %v2009_v57 = vmul.f32 %v1908_v56, %v1908_v56  ;;  %v880_v34 = vadd.f32 %v848_v16, %v815_v53  ;;  %v483_v50 = vrot.slane %v372_v19, 1  ;;  %v2918_v31 = vld [vmem:[%s2324_s21 + $0xd8] sm:$0xff] }
  0x94   : > { %v1577_v47 = vsel %vm447_vm0, %v1574_v58, %v1576_v61  ;;  %v484_v55 = vrot.slane %v2895_v60, 1  ;;  %v615_v13 = vmul.f32 %v2315_v2, %v2762_v26  ;;  %v725_v14 = vrot.slane %v614_v12, 2 }
  0x95   : > { %v2040_v63 = vadd.f32 %v2039_v28, %v2009_v57  ;;  %v1121_v35 = vadd.f32 %v1030_v17, %v880_v34  ;;  %v849_v22 = vmul.f32 %v2330_v8, %v2836_v51  ;;  %v921_v58 = vmul.f32 %v2319_v4, %v2836_v51 }
  0x96   : > { %v485_v7 = vsel %vm447_vm0, %v483_v50, %v484_v55  ;;  %v726_v18 = vrot.slane %v615_v13, 2  ;;  %v922_v39 = vmul.f32 %v2319_v4, %v2839_v59  ;;  %v1162_v23 = vmul.f32 %v2326_v5, %v2836_v51 }
  0x97   : > { %v1362_v62 = vadd.f32 %v1271_v52, %v1121_v35  ;;  %v574_v25 = vadd.f32 %v485_v7, %v300_v46  ;;  %v1163_v24 = vmul.f32 %v2326_v5, %v2839_v59  ;;  %v1818_v27 = vsel %vm689_vm1, %v1815_v0, %v1817_v45  ;;  %v2951_v45 = vld [vmem:[%s2324_s21 + $0xe8] sm:$0x3] }
  0x98   : > { %v727_v36 = vsel %vm689_vm1, %v725_v14, %v726_v18  ;;  %v1031_v29 = vrot.slane %v921_v58, 1  ;;  %v1032_v16 = vrot.slane %v922_v39, 1  ;;  %v1272_v33 = vrot.slane %v1162_v23, 2 }
  0x99   : > { %v1427_v6 = vadd.f32 %v1395_v48, %v1362_v62  ;;  %v816_v32 = vadd.f32 %v727_v36, %v574_v25  ;;  %v1273_v38 = vrot.slane %v1163_v24, 2  ;;  %v1468_v20 = vmul.f32 %v2343_v15, %v2918_v31 }
  0x9a   : > { %v1033_v11 = vsel %vm447_vm0, %v1031_v29, %v1032_v16  ;;  %v1469_v0 = vmul.f32 %v2343_v15, %v2921_v30  ;;  %v1709_v40 = vmul.f32 %v2884_v54, %v2918_v31  ;;  %v1396_v21 = vmul.f32 %v2332_v9, %v2918_v31 }
  0x9b   : > { %v1668_v28 = vadd.f32 %v1577_v47, %v1427_v6  ;;  %v881_v42 = vadd.f32 %v849_v22, %v816_v32  ;;  %v2934_v43 = vmul.f32 %v2884_v54, %v2921_v30  ;;  %v1274_v17 = vsel %vm689_vm1, %v1272_v33, %v1273_v38 }
  0x9c   : > { %v1578_v48 = vrot.slane %v1468_v20, 1  ;;  %v1579_v49 = vrot.slane %v1469_v0, 1  ;;  %v1819_v10 = vrot.slane %v1709_v40, 2  ;;  %v374_v19 = vmul.f32 %v2313_v1, %v2792_v37 }
  0x9d   : > { %v1909_v56 = vadd.f32 %v1818_v27, %v1668_v28  ;;  %v1122_v53 = vadd.f32 %v1033_v11, %v881_v42  ;;  %v1820_v46 = vrot.slane %v2934_v43, 2  ;;  %v301_v61 = vmul.f32 %v2317_v3, %v2762_v26 }
  0x9e   : > { %v1580_v52 = vsel %vm447_vm0, %v1578_v48, %v1579_v49  ;;  %v616_v60 = vmul.f32 %v2315_v2, %v2792_v37  ;;  %v923_v12 = vmul.f32 %v2319_v4, %v2874_v41  ;;  %v850_v47 = vmul.f32 %v2330_v8, %v2839_v59 }
  0x9f   : > { %1941 = vst [vmem:[%s2433_s27 + $0x68] sm:$0xff] %v1909_v56  ;;  %v1972_v57 = vadd.f32 %v1971_v44, %v1909_v56  ;;  %v2010_v34 = vmul.f32 %v1909_v56, %v1909_v56  ;;  %v1363_v50 = vadd.f32 %v1274_v17, %v1122_v53  ;;  %v486_v13 = vrot.slane %v374_v19, 1 }
  0xa0   : > { %v728_v35 = vrot.slane %v616_v60, 2  ;;  %v1034_v14 = vrot.slane %v923_v12, 1  ;;  %v1164_v26 = vmul.f32 %v2326_v5, %v2874_v41  ;;  %v1821_v7 = vsel %vm689_vm1, %v1819_v10, %v1820_v46 }
  0xa1   : > { %v2041_v22 = vadd.f32 %v2040_v63, %v2010_v34  ;;  %v1428_v37 = vadd.f32 %v1396_v21, %v1363_v50  ;;  %v1470_v44 = vmul.f32 %v2343_v15, %v2951_v45  ;;  %v487_v58 = vsel %vm447_vm0, %v484_v55, %v486_v13  ;;  %v2995_v34 = vld [vmem:[%s2324_s21 + $0xf0] sm:$0xff]  ;;  %v2998_v13 = vld [vmem:[%s2324_s21 + $0xf8] sm:$0xff] }
  0xa2   : > { %v729_v39 = vsel %vm689_vm1, %v726_v18, %v728_v35  ;;  %v1275_v62 = vrot.slane %v1164_v26, 2  ;;  %v1397_v25 = vmul.f32 %v2332_v9, %v2921_v30  ;;  %v575_v24 = vadd.f32 %v487_v58, %v301_v61 }
  0xa3   : > { %v1669_v23 = vadd.f32 %v1580_v52, %v1428_v37  ;;  %v1581_v27 = vrot.slane %v1470_v44, 1  ;;  %v1711_v63 = vmul.f32 %v2884_v54, %v2951_v45  ;;  %v1035_v36 = vsel %vm447_vm0, %v1032_v16, %v1034_v14 }
  0xa4   : > { %v1276_v29 = vsel %vm689_vm1, %v1273_v38, %v1275_v62  ;;  %v375_v55 = vmul.f32 %v2313_v1, %v2836_v51  ;;  %v2970_v18 = vmul.f32 %v2313_v1, %v2839_v59  ;;  %v817_v32 = vadd.f32 %v729_v39, %v575_v24 }
  0xa5   : > { %v1910_v6 = vadd.f32 %v1821_v7, %v1669_v23  ;;  %v1582_v33 = vsel %vm447_vm0, %v1579_v49, %v1581_v27  ;;  %v302_v11 = vmul.f32 %v2317_v3, %v2836_v51  ;;  %v617_v16 = vmul.f32 %v2315_v2, %v2836_v51 }
  0xa6   : > { %v488_v20 = vrot.slane %v375_v55, 1  ;;  %v489_v0 = vrot.slane %v2970_v18, 1  ;;  %v618_v38 = vmul.f32 %v2315_v2, %v2839_v59  ;;  %v882_v42 = vadd.f32 %v850_v47, %v817_v32 }
  0xa7   : > { %1942 = vst [vmem:[%s2433_s27 + $0x70] sm:$0xff] %v1910_v6  ;;  %v1973_v40 = vadd.f32 %v1972_v57, %v1910_v6  ;;  %v2011_v28 = vmul.f32 %v1910_v6, %v1910_v6  ;;  %v1822_v21 = vrot.slane %v1711_v63, 2  ;;  %v730_v17 = vrot.slane %v617_v16, 2 }
  0xa8   : > { %v490_v43 = vsel %vm447_vm0, %v488_v20, %v489_v0  ;;  %v731_v48 = vrot.slane %v618_v38, 2  ;;  %v851_v49 = vmul.f32 %v2330_v8, %v2918_v31  ;;  %v1123_v56 = vadd.f32 %v1035_v36, %v882_v42 }
  0xa9   : > { %v2042_v10 = vadd.f32 %v2041_v22, %v2011_v28  ;;  %v576_v51 = vadd.f32 %v490_v43, %v302_v11  ;;  %v924_v53 = vmul.f32 %v2319_v4, %v2918_v31  ;;  %v925_v52 = vmul.f32 %v2319_v4, %v2921_v30 }
  0xaa   : > { %v732_v19 = vsel %vm689_vm1, %v730_v17, %v731_v48  ;;  %v1165_v61 = vmul.f32 %v2326_v5, %v2918_v31  ;;  %v1166_v60 = vmul.f32 %v2326_v5, %v2921_v30  ;;  %v1364_v12 = vadd.f32 %v1276_v29, %v1123_v56 }
  0xab   : > { %v1823_v57 = vsel %vm689_vm1, %v1820_v46, %v1822_v21  ;;  %v818_v50 = vadd.f32 %v732_v19, %v576_v51  ;;  %v1036_v47 = vrot.slane %v924_v53, 1  ;;  %v1037_v35 = vrot.slane %v925_v52, 1  ;;  %v3033_v19 = vld [vmem:[%s2324_s21 + $0x100] sm:$0x3] }
  0xac   : > { %v1277_v14 = vrot.slane %v1165_v61, 2  ;;  %v1278_v26 = vrot.slane %v1166_v60, 2  ;;  %v1471_v22 = vmul.f32 %v2343_v15, %v2995_v34  ;;  %v1429_v37 = vadd.f32 %v1397_v25, %v1364_v12 }
  0xad   : > { %v883_v7 = vadd.f32 %v851_v49, %v818_v50  ;;  %v1472_v44 = vmul.f32 %v2343_v15, %v2998_v13  ;;  %v1712_v46 = vmul.f32 %v2884_v54, %v2995_v34  ;;  %v1038_v58 = vsel %vm447_vm0, %v1036_v47, %v1037_v35 }
  0xae   : > { %v1279_v39 = vsel %vm689_vm1, %v1277_v14, %v1278_v26  ;;  %v1583_v62 = vrot.slane %v1471_v22, 1  ;;  %v3010_v23 = vmul.f32 %v2884_v54, %v2998_v13  ;;  %v1670_v24 = vadd.f32 %v1582_v33, %v1429_v37 }
  0xaf   : > { %v1124_v27 = vadd.f32 %v1038_v58, %v883_v7  ;;  %v1398_v25 = vmul.f32 %v2332_v9, %v2995_v34  ;;  %v1584_v63 = vrot.slane %v1472_v44, 1  ;;  %v1824_v36 = vrot.slane %v1712_v46, 2 }
  0xb0   : > { %v1825_v29 = vrot.slane %v3010_v23, 2  ;;  %v377_v55 = vmul.f32 %v2313_v1, %v2874_v41  ;;  %v619_v18 = vmul.f32 %v2315_v2, %v2874_v41  ;;  %v1911_v6 = vadd.f32 %v1823_v57, %v1670_v24 }
  0xb1   : > { %v1365_v32 = vadd.f32 %v1279_v39, %v1124_v27  ;;  %v1585_v11 = vsel %vm447_vm0, %v1583_v62, %v1584_v63  ;;  %v303_v33 = vmul.f32 %v2317_v3, %v2839_v59  ;;  %v852_v38 = vmul.f32 %v2330_v8, %v2921_v30 }
  0xb2   : > { %v491_v20 = vrot.slane %v377_v55, 1  ;;  %v733_v16 = vrot.slane %v619_v18, 2  ;;  %v926_v28 = vmul.f32 %v2319_v4, %v2951_v45  ;;  %1943 = vst [vmem:[%s2433_s27 + $0x78] sm:$0xff] %v1911_v6  ;;  %v1974_v42 = vadd.f32 %v1973_v40, %v1911_v6 }
  0xb3   : > { %v2012_v21 = vmul.f32 %v1911_v6, %v1911_v6  ;;  %v1430_v41 = vadd.f32 %v1398_v25, %v1365_v32  ;;  %v1167_v43 = vmul.f32 %v2326_v5, %v2951_v45  ;;  %v1826_v17 = vsel %vm689_vm1, %v1824_v36, %v1825_v29 }
  0xb4   : > { %v492_v59 = vsel %vm447_vm0, %v489_v0, %v491_v20  ;;  %v734_v49 = vsel %vm689_vm1, %v731_v48, %v733_v16  ;;  %v1039_v56 = vrot.slane %v926_v28, 1  ;;  %v1399_v60 = vmul.f32 %v2332_v9, %v2998_v13 }
  0xb5   : > { %v2043_v51 = vadd.f32 %v2042_v10, %v2012_v21  ;;  %v1671_v53 = vadd.f32 %v1585_v11, %v1430_v41  ;;  %v577_v52 = vadd.f32 %v492_v59, %v303_v33  ;;  %v1280_v61 = vrot.slane %v1167_v43, 2  ;;  %v3075_v21 = vld [vmem:[%s2324_s21 + $0x110] sm:$0xff] }
  0xb6   : > { %v1040_v40 = vsel %vm447_vm0, %v1037_v35, %v1039_v56  ;;  %v1473_v12 = vmul.f32 %v2343_v15, %v3033_v19  ;;  %v1714_v0 = vmul.f32 %v2884_v54, %v3033_v19  ;;  %v304_v10 = vmul.f32 %v2317_v3, %v2918_v31 }
  0xb7   : > { %v1912_v48 = vadd.f32 %v1826_v17, %v1671_v53  ;;  %v819_v57 = vadd.f32 %v734_v49, %v577_v52  ;;  %v378_v50 = vmul.f32 %v2313_v1, %v2918_v31  ;;  %v1281_v47 = vsel %vm689_vm1, %v1278_v26, %v1280_v61 }
  0xb8   : > { %v1586_v35 = vrot.slane %v1473_v12, 1  ;;  %v3049_v14 = vmul.f32 %v2313_v1, %v2921_v30  ;;  %v620_v22 = vmul.f32 %v2315_v2, %v2918_v31  ;;  %v1827_v39 = vrot.slane %v1714_v0, 2 }
  0xb9   : > { %1944 = vst [vmem:[%s2433_s27 + $0x80] sm:$0xff] %v1912_v48  ;;  %v1975_v37 = vadd.f32 %v1974_v42, %v1912_v48  ;;  %v2013_v7 = vmul.f32 %v1912_v48, %v1912_v48  ;;  %v884_v44 = vadd.f32 %v852_v38, %v819_v57  ;;  %v493_v46 = vrot.slane %v378_v50, 1  ;;  %v3072_v42 = vld [vmem:[%s2324_s21 + $0x108] sm:$0xff] }
  0xba   : > { %v1587_v58 = vsel %vm447_vm0, %v1584_v63, %v1586_v35  ;;  %v494_v62 = vrot.slane %v3049_v14, 1  ;;  %v621_v26 = vmul.f32 %v2315_v2, %v2921_v30  ;;  %v735_v27 = vrot.slane %v620_v22, 2 }
  0xbb   : > { %v2044_v23 = vadd.f32 %v2043_v51, %v2013_v7  ;;  %v1125_v24 = vadd.f32 %v1040_v40, %v884_v44  ;;  %v853_v31 = vmul.f32 %v2330_v8, %v2995_v34  ;;  %v927_v63 = vmul.f32 %v2319_v4, %v2995_v34 }
  0xbc   : > { %v495_v25 = vsel %vm447_vm0, %v493_v46, %v494_v62  ;;  %v736_v36 = vrot.slane %v621_v26, 2  ;;  %v928_v55 = vmul.f32 %v2319_v4, %v2998_v13  ;;  %v1168_v32 = vmul.f32 %v2326_v5, %v2995_v34 }
  0xbd   : > { %v1366_v18 = vadd.f32 %v1281_v47, %v1125_v24  ;;  %v578_v6 = vadd.f32 %v495_v25, %v304_v10  ;;  %v1169_v11 = vmul.f32 %v2326_v5, %v2998_v13  ;;  %v1828_v33 = vsel %vm689_vm1, %v1825_v29, %v1827_v39  ;;  %v3105_v39 = vld [vmem:[%s2324_s21 + $0x118] sm:$0x3] }
  0xbe   : > { %v737_v20 = vsel %vm689_vm1, %v735_v27, %v736_v36  ;;  %v1041_v16 = vrot.slane %v927_v63, 1  ;;  %v1042_v38 = vrot.slane %v928_v55, 1  ;;  %v1282_v43 = vrot.slane %v1168_v32, 2 }
  0xbf   : > { %v1431_v28 = vadd.f32 %v1399_v60, %v1366_v18  ;;  %v820_v41 = vadd.f32 %v737_v20, %v578_v6  ;;  %v1283_v17 = vrot.slane %v1169_v11, 2  ;;  %v1474_v49 = vmul.f32 %v2343_v15, %v3072_v42 }
  0xc0   : > { %v1043_v59 = vsel %vm447_vm0, %v1041_v16, %v1042_v38  ;;  %v1475_v29 = vmul.f32 %v2343_v15, %v3075_v21  ;;  %v1715_v56 = vmul.f32 %v2884_v54, %v3072_v42  ;;  %v1400_v52 = vmul.f32 %v2332_v9, %v3072_v42 }
  0xc1   : > { %v1672_v51 = vadd.f32 %v1587_v58, %v1431_v28  ;;  %v885_v53 = vadd.f32 %v853_v31, %v820_v41  ;;  %v3088_v61 = vmul.f32 %v2884_v54, %v3075_v21  ;;  %v1284_v40 = vsel %vm689_vm1, %v1282_v43, %v1283_v17 }
  0xc2   : > { %v1588_v60 = vrot.slane %v1474_v49, 1  ;;  %v1589_v12 = vrot.slane %v1475_v29, 1  ;;  %v1829_v0 = vrot.slane %v1715_v56, 2  ;;  %v380_v50 = vmul.f32 %v2313_v1, %v2951_v45 }
  0xc3   : > { %v1913_v48 = vadd.f32 %v1828_v33, %v1672_v51  ;;  %v1126_v57 = vadd.f32 %v1043_v59, %v885_v53  ;;  %v1830_v10 = vrot.slane %v3088_v61, 2  ;;  %v305_v35 = vmul.f32 %v2317_v3, %v2921_v30 }
  0xc4   : > { %v1590_v47 = vsel %vm447_vm0, %v1588_v60, %v1589_v12  ;;  %v622_v14 = vmul.f32 %v2315_v2, %v2951_v45  ;;  %v929_v22 = vmul.f32 %v2319_v4, %v3033_v19  ;;  %v854_v58 = vmul.f32 %v2330_v8, %v2998_v13 }
  0xc5   : > { %1945 = vst [vmem:[%s2433_s27 + $0x88] sm:$0xff] %v1913_v48  ;;  %v1976_v7 = vadd.f32 %v1975_v37, %v1913_v48  ;;  %v2014_v44 = vmul.f32 %v1913_v48, %v1913_v48  ;;  %v1367_v46 = vadd.f32 %v1284_v40, %v1126_v57  ;;  %v496_v26 = vrot.slane %v380_v50, 1 }
  0xc6   : > { %v738_v24 = vrot.slane %v622_v14, 2  ;;  %v1044_v27 = vrot.slane %v929_v22, 1  ;;  %v1170_v30 = vmul.f32 %v2326_v5, %v3033_v19  ;;  %v1831_v25 = vsel %vm689_vm1, %v1829_v0, %v1830_v10 }
  0xc7   : > { %v2045_v31 = vadd.f32 %v2044_v23, %v2014_v44  ;;  %v1432_v45 = vadd.f32 %v1400_v52, %v1367_v46  ;;  %v1476_v37 = vmul.f32 %v2343_v15, %v3105_v39  ;;  %v497_v63 = vsel %vm447_vm0, %v494_v62, %v496_v26  ;;  %v3149_v44 = vld [vmem:[%s2324_s21 + $0x120] sm:$0xff]  ;;  %v3152_v26 = vld [vmem:[%s2324_s21 + $0x128] sm:$0xff] }
  0xc8   : > { %v739_v55 = vsel %vm689_vm1, %v736_v36, %v738_v24  ;;  %v1285_v18 = vrot.slane %v1170_v30, 2  ;;  %v1401_v6 = vmul.f32 %v2332_v9, %v3075_v21  ;;  %v579_v11 = vadd.f32 %v497_v63, %v305_v35 }
  0xc9   : > { %v1673_v32 = vadd.f32 %v1590_v47, %v1432_v45  ;;  %v1591_v33 = vrot.slane %v1476_v37, 1  ;;  %v1717_v23 = vmul.f32 %v2884_v54, %v3105_v39  ;;  %v1045_v20 = vsel %vm447_vm0, %v1042_v38, %v1044_v27 }
  0xca   : > { %v1286_v16 = vsel %vm689_vm1, %v1283_v17, %v1285_v18  ;;  %v381_v62 = vmul.f32 %v2313_v1, %v2995_v34  ;;  %v3124_v36 = vmul.f32 %v2313_v1, %v2998_v13  ;;  %v821_v41 = vadd.f32 %v739_v55, %v579_v11 }
  0xcb   : > { %v1914_v28 = vadd.f32 %v1831_v25, %v1673_v32  ;;  %v1592_v43 = vsel %vm447_vm0, %v1589_v12, %v1591_v33  ;;  %v306_v59 = vmul.f32 %v2317_v3, %v2995_v34  ;;  %v623_v38 = vmul.f32 %v2315_v2, %v2995_v34 }
  0xcc   : > { %v498_v49 = vrot.slane %v381_v62, 1  ;;  %v499_v29 = vrot.slane %v3124_v36, 1  ;;  %v624_v17 = vmul.f32 %v2315_v2, %v2998_v13  ;;  %v886_v53 = vadd.f32 %v854_v58, %v821_v41 }
  0xcd   : > { %1946 = vst [vmem:[%s2433_s27 + $0x90] sm:$0xff] %v1914_v28  ;;  %v1977_v56 = vadd.f32 %v1976_v7, %v1914_v28  ;;  %v2015_v51 = vmul.f32 %v1914_v28, %v1914_v28  ;;  %v1832_v52 = vrot.slane %v1717_v23, 2  ;;  %v740_v40 = vrot.slane %v623_v38, 2 }
  0xce   : > { %v500_v61 = vsel %vm447_vm0, %v498_v49, %v499_v29  ;;  %v741_v60 = vrot.slane %v624_v17, 2  ;;  %v855_v12 = vmul.f32 %v2330_v8, %v3072_v42  ;;  %v1127_v48 = vadd.f32 %v1045_v20, %v886_v53 }
  0xcf   : > { %v2046_v0 = vadd.f32 %v2045_v31, %v2015_v51  ;;  %v580_v34 = vadd.f32 %v500_v61, %v306_v59  ;;  %v930_v57 = vmul.f32 %v2319_v4, %v3072_v42  ;;  %v931_v47 = vmul.f32 %v2319_v4, %v3075_v21 }
  0xd0   : > { %v742_v50 = vsel %vm689_vm1, %v740_v40, %v741_v60  ;;  %v1171_v35 = vmul.f32 %v2326_v5, %v3072_v42  ;;  %v1172_v14 = vmul.f32 %v2326_v5, %v3075_v21  ;;  %v1368_v22 = vadd.f32 %v1286_v16, %v1127_v48 }
  0xd1   : > { %v1833_v7 = vsel %vm689_vm1, %v1830_v10, %v1832_v52  ;;  %v822_v46 = vadd.f32 %v742_v50, %v580_v34  ;;  %v1046_v58 = vrot.slane %v930_v57, 1  ;;  %v1047_v24 = vrot.slane %v931_v47, 1  ;;  %v3187_v50 = vld [vmem:[%s2324_s21 + $0x130] sm:$0x3] }
  0xd2   : > { %v1287_v27 = vrot.slane %v1171_v35, 2  ;;  %v1288_v30 = vrot.slane %v1172_v14, 2  ;;  %v1477_v31 = vmul.f32 %v2343_v15, %v3149_v44  ;;  %v1433_v45 = vadd.f32 %v1401_v6, %v1368_v22 }
  0xd3   : > { %v887_v25 = vadd.f32 %v855_v12, %v822_v46  ;;  %v1478_v37 = vmul.f32 %v2343_v15, %v3152_v26  ;;  %v1718_v10 = vmul.f32 %v2884_v54, %v3149_v44  ;;  %v1048_v63 = vsel %vm447_vm0, %v1046_v58, %v1047_v24 }
  0xd4   : > { %v1289_v55 = vsel %vm689_vm1, %v1287_v27, %v1288_v30  ;;  %v1593_v18 = vrot.slane %v1477_v31, 1  ;;  %v3164_v32 = vmul.f32 %v2884_v54, %v3152_v26  ;;  %v1674_v11 = vadd.f32 %v1592_v43, %v1433_v45 }
  0xd5   : > { %v1128_v33 = vadd.f32 %v1048_v63, %v887_v25  ;;  %v1402_v6 = vmul.f32 %v2332_v9, %v3149_v44  ;;  %v1594_v23 = vrot.slane %v1478_v37, 1  ;;  %v1834_v20 = vrot.slane %v1718_v10, 2 }
  0xd6   : > { %v1835_v16 = vrot.slane %v3164_v32, 2  ;;  %v383_v62 = vmul.f32 %v2313_v1, %v3033_v19  ;;  %v625_v36 = vmul.f32 %v2315_v2, %v3033_v19  ;;  %v1915_v28 = vadd.f32 %v1833_v7, %v1674_v11 }
  0xd7   : > { %v1369_v41 = vadd.f32 %v1289_v55, %v1128_v33  ;;  %v1595_v59 = vsel %vm447_vm0, %v1593_v18, %v1594_v23  ;;  %v307_v43 = vmul.f32 %v2317_v3, %v2998_v13  ;;  %v856_v17 = vmul.f32 %v2330_v8, %v3075_v21 }
  0xd8   : > { %v501_v49 = vrot.slane %v383_v62, 1  ;;  %v743_v38 = vrot.slane %v625_v36, 2  ;;  %v932_v51 = vmul.f32 %v2319_v4, %v3105_v39  ;;  %1947 = vst [vmem:[%s2433_s27 + $0x98] sm:$0xff] %v1915_v28  ;;  %v1978_v53 = vadd.f32 %v1977_v56, %v1915_v28 }
  0xd9   : > { %v2016_v52 = vmul.f32 %v1915_v28, %v1915_v28  ;;  %v1434_v19 = vadd.f32 %v1402_v6, %v1369_v41  ;;  %v1173_v61 = vmul.f32 %v2326_v5, %v3105_v39  ;;  %v1836_v40 = vsel %vm689_vm1, %v1834_v20, %v1835_v16 }
  0xda   : > { %v502_v13 = vsel %vm447_vm0, %v499_v29, %v501_v49  ;;  %v744_v12 = vsel %vm689_vm1, %v741_v60, %v743_v38  ;;  %v1049_v48 = vrot.slane %v932_v51, 1  ;;  %v1403_v14 = vmul.f32 %v2332_v9, %v3152_v26 }
  0xdb   : > { %v2047_v34 = vadd.f32 %v2046_v0, %v2016_v52  ;;  %v1675_v57 = vadd.f32 %v1595_v59, %v1434_v19  ;;  %v581_v47 = vadd.f32 %v502_v13, %v307_v43  ;;  %v1290_v35 = vrot.slane %v1173_v61, 2  ;;  %v3229_v52 = vld [vmem:[%s2324_s21 + $0x140] sm:$0xff] }
  0xdc   : > { %v1050_v56 = vsel %vm447_vm0, %v1047_v24, %v1049_v48  ;;  %v1479_v22 = vmul.f32 %v2343_v15, %v3187_v50  ;;  %v1720_v29 = vmul.f32 %v2884_v54, %v3187_v50  ;;  %v308_v0 = vmul.f32 %v2317_v3, %v3072_v42 }
  0xdd   : > { %v1916_v60 = vadd.f32 %v1836_v40, %v1675_v57  ;;  %v823_v7 = vadd.f32 %v744_v12, %v581_v47  ;;  %v384_v46 = vmul.f32 %v2313_v1, %v3072_v42  ;;  %v1291_v58 = vsel %vm689_vm1, %v1288_v30, %v1290_v35 }
  0xde   : > { %v1596_v24 = vrot.slane %v1479_v22, 1  ;;  %v3203_v27 = vmul.f32 %v2313_v1, %v3075_v21  ;;  %v626_v31 = vmul.f32 %v2315_v2, %v3072_v42  ;;  %v1837_v55 = vrot.slane %v1720_v29, 2 }
  0xdf   : > { %1948 = vst [vmem:[%s2433_s27 + $0xa0] sm:$0xff] %v1916_v60  ;;  %v1979_v45 = vadd.f32 %v1978_v53, %v1916_v60  ;;  %v2017_v25 = vmul.f32 %v1916_v60, %v1916_v60  ;;  %v888_v37 = vadd.f32 %v856_v17, %v823_v7  ;;  %v503_v10 = vrot.slane %v384_v46, 1  ;;  %v3226_v53 = vld [vmem:[%s2324_s21 + $0x138] sm:$0xff] }
  0xe0   : > { %v1597_v63 = vsel %vm447_vm0, %v1594_v23, %v1596_v24  ;;  %v504_v18 = vrot.slane %v3203_v27, 1  ;;  %v627_v30 = vmul.f32 %v2315_v2, %v3075_v21  ;;  %v745_v33 = vrot.slane %v626_v31, 2 }
  0xe1   : > { %v2048_v32 = vadd.f32 %v2047_v34, %v2017_v25  ;;  %v1129_v11 = vadd.f32 %v1050_v56, %v888_v37  ;;  %v857_v42 = vmul.f32 %v2330_v8, %v3149_v44  ;;  %v933_v23 = vmul.f32 %v2319_v4, %v3149_v44 }
  0xe2   : > { %v505_v6 = vsel %vm447_vm0, %v503_v10, %v504_v18  ;;  %v746_v20 = vrot.slane %v627_v30, 2  ;;  %v934_v62 = vmul.f32 %v2319_v4, %v3152_v26  ;;  %v1174_v41 = vmul.f32 %v2326_v5, %v3149_v44 }
  0xe3   : > { %v1370_v36 = vadd.f32 %v1291_v58, %v1129_v11  ;;  %v582_v28 = vadd.f32 %v505_v6, %v308_v0  ;;  %v1175_v59 = vmul.f32 %v2326_v5, %v3152_v26  ;;  %v1838_v43 = vsel %vm689_vm1, %v1835_v16, %v1837_v55  ;;  %v3259_v55 = vld [vmem:[%s2324_s21 + $0x148] sm:$0x3] }
  0xe4   : > { %v747_v49 = vsel %vm689_vm1, %v745_v33, %v746_v20  ;;  %v1051_v38 = vrot.slane %v933_v23, 1  ;;  %v1052_v17 = vrot.slane %v934_v62, 1  ;;  %v1292_v61 = vrot.slane %v1174_v41, 2 }
  0xe5   : > { %v1435_v51 = vadd.f32 %v1403_v14, %v1370_v36  ;;  %v824_v19 = vadd.f32 %v747_v49, %v582_v28  ;;  %v1293_v40 = vrot.slane %v1175_v59, 2  ;;  %v1480_v12 = vmul.f32 %v2343_v15, %v3226_v53 }
  0xe6   : > { %v1053_v13 = vsel %vm447_vm0, %v1051_v38, %v1052_v17  ;;  %v1481_v16 = vmul.f32 %v2343_v15, %v3229_v52  ;;  %v1721_v48 = vmul.f32 %v2884_v54, %v3226_v53  ;;  %v1404_v47 = vmul.f32 %v2332_v9, %v3226_v53 }
  0xe7   : > { %v1676_v34 = vadd.f32 %v1597_v63, %v1435_v51  ;;  %v889_v57 = vadd.f32 %v857_v42, %v824_v19  ;;  %v3242_v35 = vmul.f32 %v2884_v54, %v3229_v52  ;;  %v1294_v56 = vsel %vm689_vm1, %v1292_v61, %v1293_v40 }
  0xe8   : > { %v1598_v14 = vrot.slane %v1480_v12, 1  ;;  %v1599_v22 = vrot.slane %v1481_v16, 1  ;;  %v1839_v29 = vrot.slane %v1721_v48, 2  ;;  %v386_v46 = vmul.f32 %v2313_v1, %v3105_v39 }
  0xe9   : > { %v1917_v60 = vadd.f32 %v1838_v43, %v1676_v34  ;;  %v1130_v7 = vadd.f32 %v1053_v13, %v889_v57  ;;  %v1840_v0 = vrot.slane %v3242_v35, 2  ;;  %v309_v24 = vmul.f32 %v2317_v3, %v3075_v21 }
  0xea   : > { %v1600_v58 = vsel %vm447_vm0, %v1598_v14, %v1599_v22  ;;  %v628_v27 = vmul.f32 %v2315_v2, %v3105_v39  ;;  %v935_v31 = vmul.f32 %v2319_v4, %v3187_v50  ;;  %v858_v63 = vmul.f32 %v2330_v8, %v3152_v26 }
  0xeb   : > { %1949 = vst [vmem:[%s2433_s27 + $0xa8] sm:$0xff] %v1917_v60  ;;  %v1980_v25 = vadd.f32 %v1979_v45, %v1917_v60  ;;  %v2018_v37 = vmul.f32 %v1917_v60, %v1917_v60  ;;  %v1371_v10 = vadd.f32 %v1294_v56, %v1130_v7  ;;  %v506_v30 = vrot.slane %v386_v46, 1 }
  0xec   : > { %v748_v11 = vrot.slane %v628_v27, 2  ;;  %v1054_v33 = vrot.slane %v935_v31, 1  ;;  %v1176_v21 = vmul.f32 %v2326_v5, %v3187_v50  ;;  %v1841_v6 = vsel %vm689_vm1, %v1839_v29, %v1840_v0 }
  0xed   : > { %v2049_v42 = vadd.f32 %v2048_v32, %v2018_v37  ;;  %v1436_v39 = vadd.f32 %v1404_v47, %v1371_v10  ;;  %v1482_v45 = vmul.f32 %v2343_v15, %v3259_v55  ;;  %v507_v23 = vsel %vm447_vm0, %v504_v18, %v506_v30  ;;  %v3307_v37 = vld [vmem:[%s2324_s21 + $0x150] sm:$0xff]  ;;  %v3310_v30 = vld [vmem:[%s2324_s21 + $0x158] sm:$0xff] }
  0xee   : > { %v749_v62 = vsel %vm689_vm1, %v746_v20, %v748_v11  ;;  %v1295_v36 = vrot.slane %v1176_v21, 2  ;;  %v1405_v28 = vmul.f32 %v2332_v9, %v3229_v52  ;;  %v583_v59 = vadd.f32 %v507_v23, %v309_v24 }
  0xef   : > { %v1677_v41 = vadd.f32 %v1600_v58, %v1436_v39  ;;  %v1601_v43 = vrot.slane %v1482_v45, 1  ;;  %v1723_v32 = vmul.f32 %v2884_v54, %v3259_v55  ;;  %v1055_v49 = vsel %vm447_vm0, %v1052_v17, %v1054_v33 }
  0xf0   : > { %v1296_v38 = vsel %vm689_vm1, %v1293_v40, %v1295_v36  ;;  %v387_v18 = vmul.f32 %v2313_v1, %v3149_v44  ;;  %v3278_v20 = vmul.f32 %v2313_v1, %v3152_v26  ;;  %v825_v19 = vadd.f32 %v749_v62, %v583_v59 }
  0xf1   : > { %v1918_v51 = vadd.f32 %v1841_v6, %v1677_v41  ;;  %v1602_v61 = vsel %vm447_vm0, %v1599_v22, %v1601_v43  ;;  %v310_v13 = vmul.f32 %v2317_v3, %v3149_v44  ;;  %v629_v17 = vmul.f32 %v2315_v2, %v3149_v44 }
  0xf2   : > { %v508_v12 = vrot.slane %v387_v18, 1  ;;  %v509_v16 = vrot.slane %v3278_v20, 1  ;;  %v630_v40 = vmul.f32 %v2315_v2, %v3152_v26  ;;  %v890_v57 = vadd.f32 %v858_v63, %v825_v19 }
  0xf3   : > { %1950 = vst [vmem:[%s2433_s27 + $0xb0] sm:$0xff] %v1918_v51  ;;  %v3289_v48 = vadd.f32 %v1980_v25, %v1918_v51  ;;  %v2019_v34 = vmul.f32 %v1918_v51, %v1918_v51  ;;  %v1842_v47 = vrot.slane %v1723_v32, 2  ;;  %v750_v56 = vrot.slane %v629_v17, 2 }
  0xf4   : > { %v510_v35 = vsel %vm447_vm0, %v508_v12, %v509_v16  ;;  %v751_v14 = vrot.slane %v630_v40, 2  ;;  %v859_v22 = vmul.f32 %v2330_v8, %v3226_v53  ;;  %v1131_v44 = vadd.f32 %v1055_v49, %v890_v57 }
  0xf5   : > { %v3294_v29 = vadd.f32 %v2049_v42, %v2019_v34  ;;  %v584_v60 = vadd.f32 %v510_v35, %v310_v13  ;;  %v936_v7 = vmul.f32 %v2319_v4, %v3226_v53  ;;  %v937_v58 = vmul.f32 %v2319_v4, %v3229_v52 }
  0xf6   : > { %v752_v46 = vsel %vm689_vm1, %v750_v56, %v751_v14  ;;  %v1177_v24 = vmul.f32 %v2326_v5, %v3226_v53  ;;  %v1178_v27 = vmul.f32 %v2326_v5, %v3229_v52  ;;  %v1372_v31 = vadd.f32 %v1296_v38, %v1131_v44 }
  0xf7   : > { %v1843_v25 = vsel %vm689_vm1, %v1840_v0, %v1842_v47  ;;  %v826_v10 = vadd.f32 %v752_v46, %v584_v60  ;;  %v1056_v63 = vrot.slane %v936_v7, 1  ;;  %v1057_v11 = vrot.slane %v937_v58, 1 }
  0xf8   : > { %v1297_v33 = vrot.slane %v1177_v24, 2  ;;  %v1298_v21 = vrot.slane %v1178_v27, 2  ;;  %v1483_v42 = vmul.f32 %v2343_v15, %v3307_v37  ;;  %v1437_v39 = vadd.f32 %v1405_v28, %v1372_v31 }
  0xf9   : > { %v891_v6 = vadd.f32 %v859_v22, %v826_v10  ;;  %v1484_v45 = vmul.f32 %v2343_v15, %v3310_v30  ;;  %v1724_v0 = vmul.f32 %v2884_v54, %v3307_v37  ;;  %v1058_v23 = vsel %vm447_vm0, %v1056_v63, %v1057_v11  ;;  %v3343_v22 = vld [vmem:[%s2324_s21 + $0x160] sm:$0x3] }
  0xfa   : > { %v1299_v62 = vsel %vm689_vm1, %v1297_v33, %v1298_v21  ;;  %v1603_v36 = vrot.slane %v1483_v42, 1  ;;  %v1725_v41 = vmul.f32 %v2884_v54, %v3310_v30  ;;  %v1678_v59 = vadd.f32 %v1602_v61, %v1437_v39 }
  0xfb   : > { %v1132_v43 = vadd.f32 %v1058_v23, %v891_v6  ;;  %v1406_v28 = vmul.f32 %v2332_v9, %v3307_v37  ;;  %v1604_v32 = vrot.slane %v1484_v45, 1  ;;  %v1844_v49 = vrot.slane %v1724_v0, 2 }
  0xfc   : > { %v1845_v38 = vrot.slane %v1725_v41, 2  ;;  %v389_v18 = vmul.f32 %v2313_v1, %v3187_v50  ;;  %v631_v20 = vmul.f32 %v2315_v2, %v3187_v50  ;;  %v3328_v51 = vadd.f32 %v1843_v25, %v1678_v59 }
  0xfd   : > { %v1373_v19 = vadd.f32 %v1299_v62, %v1132_v43  ;;  %v311_v61 = vmul.f32 %v2317_v3, %v3152_v26  ;;  %v1605_v13 = vsel %vm447_vm0, %v1603_v36, %v1604_v32  ;;  %v938_v40 = vmul.f32 %v2319_v4, %v3259_v55 }
  0xfe   : > { %v511_v12 = vrot.slane %v389_v18, 1  ;;  %v753_v17 = vrot.slane %v631_v20, 2  ;;  %1951 = vst [vmem:[%s2433_s27 + $0xb8] sm:$0xff] %v3328_v51  ;;  %v1179_v50 = vmul.f32 %v2326_v5, %v3259_v55  ;;  %v1846_v57 = vsel %vm689_vm1, %v1844_v49, %v1845_v38 }
  0xff   : > { %v1438_v34 = vadd.f32 %v1406_v28, %v1373_v19  ;;  %v1059_v26 = vrot.slane %v938_v40, 1  ;;  %v860_v60 = vmul.f32 %v2330_v8, %v3229_v52  ;;  %v1485_v46 = vmul.f32 %v2343_v15, %v3343_v22 }
 0x100   : > { %v512_v47 = vsel %vm447_vm0, %v509_v16, %v511_v12  ;;  %v754_v35 = vsel %vm689_vm1, %v751_v14, %v753_v17  ;;  %v1300_v7 = vrot.slane %v1179_v50, 2  ;;  %v1726_v58 = vmul.f32 %v2884_v54, %v3343_v22  ;;  %v3392_v12 = vld [vmem:[%s2324_s21 + $0x168] sm:$0xff]  ;;  %v3395_v17 = vld [vmem:[%s2324_s21 + $0x170] sm:$0xff] }
 0x101   : > { %v1679_v56 = vadd.f32 %v1605_v13, %v1438_v34  ;;  %v585_v44 = vadd.f32 %v512_v47, %v311_v61  ;;  %v390_v14 = vmul.f32 %v2313_v1, %v3226_v53  ;;  %v1060_v27 = vsel %vm447_vm0, %v1057_v11, %v1059_v26 }
 0x102   : > { %v1606_v31 = vrot.slane %v1485_v46, 1  ;;  %v3358_v25 = vmul.f32 %v2313_v1, %v3229_v52  ;;  %v632_v10 = vmul.f32 %v2315_v2, %v3226_v53  ;;  %v1407_v54 = vmul.f32 %v2332_v9, %v3310_v30 }
 0x103   : > { %v3351_v24 = vadd.f32 %v1846_v57, %v1679_v56  ;;  %v827_v16 = vadd.f32 %v754_v35, %v585_v44  ;;  %v312_v33 = vmul.f32 %v2317_v3, %v3226_v53  ;;  %v513_v42 = vrot.slane %v390_v14, 1  ;;  %v3406_v35 = vld [vmem:[%s3653_s1 + $0x8] ss:$0 sm:$0xff] }
 0x104   : > { %v1301_v11 = vsel %vm689_vm1, %v1298_v21, %v1300_v7  ;;  %v1847_v39 = vrot.slane %v1726_v58, 2  ;;  %v514_v6 = vrot.slane %v3358_v25, 1  ;;  %v633_v45 = vmul.f32 %v2315_v2, %v3229_v52 }
 0x105   : > { %1952 = vst [vmem:[%s2433_s27 + $0xc0] sm:$0xff] %v3351_v24  ;;  %v892_v63 = vadd.f32 %v860_v60, %v827_v16  ;;  %v1607_v23 = vsel %vm447_vm0, %v1604_v32, %v1606_v31  ;;  %v755_v62 = vrot.slane %v632_v10, 2  ;;  %v861_v36 = vmul.f32 %v2330_v8, %v3307_v37 }
 0x106   : > { %v515_v53 = vsel %vm447_vm0, %v513_v42, %v514_v6  ;;  %v756_v41 = vrot.slane %v633_v45, 2  ;;  %v939_v21 = vmul.f32 %v2319_v4, %v3307_v37  ;;  %v3380_v59 = vmul.f32 %v2319_v4, %v3310_v30 }
 0x107   : > { %v1133_v0 = vadd.f32 %v1060_v27, %v892_v63  ;;  %v586_v28 = vadd.f32 %v515_v53, %v312_v33  ;;  %v1180_v32 = vmul.f32 %v2326_v5, %v3307_v37  ;;  %v3386_v49 = vmul.f32 %v2326_v5, %v3310_v30 }
 0x108   : > { %v1848_v18 = vsel %vm689_vm1, %v1845_v38, %v1847_v39  ;;  %v757_v20 = vsel %vm689_vm1, %v755_v62, %v756_v41  ;;  %v1061_v19 = vrot.slane %v939_v21, 1  ;;  %v1062_v61 = vrot.slane %v3380_v59, 1 }
 0x109   : > { %v1374_v43 = vadd.f32 %v1301_v11, %v1133_v0  ;;  %v828_v40 = vadd.f32 %v757_v20, %v586_v28  ;;  %v1302_v34 = vrot.slane %v1180_v32, 2  ;;  %v1303_v50 = vrot.slane %v3386_v49, 2  ;;  %v3436_v0 = vld [vmem:[%s2324_s21 + $0x178] sm:$0x3] }
 0x10a   : > { %v1063_v57 = vsel %vm447_vm0, %v1061_v19, %v1062_v61  ;;  %v1486_v47 = vmul.f32 %v2343_v15, %v3392_v12  ;;  %v1487_v38 = vmul.f32 %v2343_v15, %v3395_v17  ;;  %v1727_v26 = vmul.f32 %v3406_v35, %v3392_v12 }
 0x10b   : > { %v1439_v13 = vadd.f32 %v1407_v54, %v1374_v43  ;;  %v893_v44 = vadd.f32 %v861_v36, %v828_v40  ;;  %v3412_v60 = vmul.f32 %v3406_v35, %v3395_v17  ;;  %v2020_v7 = vmul.f32 %v3328_v51, %v3328_v51 }
 0x10c   : > { %v1304_v46 = vsel %vm689_vm1, %v1302_v34, %v1303_v50  ;;  %v1608_v58 = vrot.slane %v1486_v47, 1  ;;  %v1609_v16 = vrot.slane %v1487_v38, 1  ;;  %v1408_v31 = vmul.f32 %v2332_v9, %v3392_v12 }
 0x10d   : > { %v1680_v56 = vadd.f32 %v1607_v23, %v1439_v13  ;;  %v1134_v27 = vadd.f32 %v1063_v57, %v893_v44  ;;  %v392_v25 = vmul.f32 %v2313_v1, %v3259_v55  ;;  %v1849_v10 = vrot.slane %v1727_v26, 2 }
 0x10e   : > { %v1850_v63 = vrot.slane %v3412_v60, 2  ;;  %v634_v54 = vmul.f32 %v2315_v2, %v3259_v55  ;;  %v941_v33 = vmul.f32 %v2319_v4, %v3343_v22  ;;  %v1982_v42 = vadd.f32 %v3289_v48, %v3328_v51 }
 0x10f   : > { %v3417_v14 = vadd.f32 %v1848_v18, %v1680_v56  ;;  %v1375_v11 = vadd.f32 %v1304_v46, %v1134_v27  ;;  %v313_v39 = vmul.f32 %v2317_v3, %v3229_v52  ;;  %v1610_v45 = vsel %vm447_vm0, %v1608_v58, %v1609_v16 }
 0x110   : > { %v516_v23 = vrot.slane %v392_v25, 1  ;;  %v758_v62 = vrot.slane %v634_v54, 2  ;;  %v1182_v55 = vmul.f32 %v2326_v5, %v3343_v22  ;;  %v3441_v36 = vadd.f32 %v3294_v29, %v2020_v7 }
 0x111   : > { %1953 = vst [vmem:[%s2433_s27 + $0xc8] sm:$0xff] %v3417_v14  ;;  %v1440_v53 = vadd.f32 %v1408_v31, %v1375_v11  ;;  %v1064_v48 = vrot.slane %v941_v33, 1  ;;  %v1488_v51 = vmul.f32 %v2343_v15, %v3436_v0  ;;  %v1851_v21 = vsel %vm689_vm1, %v1849_v10, %v1850_v63 }
 0x112   : > { %v517_v52 = vsel %vm447_vm0, %v514_v6, %v516_v23  ;;  %v759_v59 = vsel %vm689_vm1, %v756_v41, %v758_v62  ;;  %v862_v43 = vmul.f32 %v2330_v8, %v3310_v30  ;;  %v1305_v49 = vrot.slane %v1182_v55, 2  ;;  %v3496_v62 = vld [vmem:[%s2324_s21 + $0x188] sm:$0xff] }
 0x113   : > { %v1681_v28 = vadd.f32 %v1610_v45, %v1440_v53  ;;  %v587_v32 = vadd.f32 %v517_v52, %v313_v39  ;;  %v1729_v29 = vmul.f32 %v3406_v35, %v3436_v0  ;;  %v3453_v18 = vadd.f32 %v1982_v42, %v3351_v24  ;;  %v3493_v39 = vld [vmem:[%s2324_s21 + $0x180] sm:$0xff] }
 0x114   : > { %v1611_v20 = vrot.slane %v1488_v51, 1  ;;  %v393_v19 = vmul.f32 %v2313_v1, %v3307_v37  ;;  %v3459_v6 = vmul.f32 %v2313_v1, %v3310_v30  ;;  %v1065_v40 = vsel %vm447_vm0, %v1062_v61, %v1064_v48 }
 0x115   : > { %v3461_v41 = vadd.f32 %v1851_v21, %v1681_v28  ;;  %v829_v13 = vadd.f32 %v759_v59, %v587_v32  ;;  %v314_v34 = vmul.f32 %v2317_v3, %v3307_v37  ;;  %v635_v38 = vmul.f32 %v2315_v2, %v3307_v37 }
 0x116   : > { %v518_v57 = vrot.slane %v393_v19, 1  ;;  %v519_v47 = vrot.slane %v3459_v6, 1  ;;  %v636_v26 = vmul.f32 %v2315_v2, %v3310_v30  ;;  %v1306_v44 = vsel %vm689_vm1, %v1303_v50, %v1305_v49 }
 0x117   : > { %1954 = vst [vmem:[%s2433_s27 + $0xd0] sm:$0xff] %v3461_v41  ;;  %v894_v56 = vadd.f32 %v862_v43, %v829_v13  ;;  %v1409_v61 = vmul.f32 %v2332_v9, %v3395_v17  ;;  %v1852_v60 = vrot.slane %v1729_v29, 2  ;;  %v1612_v7 = vsel %vm447_vm0, %v1609_v16, %v1611_v20 }
 0x118   : > { %v520_v46 = vsel %vm447_vm0, %v518_v57, %v519_v47  ;;  %v760_v58 = vrot.slane %v635_v38, 2  ;;  %v761_v37 = vrot.slane %v636_v26, 2  ;;  %v863_v25 = vmul.f32 %v2330_v8, %v3392_v12 }
 0x119   : > { %v1135_v27 = vadd.f32 %v1065_v40, %v894_v56  ;;  %v588_v31 = vadd.f32 %v520_v46, %v314_v34  ;;  %v942_v50 = vmul.f32 %v2319_v4, %v3392_v12  ;;  %v943_v54 = vmul.f32 %v2319_v4, %v3395_v17 }
 0x11a   : > { %v762_v10 = vsel %vm689_vm1, %v760_v58, %v761_v37  ;;  %v1183_v16 = vmul.f32 %v2326_v5, %v3392_v12  ;;  %v3489_v33 = vmul.f32 %v2326_v5, %v3395_v17  ;;  %v1853_v11 = vsel %vm689_vm1, %v1850_v63, %v1852_v60 }
 0x11b   : > { %v1376_v42 = vadd.f32 %v1306_v44, %v1135_v27  ;;  %v830_v45 = vadd.f32 %v762_v10, %v588_v31  ;;  %v1066_v23 = vrot.slane %v942_v50, 1  ;;  %v1067_v55 = vrot.slane %v943_v54, 1  ;;  %v3536_v10 = vld [vmem:[%s2324_s21 + $0x190] sm:$0x3] }
 0x11c   : > { %v1307_v53 = vrot.slane %v1183_v16, 2  ;;  %v1308_v48 = vrot.slane %v3489_v33, 2  ;;  %v1489_v51 = vmul.f32 %v2343_v15, %v3493_v39  ;;  %v1490_v59 = vmul.f32 %v2343_v15, %v3496_v62 }
 0x11d   : > { %v1441_v21 = vadd.f32 %v1409_v61, %v1376_v42  ;;  %v895_v52 = vadd.f32 %v863_v25, %v830_v45  ;;  %v1730_v63 = vmul.f32 %v3406_v35, %v3493_v39  ;;  %v1068_v43 = vsel %vm447_vm0, %v1066_v23, %v1067_v55 }
 0x11e   : > { %v1309_v28 = vsel %vm689_vm1, %v1307_v53, %v1308_v48  ;;  %v1613_v32 = vrot.slane %v1489_v51, 1  ;;  %v3509_v49 = vmul.f32 %v3406_v35, %v3496_v62  ;;  %v1410_v19 = vmul.f32 %v2332_v9, %v3493_v39 }
 0x11f   : > { %v1682_v29 = vadd.f32 %v1612_v7, %v1441_v21  ;;  %v1136_v20 = vadd.f32 %v1068_v43, %v895_v52  ;;  %v1614_v6 = vrot.slane %v1490_v59, 1  ;;  %v1854_v13 = vrot.slane %v1730_v63, 2 }
 0x120   : > { %v1855_v40 = vrot.slane %v3509_v49, 2  ;;  %v395_v34 = vmul.f32 %v2313_v1, %v3343_v22  ;;  %v637_v57 = vmul.f32 %v2315_v2, %v3343_v22  ;;  %v2021_v38 = vmul.f32 %v3351_v24, %v3351_v24 }
 0x121   : > { %v3520_v26 = vadd.f32 %v1853_v11, %v1682_v29  ;;  %v1377_v56 = vadd.f32 %v1309_v28, %v1136_v20  ;;  %v315_v44 = vmul.f32 %v2317_v3, %v3310_v30  ;;  %v1615_v61 = vsel %vm447_vm0, %v1613_v32, %v1614_v6 }
 0x122   : > { %v521_v60 = vrot.slane %v395_v34, 1  ;;  %v763_v7 = vrot.slane %v637_v57, 2  ;;  %v944_v46 = vmul.f32 %v2319_v4, %v3436_v0  ;;  %v1185_v24 = vmul.f32 %v2326_v5, %v3436_v0 }
 0x123   : > { %1955 = vst [vmem:[%s2433_s27 + $0xd8] sm:$0xff] %v3520_v26  ;;  %v1442_v22 = vadd.f32 %v1410_v19, %v1377_v56  ;;  %v1856_v58 = vsel %vm689_vm1, %v1854_v13, %v1855_v40  ;;  %v2052_v25 = vadd.f32 %v3441_v36, %v2021_v38  ;;  %v864_v16 = vmul.f32 %v2330_v8, %v3395_v17  ;;  %v280_v38 = vld [vmem:[%s2324_s21 + $0x198] sm:$0xff]  ;;  %v3583_v56 = vld [vmem:[%s2324_s21 + $0x1a0] sm:$0xff] }
 0x124   : > { %v522_v27 = vsel %vm447_vm0, %v519_v47, %v521_v60  ;;  %v764_v31 = vsel %vm689_vm1, %v761_v37, %v763_v7  ;;  %v1069_v30 = vrot.slane %v944_v46, 1  ;;  %v3542_v33 = vadd.f32 %v3453_v18, %v3417_v14 }
 0x125   : > { %v1683_v50 = vadd.f32 %v1615_v61, %v1442_v22  ;;  %v589_v54 = vadd.f32 %v522_v27, %v315_v44  ;;  %v1310_v42 = vrot.slane %v1185_v24, 2  ;;  %v1491_v47 = vmul.f32 %v2343_v15, %v3536_v10 }
 0x126   : > { %v1732_v37 = vmul.f32 %v3406_v35, %v3536_v10  ;;  %v2022_v36 = vmul.f32 %v3417_v14, %v3417_v14  ;;  %v396_v23 = vmul.f32 %v2313_v1, %v3392_v12  ;;  %v1070_v53 = vsel %vm447_vm0, %v1067_v55, %v1069_v30 }
 0x127   : > { %v3550_v11 = vadd.f32 %v1856_v58, %v1683_v50  ;;  %v831_v45 = vadd.f32 %v764_v31, %v589_v54  ;;  %v1616_v18 = vrot.slane %v1491_v47, 1  ;;  %v3557_v51 = vmul.f32 %v2313_v1, %v3395_v17 }
 0x128   : > { %v638_v21 = vmul.f32 %v2315_v2, %v3392_v12  ;;  %v1411_v14 = vmul.f32 %v2332_v9, %v3496_v62  ;;  %v316_v59 = vmul.f32 %v2317_v3, %v3392_v12  ;;  %v523_v55 = vrot.slane %v396_v23, 1 }
 0x129   : > { %1956 = vst [vmem:[%s2433_s27 + $0xe0] sm:$0xff] %v3550_v11  ;;  %v896_v52 = vadd.f32 %v864_v16, %v831_v45  ;;  %v1311_v63 = vsel %vm689_vm1, %v1308_v48, %v1310_v42  ;;  %v1857_v43 = vrot.slane %v1732_v37, 2  ;;  %v524_v28 = vrot.slane %v3557_v51, 1 }
 0x12a   : > { %v639_v32 = vmul.f32 %v2315_v2, %v3395_v17  ;;  %v1617_v29 = vsel %vm447_vm0, %v1614_v6, %v1616_v18  ;;  %v765_v20 = vrot.slane %v638_v21, 2  ;;  %v865_v19 = vmul.f32 %v2330_v8, %v3493_v39 }
 0x12b   : > { %v1137_v49 = vadd.f32 %v1070_v53, %v896_v52  ;;  %v525_v13 = vsel %vm447_vm0, %v523_v55, %v524_v28  ;;  %v945_v34 = vmul.f32 %v2319_v4, %v3493_v39  ;;  %v3579_v48 = vmul.f32 %v2319_v4, %v3496_v62 }
 0x12c   : > { %v766_v12 = vrot.slane %v639_v32, 2  ;;  %v590_v44 = vadd.f32 %v525_v13, %v316_v59  ;;  %v1186_v6 = vmul.f32 %v2326_v5, %v3493_v39  ;;  %v1187_v61 = vmul.f32 %v2326_v5, %v3496_v62 }
 0x12d   : > { %v1378_v57 = vadd.f32 %v1311_v63, %v1137_v49  ;;  %v1858_v60 = vsel %vm689_vm1, %v1855_v40, %v1857_v43  ;;  %v1071_v46 = vrot.slane %v945_v34, 1  ;;  %v1072_v22 = vrot.slane %v3579_v48, 1 }
 0x12e   : > { %v767_v7 = vsel %vm689_vm1, %v765_v20, %v766_v12  ;;  %v1312_v27 = vrot.slane %v1186_v6, 2  ;;  %v1313_v31 = vrot.slane %v1187_v61, 2  ;;  %v1492_v50 = vmul.f32 %v2343_v15, %v280_v38 }
 0x12f   : > { %v1443_v24 = vadd.f32 %v1411_v14, %v1378_v57  ;;  %v832_v58 = vadd.f32 %v767_v7, %v590_v44  ;;  %v1073_v30 = vsel %vm447_vm0, %v1071_v46, %v1072_v22  ;;  %v1493_v39 = vmul.f32 %v2343_v15, %v3583_v56 }
 0x130   : > { %v1733_v54 = vmul.f32 %v3406_v35, %v280_v38  ;;  %v2053_v16 = vadd.f32 %v2052_v25, %v2022_v36  ;;  %v1734_v47 = vmul.f32 %v3406_v35, %v3583_v56  ;;  %v2023_v37 = vmul.f32 %v3461_v41, %v3461_v41 }
 0x131   : > { %v1684_v40 = vadd.f32 %v1617_v29, %v1443_v24  ;;  %v897_v42 = vadd.f32 %v865_v19, %v832_v58  ;;  %v1314_v45 = vsel %vm689_vm1, %v1312_v27, %v1313_v31  ;;  %v1618_v23 = vrot.slane %v1492_v50, 1 }
 0x132   : > { %v1619_v53 = vrot.slane %v1493_v39, 1  ;;  %v1412_v21 = vmul.f32 %v2332_v9, %v280_v38  ;;  %v398_v25 = vmul.f32 %v2313_v1, %v3436_v0  ;;  %v1859_v36 = vrot.slane %v1733_v54, 2 }
 0x133   : > { %v1925_v18 = vadd.f32 %v1858_v60, %v1684_v40  ;;  %v1138_v51 = vadd.f32 %v1073_v30, %v897_v42  ;;  %v1860_v52 = vrot.slane %v1734_v47, 2  ;;  %v640_v14 = vmul.f32 %v2315_v2, %v3436_v0  ;;  %v282_v0 = vld [vmem:[%s2324_s21 + $0x1a8] sm:$0x3] }
 0x134   : > { %v947_v59 = vmul.f32 %v2319_v4, %v3536_v10  ;;  %v1985_v55 = vadd.f32 %v3542_v33, %v3461_v41  ;;  %v317_v43 = vmul.f32 %v2317_v3, %v3395_v17  ;;  %v1620_v32 = vsel %vm447_vm0, %v1618_v23, %v1619_v53 }
 0x135   : > { %1957 = vst [vmem:[%s2433_s27 + $0xe8] sm:$0xff] %v1925_v18  ;;  %v1379_v63 = vadd.f32 %v1314_v45, %v1138_v51  ;;  %v526_v1 = vrot.slane %v398_v25, 1  ;;  %v768_v49 = vrot.slane %v640_v14, 2  ;;  %v1188_v29 = vmul.f32 %v2326_v5, %v3536_v10 }
 0x136   : > { %v2054_v20 = vadd.f32 %v2053_v16, %v2023_v37  ;;  %v2024_v2 = vmul.f32 %v3520_v26, %v3520_v26  ;;  %v1861_v41 = vsel %vm689_vm1, %v1859_v36, %v1860_v52  ;;  %v1074_v17 = vrot.slane %v947_v59, 1 }
 0x137   : > { %v1444_v4 = vadd.f32 %v1412_v21, %v1379_v63  ;;  %v527_v33 = vsel %vm447_vm0, %v524_v28, %v526_v1  ;;  %v769_v3 = vsel %vm689_vm1, %v766_v12, %v768_v49  ;;  %v1986_v19 = vadd.f32 %v1985_v55, %v3520_v26 }
 0x138   : > { %v591_v34 = vadd.f32 %v527_v33, %v317_v43  ;;  %v866_v5 = vmul.f32 %v2330_v8, %v3496_v62  ;;  %v1315_v10 = vrot.slane %v1188_v29, 2  ;;  %v1494_v48 = vmul.f32 %v2343_v15, %v282_v0 }
 0x139   : > { %v1685_v13 = vadd.f32 %v1620_v32, %v1444_v4  ;;  %v2055_v57 = vadd.f32 %v2054_v20, %v2024_v2  ;;  %v2025_v38 = vmul.f32 %v3550_v11, %v3550_v11  ;;  %v1075_v6 = vsel %vm447_vm0, %v1072_v22, %v1074_v17 }
 0x13a   : > { %v833_v28 = vadd.f32 %v769_v3, %v591_v34  ;;  %v1735_v12 = vmul.f32 %v3406_v35, %v282_v0  ;;  %v1987_v26 = vadd.f32 %v1986_v19, %v3550_v11  ;;  %v1316_v60 = vsel %vm689_vm1, %v1313_v31, %v1315_v10 }
 0x13b   : > { %v1926_v44 = vadd.f32 %v1861_v41, %v1685_v13  ;;  %v1621_v8 = vrot.slane %v1494_v48, 1  ;;  %v2056_v62 = vadd.f32 %v2055_v57, %v2025_v38  ;;  %v2026_v15 = vmul.f32 %v1925_v18, %v1925_v18 }
 0x13c   : > { %v898_v61 = vadd.f32 %v866_v5, %v833_v28  ;;  %v1413_v46 = vmul.f32 %v2332_v9, %v3583_v56  ;;  %v1862_v24 = vrot.slane %v1735_v12, 2  ;;  %v1988_v58 = vadd.f32 %v1987_v26, %v1925_v18 }
 0x13d   : > { %1958 = vst [vmem:[%s2433_s27 + $0xf0] sm:$0xff] %v1926_v44  ;;  %v1622_v22 = vsel %vm447_vm0, %v1619_v53, %v1621_v8  ;;  %v2057_v35 = vadd.f32 %v2056_v62, %v2026_v15  ;;  %v2027_v30 = vmul.f32 %v1926_v44, %v1926_v44 }
 0x13e   : > { %v1139_v7 = vadd.f32 %v1075_v6, %v898_v61  ;;  %v1863_v50 = vsel %vm689_vm1, %v1860_v52, %v1862_v24  ;;  %v1989_v31 = vadd.f32 %v1988_v58, %v1926_v44 }
 0x13f   : > { %v2058_v16 = vadd.f32 %v2057_v35, %v2027_v30 }
 0x140   : > { %v1380_v27 = vadd.f32 %v1316_v60, %v1139_v7 }
 0x142   : > { %v1445_v11 = vadd.f32 %v1413_v46, %v1380_v27 }
 0x144   : > { %v1686_v39 = vadd.f32 %v1622_v22, %v1445_v11 }
 0x146   : > { %v1927_v54 = vadd.f32 %v1863_v50, %v1686_v39 }
 0x148   : > { %1959 = vst [vmem:[%s2433_s27 + $0xf8] sm:$0xff] %v1927_v54  ;;  %v2028_v40 = vmul.f32 %v1927_v54, %v1927_v54  ;;  %v1990_v42 = vadd.f32 %v1989_v31, %v1927_v54 }
 0x14a   : > { %v1991_v47 = vrot.slane %v1990_v42, 4  ;;  %v2059_v9 = vadd.f32 %v2058_v16, %v2028_v40 }
 0x14c   : > { %v1992_v56 = vadd.f32 %v1991_v47, %v1990_v42  ;;  %v2060_v37 = vrot.slane %v2059_v9, 4 }
 0x14e   : > { %v1993_v45 = vrot.slane %v1992_v56, 2  ;;  %v2061_v23 = vadd.f32 %v2060_v37, %v2059_v9 }
 0x150   : > { %v1994_v53 = vadd.f32 %v1993_v45, %v1992_v56  ;;  %v2062_v18 = vrot.slane %v2061_v23, 2 }
 0x152   : > { %v1995_v51 = vrot.slane %v1994_v53, 1  ;;  %v2063_v21 = vadd.f32 %v2062_v18, %v2061_v23 }
 0x154   : > { %v1996_v25 = vadd.f32 %v1995_v51, %v1994_v53  ;;  %v2064_v36 = vrot.slane %v2063_v21, 1 }
 0x156   : > { %2066 = vst [vmem:[%s228_s8] sm:$0x1] %v1996_v25  ;;  %v2065_v52 = vadd.f32 %v2064_v36, %v2063_v21 }
 0x158   : > { %2067 = vst [vmem:[%s228_s8 + $0x1] sm:$0x1] %v2065_v52 }
 0x159 PF: > { %s14_s14 = sadd.s32 1, %s2267_s14   ;;  %s3656_s12 = smov %s2263_s13 }
 0x15a   : > { %p11_p5 = scmp.ge.s32.totalorder %s14_s14, 4   ;;  %s3657_s13 = smov %s3659_s15 }
 0x15c   :  { %13 = sbr.rel (!%p11_p5) target bundleno = 2 (0x2), region = 70 }

</bundles_post_ra>
